<compile_context>
chip_gen: v7x
topology: tpu7x:2x2x1
jax: 0.10.0
libtpu: 0.0.40
codegen_flags: <defaults>
</compile_context>

<pallas_src>
import functools

import jax
import jax.numpy as jnp
from jax.experimental import pallas as pl
from jax.experimental.pallas import tpu as pltpu

EPS = 1e-5  # PyTorch nn.LayerNorm default eps


def _layernorm(x, gamma, beta):
    # x: (R, C); normalize over last dim (biased variance, like PyTorch).
    mu = jnp.mean(x, axis=-1, keepdims=True)
    var = jnp.mean((x - mu) ** 2, axis=-1, keepdims=True)
    return (x - mu) * jax.lax.rsqrt(var + EPS) * gamma + beta


def hypermix_kernel(
    x_ref,                       # (bt, nc, ns)  f32 or bf16
    g1_ref, b1_ref,              # (1, ns) f32   LayerNorm1
    g2_ref, b2_ref,              # (1, ns) f32   LayerNorm2
    wt1t_ref, bt1_ref,           # tokenMix:  (dc, nc) bf16, (dc, 1) f32
    wt2t_ref, bt2_ref,           #            (nc, dc) bf16, (nc, 1) f32
    wc1_ref, bc1_ref,            # channelMix:(ns, ds) bf16, (1, ds) f32
    wc2_ref, bc2_ref,            #            (ds, ns) bf16, (1, ns) f32
    o_ref,                       # (bt, nc, ns)  same dtype as x
    *, approx_gelu: bool,
):
    bt, nc, ns = x_ref.shape

    x3 = x_ref[...].astype(jnp.float32)                    # (bt, nc, ns)

    # ---- LayerNorm1 over ns, on the stacked (bt*nc, ns) slab ------------------
    # (free reshape: nc % 8 == 0 and ns % 128 == 0)
    xn2d = _layernorm(x3.reshape(bt * nc, ns), g1_ref[...], b1_ref[...])
    xn3 = xn2d.reshape(bt, nc, ns)

    # ---- token mixing: ONE wide contraction with N = bt*ns --------------------
    # Lane-concat the bt (nc, ns) slabs -> (nc, bt*ns).  ns is a multiple of 128
    # so every slab lands on a whole-tile lane offset (pure vld/vst copy).
    xn_wide = jnp.concatenate([xn3[b] for b in range(bt)], axis=1)      # (nc, bt*ns)
    h = jnp.dot(wt1t_ref[...], xn_wide.astype(jnp.bfloat16),
                preferred_element_type=jnp.float32) + bt1_ref[...]      # (dc, bt*ns)
    h = jax.nn.gelu(h, approximate=approx_gelu)
    x2_wide = jnp.dot(wt2t_ref[...], h.astype(jnp.bfloat16),
                      preferred_element_type=jnp.float32) + bt2_ref[...]  # (nc, bt*ns)

    # ---- residual 1 (on the *normalized* activations, as in the module) -------
    # Fold the add into the un-concat back to batch-stacked (bt*nc, ns) rows
    # (128-aligned lane slices -> tile-aligned copies).
    xr = jnp.concatenate(
        [xn3[b] + x2_wide[:, b * ns:(b + 1) * ns] for b in range(bt)],
        axis=0)                                                          # (bt*nc, ns)

    # ---- LayerNorm2 + channel mixing (MLP over ns), batch-stacked: M = bt*nc --
    yn = _layernorm(xr, g2_ref[...], b2_ref[...])
    h2 = jnp.dot(yn.astype(jnp.bfloat16), wc1_ref[...],
                 preferred_element_type=jnp.float32) + bc1_ref[...]      # (bt*nc, ds)
    h2 = jax.nn.gelu(h2, approximate=approx_gelu)
    c2 = jnp.dot(h2.astype(jnp.bfloat16), wc2_ref[...],
                 preferred_element_type=jnp.float32) + bc2_ref[...]      # (bt*nc, ns)

    # ---- residual 2 + store (lane-dense: ns % 128 == 0) ------------------------
    o_ref[...] = (xr + c2).reshape(bt, nc, ns).astype(o_ref.dtype)


def _vmem_capacity_bytes(default=64 << 20):
    """Per-core VMEM capacity (128 MiB v5e/v6e, 64 MiB v7x); safe fallback."""
    try:
        return int(pltpu.get_tpu_info().vmem_capacity_bytes)
    except Exception:
        return default


def _act_bytes(bt, nc, ns, dc, ds):
    # Conservative live-f32 estimate: ~6 (bt,nc,ns) slabs + wide token-mix hidden
    # (dc, bt*ns) + channel-mix hidden (bt*nc, ds).
    return 4 * bt * (6 * nc * ns + dc * ns + nc * ds)


def _pick_bt(B, nc, ns, dc, ds, vmem_cap):
    """Largest batch tile that keeps >= min(B,4) grid steps (>=2 per TC on 2-TC
    v7x; pipelining on 1-TC chips) and bounded live activations."""
    max_act = vmem_cap // 4
    min_steps = min(B, 4)
    best = 1
    for d in range(1, B + 1):
        if B % d:
            continue
        if (B // d) < min_steps:
            continue
        if _act_bytes(d, nc, ns, dc, ds) <= max_act:
            best = d
    return best


def _rep_spec(a, single_buffer):
    """Whole-array block, replicated (constant index_map) across the batch grid."""
    nd = a.ndim
    idx = lambda i, _nd=nd: (0,) * _nd
    if single_buffer:
        # Constant-index blocks never change between steps -> no need to
        # double-buffer the weights (saves weight-resident VMEM on v7x).
        return pl.BlockSpec(a.shape, idx, pipeline_mode=pl.Buffered(1))
    return pl.BlockSpec(a.shape, idx)


def hypermix_block(x, params, *, bt=None, approximate_gelu=True):
    """x: (B, nc, ns), f32 or bf16 (out dtype == x dtype).  params: see init_params."""
    B, nc, ns = x.shape
    assert ns % 128 == 0, "ns must be a multiple of 128 (pad ns): lane-dense LN/stores"
    assert nc % 8 == 0, "nc must be a multiple of 8 (pad nc): sublane alignment"
    dc = params["wt1"].shape[1]
    ds = params["wc1"].shape[1]

    vmem_cap = _vmem_capacity_bytes()
    if bt is None:
        bt = _pick_bt(B, nc, ns, dc, ds, vmem_cap)
    assert B % bt == 0

    f32, bf16 = jnp.float32, jnp.bfloat16
    # Pre-transposed / pre-cast parameters (in a real model the weights would be
    # stored in this layout / dtype; bf16 weights halve HBM->VMEM weight traffic).
    p_args = [
        params["g1"].astype(f32), params["b1"].astype(f32),
        params["g2"].astype(f32), params["b2"].astype(f32),
        params["wt1"].T.astype(bf16),                    # (dc, nc)
        params["bt1"].reshape(dc, 1).astype(f32),        # (dc, 1)
        params["wt2"].T.astype(bf16),                    # (nc, dc)
        params["bt2"].reshape(nc, 1).astype(f32),        # (nc, 1)
        params["wc1"].astype(bf16),                      # (ns, ds)
        params["bc1"].astype(f32),                       # (1, ds)
        params["wc2"].astype(bf16),                      # (ds, ns)
        params["bc2"].astype(f32),                       # (1, ns)
    ]
    param_bytes = sum(int(a.size) * a.dtype.itemsize for a in p_args)
    x_bytes = x.dtype.itemsize

    kernel = functools.partial(hypermix_kernel, approx_gelu=approximate_gelu)

    def build(single_buffer_params):
        in_specs = [pl.BlockSpec((bt, nc, ns), lambda i: (i, 0, 0))] + \
                   [_rep_spec(a, single_buffer_params) for a in p_args]
        out_spec = pl.BlockSpec((bt, nc, ns), lambda i: (i, 0, 0))

        # VMEM budget: double-buffered in/out blocks + params (x1 if single-
        # buffered) + live f32 intermediates, with headroom; capped at ~60% of
        # physical per-core VMEM (v7x: 64 MiB), floored at the 32 MiB default.
        io_bytes = 2 * bt * nc * ns * (x_bytes + x_bytes)
        w_bytes = param_bytes * (1 if single_buffer_params else 2)
        est = int(1.5 * (io_bytes + w_bytes + _act_bytes(bt, nc, ns, dc, ds)))
        cap = max(int(0.6 * vmem_cap), 32 << 20)
        vmem_limit = min(max(est, 32 << 20), cap)

        return pl.pallas_call(
            kernel,
            out_shape=jax.ShapeDtypeStruct((B, nc, ns), x.dtype),
            grid_spec=pltpu.PrefetchScalarGridSpec(
                num_scalar_prefetch=0,
                grid=(B // bt,),
                in_specs=in_specs,
                out_specs=out_spec,
            ),
            compiler_params=pltpu.CompilerParams(
                dimension_semantics=("parallel",),
                vmem_limit_bytes=vmem_limit,
            ),
        )

    try:
        return build(True)(x, *p_args)
    except Exception:
        # pl.Buffered(1) not supported by this JAX/Mosaic version -> fall back
        # to default double-buffered parameter blocks (correctness unchanged).
        return build(False)(x, *p_args)


def init_params(key, ns, nc, ds, dc):
    """Deterministic synthetic parameter init (shapes follow the PyTorch module)."""
    ks = jax.random.split(key, 8)
    s = 0.05
    return {
        # LayerNorm(ns) x2
        "g1": jnp.ones((1, ns), jnp.float32),
        "b1": jnp.zeros((1, ns), jnp.float32),
        "g2": jnp.ones((1, ns), jnp.float32),
        "b2": jnp.zeros((1, ns), jnp.float32),
        # tokenMix: Linear(nc -> dc), Linear(dc -> nc)   (stored as (in, out))
        "wt1": s * jax.random.normal(ks[0], (nc, dc), jnp.float32),
        "bt1": s * jax.random.normal(ks[1], (1, dc), jnp.float32),
        "wt2": s * jax.random.normal(ks[2], (dc, nc), jnp.float32),
        "bt2": s * jax.random.normal(ks[3], (1, nc), jnp.float32),
        # channelMix: Linear(ns -> ds), Linear(ds -> ns)
        "wc1": s * jax.random.normal(ks[4], (ns, ds), jnp.float32),
        "bc1": s * jax.random.normal(ks[5], (1, ds), jnp.float32),
        "wc2": s * jax.random.normal(ks[6], (ds, ns), jnp.float32),
        "bc2": s * jax.random.normal(ks[7], (1, ns), jnp.float32),
    }


def hypermix_reference(x, p):
    """Pure-JAX f32 reference mirroring the PyTorch forward (dropout rate = 0)."""
    def ln(v, g, b):
        mu = jnp.mean(v, -1, keepdims=True)
        var = jnp.mean((v - mu) ** 2, -1, keepdims=True)
        return (v - mu) / jnp.sqrt(var + EPS) * g + b

    xn = ln(x, p["g1"][0], p["b1"][0])
    t = jnp.swapaxes(xn, 1, 2)                                   # (B, ns, nc)
    h = jax.nn.gelu(t @ p["wt1"] + p["bt1"][0], approximate=False)
    t2 = h @ p["wt2"] + p["bt2"][0]
    xr = xn + jnp.swapaxes(t2, 1, 2)
    yn = ln(xr, p["g2"][0], p["b2"][0])
    h2 = jax.nn.gelu(yn @ p["wc1"] + p["bc1"][0], approximate=False)
    c2 = h2 @ p["wc2"] + p["bc2"][0]
    return xr + c2


if __name__ == "__main__":
    # Small demo shapes: nc % 8 == 0, ns % 128 == 0 (hard requirements), and
    # B large enough for a 4-step "parallel" grid (>= 2 steps per TC on v7x).
    B, nc, ns = 8, 64, 128
    ds, dc = 128, 128

    key = jax.random.PRNGKey(0)
    kx, kp = jax.random.split(key)
    x = jax.random.normal(kx, (B, nc, ns), jnp.float32)
    params = init_params(kp, ns, nc, ds, dc)

    # f32 I/O (matches the PyTorch module dtype); bf16 matmul operands + tanh
    # GELU inside -> tolerance looser than pure-f32.
    out = jax.block_until_ready(hypermix_block(x, params))
    ref = hypermix_reference(x, params)
    assert out.shape == (B, nc, ns) and out.dtype == x.dtype
    max_err = float(jnp.max(jnp.abs(out - ref)))
    assert jnp.allclose(out, ref, atol=5e-2, rtol=5e-2), \
        f"f32 mismatch vs reference (max abs err {max_err})"

    # bf16 activation I/O (halves in/out HBM traffic in the memory-bound regime).
    x_bf16 = x.astype(jnp.bfloat16)
    out_bf16 = jax.block_until_ready(hypermix_block(x_bf16, params))
    assert out_bf16.dtype == jnp.bfloat16
    assert jnp.allclose(out_bf16.astype(jnp.float32), ref, atol=1e-1, rtol=1e-1), \
        "bf16-I/O mismatch vs reference"

    print("KERNEL_OK")
</pallas_src>

<mosaic_0001>
module attributes {stable_mosaic.version = 11 : i64} {
  func.func @hypermix_kernel(%arg0: i32, %arg1: memref<2x64x128xf32, #tpu.memory_space<vmem>>, %arg2: memref<1x128xf32, #tpu.memory_space<vmem>>, %arg3: memref<1x128xf32, #tpu.memory_space<vmem>>, %arg4: memref<1x128xf32, #tpu.memory_space<vmem>>, %arg5: memref<1x128xf32, #tpu.memory_space<vmem>>, %arg6: memref<128x64xbf16, #tpu.memory_space<vmem>>, %arg7: memref<128x1xf32, #tpu.memory_space<vmem>>, %arg8: memref<64x128xbf16, #tpu.memory_space<vmem>>, %arg9: memref<64x1xf32, #tpu.memory_space<vmem>>, %arg10: memref<128x128xbf16, #tpu.memory_space<vmem>>, %arg11: memref<1x128xf32, #tpu.memory_space<vmem>>, %arg12: memref<128x128xbf16, #tpu.memory_space<vmem>>, %arg13: memref<1x128xf32, #tpu.memory_space<vmem>>, %arg14: memref<2x64x128xf32, #tpu.memory_space<vmem>>) attributes {dimension_semantics = [#tpu.dimension_semantics<parallel>], iteration_bounds = array<i64: 4>, scalar_prefetch = 0 : i64, scratch_operands = 0 : i64, tpu.core_type = #tpu.core_type<tc>, window_params = [{transform_indices = @transform_0, window_bounds = array<i64: 2, 64, 128>}, {pipeline_mode = #tpu.pipeline_mode<synchronous>, transform_indices = @transform_1, window_bounds = array<i64: 1, 128>}, {pipeline_mode = #tpu.pipeline_mode<synchronous>, transform_indices = @transform_2, window_bounds = array<i64: 1, 128>}, {pipeline_mode = #tpu.pipeline_mode<synchronous>, transform_indices = @transform_3, window_bounds = array<i64: 1, 128>}, {pipeline_mode = #tpu.pipeline_mode<synchronous>, transform_indices = @transform_4, window_bounds = array<i64: 1, 128>}, {pipeline_mode = #tpu.pipeline_mode<synchronous>, transform_indices = @transform_5, window_bounds = array<i64: 128, 64>}, {pipeline_mode = #tpu.pipeline_mode<synchronous>, transform_indices = @transform_6, window_bounds = array<i64: 128, 1>}, {pipeline_mode = #tpu.pipeline_mode<synchronous>, transform_indices = @transform_7, window_bounds = array<i64: 64, 128>}, {pipeline_mode = #tpu.pipeline_mode<synchronous>, transform_indices = @transform_8, window_bounds = array<i64: 64, 1>}, {pipeline_mode = #tpu.pipeline_mode<synchronous>, transform_indices = @transform_9, window_bounds = array<i64: 128, 128>}, {pipeline_mode = #tpu.pipeline_mode<synchronous>, transform_indices = @transform_10, window_bounds = array<i64: 1, 128>}, {pipeline_mode = #tpu.pipeline_mode<synchronous>, transform_indices = @transform_11, window_bounds = array<i64: 128, 128>}, {pipeline_mode = #tpu.pipeline_mode<synchronous>, transform_indices = @transform_12, window_bounds = array<i64: 1, 128>}, {transform_indices = @transform_13, window_bounds = array<i64: 2, 64, 128>}]} {
    %c0 = arith.constant 0 : index
    %c0_0 = arith.constant 0 : index
    %c0_1 = arith.constant 0 : index
    %0 = vector.load %arg1[%c0, %c0_0, %c0_1] : memref<2x64x128xf32, #tpu.memory_space<vmem>>, vector<2x64x128xf32>
    %1 = vector.shape_cast %0 : vector<2x64x128xf32> to vector<128x128xf32>
    %c0_2 = arith.constant 0 : index
    %c0_3 = arith.constant 0 : index
    %2 = vector.load %arg2[%c0_2, %c0_3] : memref<1x128xf32, #tpu.memory_space<vmem>>, vector<1x128xf32>
    %c0_4 = arith.constant 0 : index
    %c0_5 = arith.constant 0 : index
    %3 = vector.load %arg3[%c0_4, %c0_5] : memref<1x128xf32, #tpu.memory_space<vmem>>, vector<1x128xf32>
    %cst = arith.constant dense<0.000000e+00> : vector<128xf32>
    %4 = vector.multi_reduction <add>, %1, %cst [1] : vector<128x128xf32> to vector<128xf32>
    %5 = vector.shape_cast %4 : vector<128xf32> to vector<128x1xf32>
    %cst_6 = arith.constant 1.280000e+02 : f32
    %6 = vector.broadcast %cst_6 : f32 to vector<128x1xf32>
    %7 = arith.divf %5, %6 : vector<128x1xf32>
    %8 = vector.broadcast %7 : vector<128x1xf32> to vector<128x128xf32>
    %9 = arith.subf %1, %8 : vector<128x128xf32>
    %10 = arith.mulf %9, %9 : vector<128x128xf32>
    %cst_7 = arith.constant dense<0.000000e+00> : vector<128xf32>
    %11 = vector.multi_reduction <add>, %10, %cst_7 [1] : vector<128x128xf32> to vector<128xf32>
    %12 = vector.shape_cast %11 : vector<128xf32> to vector<128x1xf32>
    %cst_8 = arith.constant 1.280000e+02 : f32
    %13 = vector.broadcast %cst_8 : f32 to vector<128x1xf32>
    %14 = arith.divf %12, %13 : vector<128x1xf32>
    %15 = vector.broadcast %7 : vector<128x1xf32> to vector<128x128xf32>
    %16 = arith.subf %1, %15 : vector<128x128xf32>
    %cst_9 = arith.constant 9.99999974E-6 : f32
    %17 = vector.broadcast %cst_9 : f32 to vector<128x1xf32>
    %18 = arith.addf %14, %17 : vector<128x1xf32>
    %19 = math.rsqrt %18 : vector<128x1xf32>
    %20 = vector.broadcast %19 : vector<128x1xf32> to vector<128x128xf32>
    %21 = arith.mulf %16, %20 : vector<128x128xf32>
    %22 = vector.broadcast %2 : vector<1x128xf32> to vector<128x128xf32>
    %23 = arith.mulf %21, %22 : vector<128x128xf32>
    %24 = vector.broadcast %3 : vector<1x128xf32> to vector<128x128xf32>
    %25 = arith.addf %23, %24 : vector<128x128xf32>
    %26 = vector.shape_cast %25 : vector<128x128xf32> to vector<2x64x128xf32>
    %27 = vector.extract_strided_slice %26 {offsets = [0, 0, 0], sizes = [1, 64, 128], strides = [1, 1, 1]} : vector<2x64x128xf32> to vector<1x64x128xf32>
    %28 = vector.shape_cast %27 : vector<1x64x128xf32> to vector<64x128xf32>
    %29 = vector.extract_strided_slice %26 {offsets = [1, 0, 0], sizes = [1, 64, 128], strides = [1, 1, 1]} : vector<2x64x128xf32> to vector<1x64x128xf32>
    %30 = vector.shape_cast %29 : vector<1x64x128xf32> to vector<64x128xf32>
    %31 = tpu.concatenate %28, %30 in 1 : vector<64x128xf32>, vector<64x128xf32> -> vector<64x256xf32>
    %c0_10 = arith.constant 0 : index
    %c0_11 = arith.constant 0 : index
    %32 = vector.load %arg6[%c0_10, %c0_11] : memref<128x64xbf16, #tpu.memory_space<vmem>>, vector<128x64xbf16>
    %33 = arith.truncf %31 : vector<64x256xf32> to vector<64x256xbf16>
    %cst_12 = arith.constant dense<0.000000e+00> : vector<128x256xf32>
    %34 = tpu.matmul %32, %33, %cst_12 {dimension_numbers = #tpu.dot_dimension_numbers<[1], [0], [0], [1], [0, 0, 1, 1], [], []>} : vector<128x64xbf16>, vector<64x256xbf16>, vector<128x256xf32> -> vector<128x256xf32>
    %c0_13 = arith.constant 0 : index
    %c0_14 = arith.constant 0 : index
    %35 = vector.load %arg7[%c0_13, %c0_14] : memref<128x1xf32, #tpu.memory_space<vmem>>, vector<128x1xf32>
    %36 = vector.broadcast %35 : vector<128x1xf32> to vector<128x256xf32>
    %37 = arith.addf %34, %36 : vector<128x256xf32>
    %38 = arith.mulf %37, %37 : vector<128x256xf32>
    %39 = arith.mulf %37, %38 : vector<128x256xf32>
    %cst_15 = arith.constant 4.471500e-02 : f32
    %40 = vector.broadcast %cst_15 : f32 to vector<128x256xf32>
    %41 = arith.mulf %40, %39 : vector<128x256xf32>
    %42 = arith.addf %37, %41 : vector<128x256xf32>
    %cst_16 = arith.constant 0.797884583 : f32
    %43 = vector.broadcast %cst_16 : f32 to vector<128x256xf32>
    %44 = arith.mulf %43, %42 : vector<128x256xf32>
    %45 = math.tanh %44 : vector<128x256xf32>
    %cst_17 = arith.constant 1.000000e+00 : f32
    %46 = vector.broadcast %cst_17 : f32 to vector<128x256xf32>
    %47 = arith.addf %46, %45 : vector<128x256xf32>
    %cst_18 = arith.constant 5.000000e-01 : f32
    %48 = vector.broadcast %cst_18 : f32 to vector<128x256xf32>
    %49 = arith.mulf %48, %47 : vector<128x256xf32>
    %50 = arith.mulf %37, %49 : vector<128x256xf32>
    %c0_19 = arith.constant 0 : index
    %c0_20 = arith.constant 0 : index
    %51 = vector.load %arg8[%c0_19, %c0_20] : memref<64x128xbf16, #tpu.memory_space<vmem>>, vector<64x128xbf16>
    %52 = arith.truncf %50 : vector<128x256xf32> to vector<128x256xbf16>
    %cst_21 = arith.constant dense<0.000000e+00> : vector<64x256xf32>
    %53 = tpu.matmul %51, %52, %cst_21 {dimension_numbers = #tpu.dot_dimension_numbers<[1], [0], [0], [1], [0, 0, 1, 1], [], []>} : vector<64x128xbf16>, vector<128x256xbf16>, vector<64x256xf32> -> vector<64x256xf32>
    %c0_22 = arith.constant 0 : index
    %c0_23 = arith.constant 0 : index
    %54 = vector.load %arg9[%c0_22, %c0_23] : memref<64x1xf32, #tpu.memory_space<vmem>>, vector<64x1xf32>
    %55 = vector.broadcast %54 : vector<64x1xf32> to vector<64x256xf32>
    %56 = arith.addf %53, %55 : vector<64x256xf32>
    %57 = vector.extract_strided_slice %26 {offsets = [0, 0, 0], sizes = [1, 64, 128], strides = [1, 1, 1]} : vector<2x64x128xf32> to vector<1x64x128xf32>
    %58 = vector.shape_cast %57 : vector<1x64x128xf32> to vector<64x128xf32>
    %59 = vector.extract_strided_slice %56 {offsets = [0, 0], sizes = [64, 128], strides = [1, 1]} : vector<64x256xf32> to vector<64x128xf32>
    %60 = arith.addf %58, %59 : vector<64x128xf32>
    %61 = vector.extract_strided_slice %26 {offsets = [1, 0, 0], sizes = [1, 64, 128], strides = [1, 1, 1]} : vector<2x64x128xf32> to vector<1x64x128xf32>
    %62 = vector.shape_cast %61 : vector<1x64x128xf32> to vector<64x128xf32>
    %63 = vector.extract_strided_slice %56 {offsets = [0, 128], sizes = [64, 128], strides = [1, 1]} : vector<64x256xf32> to vector<64x128xf32>
    %64 = arith.addf %62, %63 : vector<64x128xf32>
    %65 = tpu.concatenate %60, %64 in 0 : vector<64x128xf32>, vector<64x128xf32> -> vector<128x128xf32>
    %c0_24 = arith.constant 0 : index
    %c0_25 = arith.constant 0 : index
    %66 = vector.load %arg4[%c0_24, %c0_25] : memref<1x128xf32, #tpu.memory_space<vmem>>, vector<1x128xf32>
    %c0_26 = arith.constant 0 : index
    %c0_27 = arith.constant 0 : index
    %67 = vector.load %arg5[%c0_26, %c0_27] : memref<1x128xf32, #tpu.memory_space<vmem>>, vector<1x128xf32>
    %cst_28 = arith.constant dense<0.000000e+00> : vector<128xf32>
    %68 = vector.multi_reduction <add>, %65, %cst_28 [1] : vector<128x128xf32> to vector<128xf32>
    %69 = vector.shape_cast %68 : vector<128xf32> to vector<128x1xf32>
    %cst_29 = arith.constant 1.280000e+02 : f32
    %70 = vector.broadcast %cst_29 : f32 to vector<128x1xf32>
    %71 = arith.divf %69, %70 : vector<128x1xf32>
    %72 = vector.broadcast %71 : vector<128x1xf32> to vector<128x128xf32>
    %73 = arith.subf %65, %72 : vector<128x128xf32>
    %74 = arith.mulf %73, %73 : vector<128x128xf32>
    %cst_30 = arith.constant dense<0.000000e+00> : vector<128xf32>
    %75 = vector.multi_reduction <add>, %74, %cst_30 [1] : vector<128x128xf32> to vector<128xf32>
    %76 = vector.shape_cast %75 : vector<128xf32> to vector<128x1xf32>
    %cst_31 = arith.constant 1.280000e+02 : f32
    %77 = vector.broadcast %cst_31 : f32 to vector<128x1xf32>
    %78 = arith.divf %76, %77 : vector<128x1xf32>
    %79 = vector.broadcast %71 : vector<128x1xf32> to vector<128x128xf32>
    %80 = arith.subf %65, %79 : vector<128x128xf32>
    %cst_32 = arith.constant 9.99999974E-6 : f32
    %81 = vector.broadcast %cst_32 : f32 to vector<128x1xf32>
    %82 = arith.addf %78, %81 : vector<128x1xf32>
    %83 = math.rsqrt %82 : vector<128x1xf32>
    %84 = vector.broadcast %83 : vector<128x1xf32> to vector<128x128xf32>
    %85 = arith.mulf %80, %84 : vector<128x128xf32>
    %86 = vector.broadcast %66 : vector<1x128xf32> to vector<128x128xf32>
    %87 = arith.mulf %85, %86 : vector<128x128xf32>
    %88 = vector.broadcast %67 : vector<1x128xf32> to vector<128x128xf32>
    %89 = arith.addf %87, %88 : vector<128x128xf32>
    %90 = arith.truncf %89 : vector<128x128xf32> to vector<128x128xbf16>
    %c0_33 = arith.constant 0 : index
    %c0_34 = arith.constant 0 : index
    %91 = vector.load %arg10[%c0_33, %c0_34] : memref<128x128xbf16, #tpu.memory_space<vmem>>, vector<128x128xbf16>
    %cst_35 = arith.constant dense<0.000000e+00> : vector<128x128xf32>
    %92 = tpu.matmul %90, %91, %cst_35 {dimension_numbers = #tpu.dot_dimension_numbers<[1], [0], [0], [1], [0, 0, 1, 1], [], []>} : vector<128x128xbf16>, vector<128x128xbf16>, vector<128x128xf32> -> vector<128x128xf32>
    %c0_36 = arith.constant 0 : index
    %c0_37 = arith.constant 0 : index
    %93 = vector.load %arg11[%c0_36, %c0_37] : memref<1x128xf32, #tpu.memory_space<vmem>>, vector<1x128xf32>
    %94 = vector.broadcast %93 : vector<1x128xf32> to vector<128x128xf32>
    %95 = arith.addf %92, %94 : vector<128x128xf32>
    %96 = arith.mulf %95, %95 : vector<128x128xf32>
    %97 = arith.mulf %95, %96 : vector<128x128xf32>
    %cst_38 = arith.constant 4.471500e-02 : f32
    %98 = vector.broadcast %cst_38 : f32 to vector<128x128xf32>
    %99 = arith.mulf %98, %97 : vector<128x128xf32>
    %100 = arith.addf %95, %99 : vector<128x128xf32>
    %cst_39 = arith.constant 0.797884583 : f32
    %101 = vector.broadcast %cst_39 : f32 to vector<128x128xf32>
    %102 = arith.mulf %101, %100 : vector<128x128xf32>
    %103 = math.tanh %102 : vector<128x128xf32>
    %cst_40 = arith.constant 1.000000e+00 : f32
    %104 = vector.broadcast %cst_40 : f32 to vector<128x128xf32>
    %105 = arith.addf %104, %103 : vector<128x128xf32>
    %cst_41 = arith.constant 5.000000e-01 : f32
    %106 = vector.broadcast %cst_41 : f32 to vector<128x128xf32>
    %107 = arith.mulf %106, %105 : vector<128x128xf32>
    %108 = arith.mulf %95, %107 : vector<128x128xf32>
    %109 = arith.truncf %108 : vector<128x128xf32> to vector<128x128xbf16>
    %c0_42 = arith.constant 0 : index
    %c0_43 = arith.constant 0 : index
    %110 = vector.load %arg12[%c0_42, %c0_43] : memref<128x128xbf16, #tpu.memory_space<vmem>>, vector<128x128xbf16>
    %cst_44 = arith.constant dense<0.000000e+00> : vector<128x128xf32>
    %111 = tpu.matmul %109, %110, %cst_44 {dimension_numbers = #tpu.dot_dimension_numbers<[1], [0], [0], [1], [0, 0, 1, 1], [], []>} : vector<128x128xbf16>, vector<128x128xbf16>, vector<128x128xf32> -> vector<128x128xf32>
    %c0_45 = arith.constant 0 : index
    %c0_46 = arith.constant 0 : index
    %112 = vector.load %arg13[%c0_45, %c0_46] : memref<1x128xf32, #tpu.memory_space<vmem>>, vector<1x128xf32>
    %113 = vector.broadcast %112 : vector<1x128xf32> to vector<128x128xf32>
    %114 = arith.addf %111, %113 : vector<128x128xf32>
    %115 = arith.addf %65, %114 : vector<128x128xf32>
    %116 = vector.shape_cast %115 : vector<128x128xf32> to vector<2x64x128xf32>
    %c0_47 = arith.constant 0 : index
    %c0_48 = arith.constant 0 : index
    %c0_49 = arith.constant 0 : index
    %117 = vector.load %arg14[%c0_47, %c0_48, %c0_49] : memref<2x64x128xf32, #tpu.memory_space<vmem>>, vector<2x64x128xf32>
    tpu.vector_store %arg14[%c0_47, %c0_48, %c0_49], %116 {strides = array<i32>} : memref<2x64x128xf32, #tpu.memory_space<vmem>>, vector<2x64x128xf32>,
    return
  }
  func.func @transform_0(%arg0: i32) -> (i32, i32, i32) {
    %c0_i32 = arith.constant 0 : i32
    %c0_i32_0 = arith.constant 0 : i32
    %c0_i32_1 = arith.constant 0 : i32
    return %arg0, %c0_i32, %c0_i32_0 : i32, i32, i32
  }
  func.func @transform_1(%arg0: i32) -> (i32, i32) {
    %c0_i32 = arith.constant 0 : i32
    %c0_i32_0 = arith.constant 0 : i32
    %c0_i32_1 = arith.constant 0 : i32
    return %c0_i32, %c0_i32_0 : i32, i32
  }
  func.func @transform_2(%arg0: i32) -> (i32, i32) {
    %c0_i32 = arith.constant 0 : i32
    %c0_i32_0 = arith.constant 0 : i32
    %c0_i32_1 = arith.constant 0 : i32
    return %c0_i32, %c0_i32_0 : i32, i32
  }
  func.func @transform_3(%arg0: i32) -> (i32, i32) {
    %c0_i32 = arith.constant 0 : i32
    %c0_i32_0 = arith.constant 0 : i32
    %c0_i32_1 = arith.constant 0 : i32
    return %c0_i32, %c0_i32_0 : i32, i32
  }
  func.func @transform_4(%arg0: i32) -> (i32, i32) {
    %c0_i32 = arith.constant 0 : i32
    %c0_i32_0 = arith.constant 0 : i32
    %c0_i32_1 = arith.constant 0 : i32
    return %c0_i32, %c0_i32_0 : i32, i32
  }
  func.func @transform_5(%arg0: i32) -> (i32, i32) {
    %c0_i32 = arith.constant 0 : i32
    %c0_i32_0 = arith.constant 0 : i32
    %c0_i32_1 = arith.constant 0 : i32
    return %c0_i32, %c0_i32_0 : i32, i32
  }
  func.func @transform_6(%arg0: i32) -> (i32, i32) {
    %c0_i32 = arith.constant 0 : i32
    %c0_i32_0 = arith.constant 0 : i32
    %c0_i32_1 = arith.constant 0 : i32
    return %c0_i32, %c0_i32_0 : i32, i32
  }
  func.func @transform_7(%arg0: i32) -> (i32, i32) {
    %c0_i32 = arith.constant 0 : i32
    %c0_i32_0 = arith.constant 0 : i32
    %c0_i32_1 = arith.constant 0 : i32
    return %c0_i32, %c0_i32_0 : i32, i32
  }
  func.func @transform_8(%arg0: i32) -> (i32, i32) {
    %c0_i32 = arith.constant 0 : i32
    %c0_i32_0 = arith.constant 0 : i32
    %c0_i32_1 = arith.constant 0 : i32
    return %c0_i32, %c0_i32_0 : i32, i32
  }
  func.func @transform_9(%arg0: i32) -> (i32, i32) {
    %c0_i32 = arith.constant 0 : i32
    %c0_i32_0 = arith.constant 0 : i32
    %c0_i32_1 = arith.constant 0 : i32
    return %c0_i32, %c0_i32_0 : i32, i32
  }
  func.func @transform_10(%arg0: i32) -> (i32, i32) {
    %c0_i32 = arith.constant 0 : i32
    %c0_i32_0 = arith.constant 0 : i32
    %c0_i32_1 = arith.constant 0 : i32
    return %c0_i32, %c0_i32_0 : i32, i32
  }
  func.func @transform_11(%arg0: i32) -> (i32, i32) {
    %c0_i32 = arith.constant 0 : i32
    %c0_i32_0 = arith.constant 0 : i32
    %c0_i32_1 = arith.constant 0 : i32
    return %c0_i32, %c0_i32_0 : i32, i32
  }
  func.func @transform_12(%arg0: i32) -> (i32, i32) {
    %c0_i32 = arith.constant 0 : i32
    %c0_i32_0 = arith.constant 0 : i32
    %c0_i32_1 = arith.constant 0 : i32
    return %c0_i32, %c0_i32_0 : i32, i32
  }
  func.func @transform_13(%arg0: i32) -> (i32, i32, i32) {
    %c0_i32 = arith.constant 0 : i32
    %c0_i32_0 = arith.constant 0 : i32
    %c0_i32_1 = arith.constant 0 : i32
    return %arg0, %c0_i32, %c0_i32_0 : i32, i32, i32
  }
}

module attributes {stable_mosaic.version = 11 : i64} {
  func.func @hypermix_kernel(%arg0: i32, %arg1: memref<2x64x128xf32, #tpu.memory_space<vmem>>, %arg2: memref<1x128xf32, #tpu.memory_space<vmem>>, %arg3: memref<1x128xf32, #tpu.memory_space<vmem>>, %arg4: memref<1x128xf32, #tpu.memory_space<vmem>>, %arg5: memref<1x128xf32, #tpu.memory_space<vmem>>, %arg6: memref<128x64xbf16, #tpu.memory_space<vmem>>, %arg7: memref<128x1xf32, #tpu.memory_space<vmem>>, %arg8: memref<64x128xbf16, #tpu.memory_space<vmem>>, %arg9: memref<64x1xf32, #tpu.memory_space<vmem>>, %arg10: memref<128x128xbf16, #tpu.memory_space<vmem>>, %arg11: memref<1x128xf32, #tpu.memory_space<vmem>>, %arg12: memref<128x128xbf16, #tpu.memory_space<vmem>>, %arg13: memref<1x128xf32, #tpu.memory_space<vmem>>, %arg14: memref<2x64x128xf32, #tpu.memory_space<vmem>>) attributes {dimension_semantics = [#tpu.dimension_semantics<parallel>], iteration_bounds = array<i64: 4>, scalar_prefetch = 0 : i64, scratch_operands = 0 : i64, tpu.core_type = #tpu.core_type<tc>, window_params = [{transform_indices = @transform_0, window_bounds = array<i64: 2, 64, 128>}, {pipeline_mode = #tpu.pipeline_mode<synchronous>, transform_indices = @transform_1, window_bounds = array<i64: 1, 128>}, {pipeline_mode = #tpu.pipeline_mode<synchronous>, transform_indices = @transform_2, window_bounds = array<i64: 1, 128>}, {pipeline_mode = #tpu.pipeline_mode<synchronous>, transform_indices = @transform_3, window_bounds = array<i64: 1, 128>}, {pipeline_mode = #tpu.pipeline_mode<synchronous>, transform_indices = @transform_4, window_bounds = array<i64: 1, 128>}, {pipeline_mode = #tpu.pipeline_mode<synchronous>, transform_indices = @transform_5, window_bounds = array<i64: 128, 64>}, {pipeline_mode = #tpu.pipeline_mode<synchronous>, transform_indices = @transform_6, window_bounds = array<i64: 128, 1>}, {pipeline_mode = #tpu.pipeline_mode<synchronous>, transform_indices = @transform_7, window_bounds = array<i64: 64, 128>}, {pipeline_mode = #tpu.pipeline_mode<synchronous>, transform_indices = @transform_8, window_bounds = array<i64: 64, 1>}, {pipeline_mode = #tpu.pipeline_mode<synchronous>, transform_indices = @transform_9, window_bounds = array<i64: 128, 128>}, {pipeline_mode = #tpu.pipeline_mode<synchronous>, transform_indices = @transform_10, window_bounds = array<i64: 1, 128>}, {pipeline_mode = #tpu.pipeline_mode<synchronous>, transform_indices = @transform_11, window_bounds = array<i64: 128, 128>}, {pipeline_mode = #tpu.pipeline_mode<synchronous>, transform_indices = @transform_12, window_bounds = array<i64: 1, 128>}, {transform_indices = @transform_13, window_bounds = array<i64: 2, 64, 128>}]} {
    %c0 = arith.constant 0 : index
    %c0_0 = arith.constant 0 : index
    %c0_1 = arith.constant 0 : index
    %0 = vector.load %arg1[%c0, %c0_0, %c0_1] : memref<2x64x128xf32, #tpu.memory_space<vmem>>, vector<2x64x128xf32>
    %1 = vector.shape_cast %0 : vector<2x64x128xf32> to vector<128x128xf32>
    %c0_2 = arith.constant 0 : index
    %c0_3 = arith.constant 0 : index
    %2 = vector.load %arg2[%c0_2, %c0_3] : memref<1x128xf32, #tpu.memory_space<vmem>>, vector<1x128xf32>
    %c0_4 = arith.constant 0 : index
    %c0_5 = arith.constant 0 : index
    %3 = vector.load %arg3[%c0_4, %c0_5] : memref<1x128xf32, #tpu.memory_space<vmem>>, vector<1x128xf32>
    %cst = arith.constant dense<0.000000e+00> : vector<128xf32>
    %4 = vector.multi_reduction <add>, %1, %cst [1] : vector<128x128xf32> to vector<128xf32>
    %5 = vector.shape_cast %4 : vector<128xf32> to vector<128x1xf32>
    %cst_6 = arith.constant 1.280000e+02 : f32
    %6 = vector.broadcast %cst_6 : f32 to vector<128x1xf32>
    %7 = arith.divf %5, %6 : vector<128x1xf32>
    %8 = vector.broadcast %7 : vector<128x1xf32> to vector<128x128xf32>
    %9 = arith.subf %1, %8 : vector<128x128xf32>
    %10 = arith.mulf %9, %9 : vector<128x128xf32>
    %cst_7 = arith.constant dense<0.000000e+00> : vector<128xf32>
    %11 = vector.multi_reduction <add>, %10, %cst_7 [1] : vector<128x128xf32> to vector<128xf32>
    %12 = vector.shape_cast %11 : vector<128xf32> to vector<128x1xf32>
    %cst_8 = arith.constant 1.280000e+02 : f32
    %13 = vector.broadcast %cst_8 : f32 to vector<128x1xf32>
    %14 = arith.divf %12, %13 : vector<128x1xf32>
    %15 = vector.broadcast %7 : vector<128x1xf32> to vector<128x128xf32>
    %16 = arith.subf %1, %15 : vector<128x128xf32>
    %cst_9 = arith.constant 9.99999974E-6 : f32
    %17 = vector.broadcast %cst_9 : f32 to vector<128x1xf32>
    %18 = arith.addf %14, %17 : vector<128x1xf32>
    %19 = math.rsqrt %18 : vector<128x1xf32>
    %20 = vector.broadcast %19 : vector<128x1xf32> to vector<128x128xf32>
    %21 = arith.mulf %16, %20 : vector<128x128xf32>
    %22 = vector.broadcast %2 : vector<1x128xf32> to vector<128x128xf32>
    %23 = arith.mulf %21, %22 : vector<128x128xf32>
    %24 = vector.broadcast %3 : vector<1x128xf32> to vector<128x128xf32>
    %25 = arith.addf %23, %24 : vector<128x128xf32>
    %26 = vector.shape_cast %25 : vector<128x128xf32> to vector<2x64x128xf32>
    %27 = vector.extract_strided_slice %26 {offsets = [0, 0, 0], sizes = [1, 64, 128], strides = [1, 1, 1]} : vector<2x64x128xf32> to vector<1x64x128xf32>
    %28 = vector.shape_cast %27 : vector<1x64x128xf32> to vector<64x128xf32>
    %29 = vector.extract_strided_slice %26 {offsets = [1, 0, 0], sizes = [1, 64, 128], strides = [1, 1, 1]} : vector<2x64x128xf32> to vector<1x64x128xf32>
    %30 = vector.shape_cast %29 : vector<1x64x128xf32> to vector<64x128xf32>
    %31 = tpu.concatenate %28, %30 in 1 : vector<64x128xf32>, vector<64x128xf32> -> vector<64x256xf32>
    %c0_10 = arith.constant 0 : index
    %c0_11 = arith.constant 0 : index
    %32 = vector.load %arg6[%c0_10, %c0_11] : memref<128x64xbf16, #tpu.memory_space<vmem>>, vector<128x64xbf16>
    %33 = arith.truncf %31 : vector<64x256xf32> to vector<64x256xbf16>
    %cst_12 = arith.constant dense<0.000000e+00> : vector<128x256xf32>
    %34 = tpu.matmul %32, %33, %cst_12 {dimension_numbers = #tpu.dot_dimension_numbers<[1], [0], [0], [1], [0, 0, 1, 1], [], []>} : vector<128x64xbf16>, vector<64x256xbf16>, vector<128x256xf32> -> vector<128x256xf32>
    %c0_13 = arith.constant 0 : index
    %c0_14 = arith.constant 0 : index
    %35 = vector.load %arg7[%c0_13, %c0_14] : memref<128x1xf32, #tpu.memory_space<vmem>>, vector<128x1xf32>
    %36 = vector.broadcast %35 : vector<128x1xf32> to vector<128x256xf32>
    %37 = arith.addf %34, %36 : vector<128x256xf32>
    %38 = arith.mulf %37, %37 : vector<128x256xf32>
    %39 = arith.mulf %37, %38 : vector<128x256xf32>
    %cst_15 = arith.constant 4.471500e-02 : f32
    %40 = vector.broadcast %cst_15 : f32 to vector<128x256xf32>
    %41 = arith.mulf %40, %39 : vector<128x256xf32>
    %42 = arith.addf %37, %41 : vector<128x256xf32>
    %cst_16 = arith.constant 0.797884583 : f32
    %43 = vector.broadcast %cst_16 : f32 to vector<128x256xf32>
    %44 = arith.mulf %43, %42 : vector<128x256xf32>
    %45 = math.tanh %44 : vector<128x256xf32>
    %cst_17 = arith.constant 1.000000e+00 : f32
    %46 = vector.broadcast %cst_17 : f32 to vector<128x256xf32>
    %47 = arith.addf %46, %45 : vector<128x256xf32>
    %cst_18 = arith.constant 5.000000e-01 : f32
    %48 = vector.broadcast %cst_18 : f32 to vector<128x256xf32>
    %49 = arith.mulf %48, %47 : vector<128x256xf32>
    %50 = arith.mulf %37, %49 : vector<128x256xf32>
    %c0_19 = arith.constant 0 : index
    %c0_20 = arith.constant 0 : index
    %51 = vector.load %arg8[%c0_19, %c0_20] : memref<64x128xbf16, #tpu.memory_space<vmem>>, vector<64x128xbf16>
    %52 = arith.truncf %50 : vector<128x256xf32> to vector<128x256xbf16>
    %cst_21 = arith.constant dense<0.000000e+00> : vector<64x256xf32>
    %53 = tpu.matmul %51, %52, %cst_21 {dimension_numbers = #tpu.dot_dimension_numbers<[1], [0], [0], [1], [0, 0, 1, 1], [], []>} : vector<64x128xbf16>, vector<128x256xbf16>, vector<64x256xf32> -> vector<64x256xf32>
    %c0_22 = arith.constant 0 : index
    %c0_23 = arith.constant 0 : index
    %54 = vector.load %arg9[%c0_22, %c0_23] : memref<64x1xf32, #tpu.memory_space<vmem>>, vector<64x1xf32>
    %55 = vector.broadcast %54 : vector<64x1xf32> to vector<64x256xf32>
    %56 = arith.addf %53, %55 : vector<64x256xf32>
    %57 = vector.extract_strided_slice %26 {offsets = [0, 0, 0], sizes = [1, 64, 128], strides = [1, 1, 1]} : vector<2x64x128xf32> to vector<1x64x128xf32>
    %58 = vector.shape_cast %57 : vector<1x64x128xf32> to vector<64x128xf32>
    %59 = vector.extract_strided_slice %56 {offsets = [0, 0], sizes = [64, 128], strides = [1, 1]} : vector<64x256xf32> to vector<64x128xf32>
    %60 = arith.addf %58, %59 : vector<64x128xf32>
    %61 = vector.extract_strided_slice %26 {offsets = [1, 0, 0], sizes = [1, 64, 128], strides = [1, 1, 1]} : vector<2x64x128xf32> to vector<1x64x128xf32>
    %62 = vector.shape_cast %61 : vector<1x64x128xf32> to vector<64x128xf32>
    %63 = vector.extract_strided_slice %56 {offsets = [0, 128], sizes = [64, 128], strides = [1, 1]} : vector<64x256xf32> to vector<64x128xf32>
    %64 = arith.addf %62, %63 : vector<64x128xf32>
    %65 = tpu.concatenate %60, %64 in 0 : vector<64x128xf32>, vector<64x128xf32> -> vector<128x128xf32>
    %c0_24 = arith.constant 0 : index
    %c0_25 = arith.constant 0 : index
    %66 = vector.load %arg4[%c0_24, %c0_25] : memref<1x128xf32, #tpu.memory_space<vmem>>, vector<1x128xf32>
    %c0_26 = arith.constant 0 : index
    %c0_27 = arith.constant 0 : index
    %67 = vector.load %arg5[%c0_26, %c0_27] : memref<1x128xf32, #tpu.memory_space<vmem>>, vector<1x128xf32>
    %cst_28 = arith.constant dense<0.000000e+00> : vector<128xf32>
    %68 = vector.multi_reduction <add>, %65, %cst_28 [1] : vector<128x128xf32> to vector<128xf32>
    %69 = vector.shape_cast %68 : vector<128xf32> to vector<128x1xf32>
    %cst_29 = arith.constant 1.280000e+02 : f32
    %70 = vector.broadcast %cst_29 : f32 to vector<128x1xf32>
    %71 = arith.divf %69, %70 : vector<128x1xf32>
    %72 = vector.broadcast %71 : vector<128x1xf32> to vector<128x128xf32>
    %73 = arith.subf %65, %72 : vector<128x128xf32>
    %74 = arith.mulf %73, %73 : vector<128x128xf32>
    %cst_30 = arith.constant dense<0.000000e+00> : vector<128xf32>
    %75 = vector.multi_reduction <add>, %74, %cst_30 [1] : vector<128x128xf32> to vector<128xf32>
    %76 = vector.shape_cast %75 : vector<128xf32> to vector<128x1xf32>
    %cst_31 = arith.constant 1.280000e+02 : f32
    %77 = vector.broadcast %cst_31 : f32 to vector<128x1xf32>
    %78 = arith.divf %76, %77 : vector<128x1xf32>
    %79 = vector.broadcast %71 : vector<128x1xf32> to vector<128x128xf32>
    %80 = arith.subf %65, %79 : vector<128x128xf32>
    %cst_32 = arith.constant 9.99999974E-6 : f32
    %81 = vector.broadcast %cst_32 : f32 to vector<128x1xf32>
    %82 = arith.addf %78, %81 : vector<128x1xf32>
    %83 = math.rsqrt %82 : vector<128x1xf32>
    %84 = vector.broadcast %83 : vector<128x1xf32> to vector<128x128xf32>
    %85 = arith.mulf %80, %84 : vector<128x128xf32>
    %86 = vector.broadcast %66 : vector<1x128xf32> to vector<128x128xf32>
    %87 = arith.mulf %85, %86 : vector<128x128xf32>
    %88 = vector.broadcast %67 : vector<1x128xf32> to vector<128x128xf32>
    %89 = arith.addf %87, %88 : vector<128x128xf32>
    %90 = arith.truncf %89 : vector<128x128xf32> to vector<128x128xbf16>
    %c0_33 = arith.constant 0 : index
    %c0_34 = arith.constant 0 : index
    %91 = vector.load %arg10[%c0_33, %c0_34] : memref<128x128xbf16, #tpu.memory_space<vmem>>, vector<128x128xbf16>
    %cst_35 = arith.constant dense<0.000000e+00> : vector<128x128xf32>
    %92 = tpu.matmul %90, %91, %cst_35 {dimension_numbers = #tpu.dot_dimension_numbers<[1], [0], [0], [1], [0, 0, 1, 1], [], []>} : vector<128x128xbf16>, vector<128x128xbf16>, vector<128x128xf32> -> vector<128x128xf32>
    %c0_36 = arith.constant 0 : index
    %c0_37 = arith.constant 0 : index
    %93 = vector.load %arg11[%c0_36, %c0_37] : memref<1x128xf32, #tpu.memory_space<vmem>>, vector<1x128xf32>
    %94 = vector.broadcast %93 : vector<1x128xf32> to vector<128x128xf32>
    %95 = arith.addf %92, %94 : vector<128x128xf32>
    %96 = arith.mulf %95, %95 : vector<128x128xf32>
    %97 = arith.mulf %95, %96 : vector<128x128xf32>
    %cst_38 = arith.constant 4.471500e-02 : f32
    %98 = vector.broadcast %cst_38 : f32 to vector<128x128xf32>
    %99 = arith.mulf %98, %97 : vector<128x128xf32>
    %100 = arith.addf %95, %99 : vector<128x128xf32>
    %cst_39 = arith.constant 0.797884583 : f32
    %101 = vector.broadcast %cst_39 : f32 to vector<128x128xf32>
    %102 = arith.mulf %101, %100 : vector<128x128xf32>
    %103 = math.tanh %102 : vector<128x128xf32>
    %cst_40 = arith.constant 1.000000e+00 : f32
    %104 = vector.broadcast %cst_40 : f32 to vector<128x128xf32>
    %105 = arith.addf %104, %103 : vector<128x128xf32>
    %cst_41 = arith.constant 5.000000e-01 : f32
    %106 = vector.broadcast %cst_41 : f32 to vector<128x128xf32>
    %107 = arith.mulf %106, %105 : vector<128x128xf32>
    %108 = arith.mulf %95, %107 : vector<128x128xf32>
    %109 = arith.truncf %108 : vector<128x128xf32> to vector<128x128xbf16>
    %c0_42 = arith.constant 0 : index
    %c0_43 = arith.constant 0 : index
    %110 = vector.load %arg12[%c0_42, %c0_43] : memref<128x128xbf16, #tpu.memory_space<vmem>>, vector<128x128xbf16>
    %cst_44 = arith.constant dense<0.000000e+00> : vector<128x128xf32>
    %111 = tpu.matmul %109, %110, %cst_44 {dimension_numbers = #tpu.dot_dimension_numbers<[1], [0], [0], [1], [0, 0, 1, 1], [], []>} : vector<128x128xbf16>, vector<128x128xbf16>, vector<128x128xf32> -> vector<128x128xf32>
    %c0_45 = arith.constant 0 : index
    %c0_46 = arith.constant 0 : index
    %112 = vector.load %arg13[%c0_45, %c0_46] : memref<1x128xf32, #tpu.memory_space<vmem>>, vector<1x128xf32>
    %113 = vector.broadcast %112 : vector<1x128xf32> to vector<128x128xf32>
    %114 = arith.addf %111, %113 : vector<128x128xf32>
    %115 = arith.addf %65, %114 : vector<128x128xf32>
    %116 = vector.shape_cast %115 : vector<128x128xf32> to vector<2x64x128xf32>
    %c0_47 = arith.constant 0 : index
    %c0_48 = arith.constant 0 : index
    %c0_49 = arith.constant 0 : index
    %117 = vector.load %arg14[%c0_47, %c0_48, %c0_49] : memref<2x64x128xf32, #tpu.memory_space<vmem>>, vector<2x64x128xf32>
    tpu.vector_store %arg14[%c0_47, %c0_48, %c0_49], %116 {strides = array<i32>} : memref<2x64x128xf32, #tpu.memory_space<vmem>>, vector<2x64x128xf32>,
    return
  }
  func.func @transform_0(%arg0: i32) -> (i32, i32, i32) {
    %c0_i32 = arith.constant 0 : i32
    %c0_i32_0 = arith.constant 0 : i32
    %c0_i32_1 = arith.constant 0 : i32
    return %arg0, %c0_i32, %c0_i32_0 : i32, i32, i32
  }
  func.func @transform_1(%arg0: i32) -> (i32, i32) {
    %c0_i32 = arith.constant 0 : i32
    %c0_i32_0 = arith.constant 0 : i32
    %c0_i32_1 = arith.constant 0 : i32
    return %c0_i32, %c0_i32_0 : i32, i32
  }
  func.func @transform_2(%arg0: i32) -> (i32, i32) {
    %c0_i32 = arith.constant 0 : i32
    %c0_i32_0 = arith.constant 0 : i32
    %c0_i32_1 = arith.constant 0 : i32
    return %c0_i32, %c0_i32_0 : i32, i32
  }
  func.func @transform_3(%arg0: i32) -> (i32, i32) {
    %c0_i32 = arith.constant 0 : i32
    %c0_i32_0 = arith.constant 0 : i32
    %c0_i32_1 = arith.constant 0 : i32
    return %c0_i32, %c0_i32_0 : i32, i32
  }
  func.func @transform_4(%arg0: i32) -> (i32, i32) {
    %c0_i32 = arith.constant 0 : i32
    %c0_i32_0 = arith.constant 0 : i32
    %c0_i32_1 = arith.constant 0 : i32
    return %c0_i32, %c0_i32_0 : i32, i32
  }
  func.func @transform_5(%arg0: i32) -> (i32, i32) {
    %c0_i32 = arith.constant 0 : i32
    %c0_i32_0 = arith.constant 0 : i32
    %c0_i32_1 = arith.constant 0 : i32
    return %c0_i32, %c0_i32_0 : i32, i32
  }
  func.func @transform_6(%arg0: i32) -> (i32, i32) {
    %c0_i32 = arith.constant 0 : i32
    %c0_i32_0 = arith.constant 0 : i32
    %c0_i32_1 = arith.constant 0 : i32
    return %c0_i32, %c0_i32_0 : i32, i32
  }
  func.func @transform_7(%arg0: i32) -> (i32, i32) {
    %c0_i32 = arith.constant 0 : i32
    %c0_i32_0 = arith.constant 0 : i32
    %c0_i32_1 = arith.constant 0 : i32
    return %c0_i32, %c0_i32_0 : i32, i32
  }
  func.func @transform_8(%arg0: i32) -> (i32, i32) {
    %c0_i32 = arith.constant 0 : i32
    %c0_i32_0 = arith.constant 0 : i32
    %c0_i32_1 = arith.constant 0 : i32
    return %c0_i32, %c0_i32_0 : i32, i32
  }
  func.func @transform_9(%arg0: i32) -> (i32, i32) {
    %c0_i32 = arith.constant 0 : i32
    %c0_i32_0 = arith.constant 0 : i32
    %c0_i32_1 = arith.constant 0 : i32
    return %c0_i32, %c0_i32_0 : i32, i32
  }
  func.func @transform_10(%arg0: i32) -> (i32, i32) {
    %c0_i32 = arith.constant 0 : i32
    %c0_i32_0 = arith.constant 0 : i32
    %c0_i32_1 = arith.constant 0 : i32
    return %c0_i32, %c0_i32_0 : i32, i32
  }
  func.func @transform_11(%arg0: i32) -> (i32, i32) {
    %c0_i32 = arith.constant 0 : i32
    %c0_i32_0 = arith.constant 0 : i32
    %c0_i32_1 = arith.constant 0 : i32
    return %c0_i32, %c0_i32_0 : i32, i32
  }
  func.func @transform_12(%arg0: i32) -> (i32, i32) {
    %c0_i32 = arith.constant 0 : i32
    %c0_i32_0 = arith.constant 0 : i32
    %c0_i32_1 = arith.constant 0 : i32
    return %c0_i32, %c0_i32_0 : i32, i32
  }
  func.func @transform_13(%arg0: i32) -> (i32, i32, i32) {
    %c0_i32 = arith.constant 0 : i32
    %c0_i32_0 = arith.constant 0 : i32
    %c0_i32_1 = arith.constant 0 : i32
    return %arg0, %c0_i32, %c0_i32_0 : i32, i32, i32
  }
}

</mosaic_0001>

<bundles_post_ra>
// kernel: tpu_custom_call.1
= control target key start
LH: loop header
LB: loop body
LE: loop exit
PB: predicated region body
PF: predicated region fallthrough
CT: control target
= control target key end

     0   :  { %18 = vsyncpa [#allocation3], 0  ;;  %s4136_s0 = inlined_call_operand.hbm [shape: f32[8,64,128], index: 0, kind: input, shape index: {}]   ;;  %s4137_s1 = inlined_call_operand.vmem [shape: f32[1,128], index: 1, kind: input, shape index: {}]   ;;  %s4138_s2 = inlined_call_operand.vmem [shape: f32[1,128], index: 2, kind: input, shape index: {}]   ;;  %s4139_s3 = inlined_call_operand.vmem [shape: f32[1,128], index: 3, kind: input, shape index: {}]   ;;  %s4140_s4 = inlined_call_operand.vmem [shape: f32[1,128], index: 4, kind: input, shape index: {}]   ;;  %s4141_s5 = inlined_call_operand.vmem [shape: bf16[128,64], index: 5, kind: input, shape index: {}]   ;;  %s4142_s6 = inlined_call_operand.vmem [shape: f32[128,1], index: 6, kind: input, shape index: {}]   ;;  %s4143_s7 = inlined_call_operand.vmem [shape: bf16[64,128], index: 7, kind: input, shape index: {}]   ;;  %s4144_s8 = inlined_call_operand.vmem [shape: f32[64,1], index: 8, kind: input, shape index: {}]   ;;  %s4145_s9 = inlined_call_operand.vmem [shape: bf16[128,128], index: 9, kind: input, shape index: {}]   ;;  %s4146_s10 = inlined_call_operand.vmem [shape: f32[1,128], index: 10, kind: input, shape index: {}]   ;;  %s4147_s11 = inlined_call_operand.vmem [shape: bf16[128,128], index: 11, kind: input, shape index: {}]   ;;  %s4148_s12 = inlined_call_operand.vmem [shape: f32[1,128], index: 12, kind: input, shape index: {}]   ;;  %s4149_s13 = inlined_call_operand.hbm [shape: f32[8,64,128], index: 13, kind: output, shape index: {}]  }
   0x1   :  { %20 = vsyncpa [#allocation3 + $0x1], 0 }
   0x2   :  { %21 = vsyncpa [#allocation4], 0 }
   0x3   :  { %23 = vsyncpa [#allocation4 + $0x1], 0  ;;  %s2901_s25 = smov 0   ;;  %s2903_s26 = smov 0  }
   0x4   :  { %s2905_s27 = smov 0   ;;  %s2907_s28 = smov 0  }
   0x5 LB: > { %4163 = sst [smem:[#allocation8_spill]] %s2810_s25  ;;  %s2922_s29 = sadd.s32 4294967295, %s2822_s28   ;;  %s2822_s28 = sphi %s2907_s28, %s4188_s28   ;;  %s2818_s27 = sphi %s2905_s27, %s4190_s27   ;;  %s2814_s26 = sphi %s2903_s26, %s4192_s26   ;;  %s2810_s25 = sphi %s2901_s25, %s4191_s25  }
   0x6   : > { %4164 = sst [smem:[#allocation9_spill]] %s2818_s27  ;;  %s2311_s30 = sadd.s32 4294967294, %s2822_s28  }
   0x7   : > { %s2926_s14 = sadd.s32 1, %s2822_s28   ;;  %s36_s15 = sadd.s32 1, %s2818_s27 }
   0x8   : > { %4165 = sst [smem:[#allocation10_spill]] %s2926_s14  ;;  %s33_s16 = ssub.s32 %s2822_s28, %s2926_s14 }
   0x9   : > { %p43_p0 = scmp.ne.s32.totalorder %s2818_s27, %s2814_s26  ;;  %p34_p1 = scmp.eq.s32.totalorder %s33_s16, 0 }
   0xa   : > { %p44_p2 = scmp.eq.s32.totalorder %s2822_s28, 0  ;;  %p49_p3 = scmp.ne.s32.totalorder %s2814_s26, %s2810_s25 }
   0xb   : > { %p50_p4 = scmp.eq.s32.totalorder %s2922_s29, 0  ;;  %p325_p7 = scmp.eq.s32.totalorder %s2922_s29, 3 }
   0xc   : > { %s2938_s17 = scalar_select %p34_p1, %s2818_s27, %s36_s15  }
   0xd   : > { %p2940_p5 = por %p44_p2, %p43_p0  ;;  %p2944_p6 = por %p50_p4, %p49_p3 }
   0xe   : > { %4166 = sst [smem:[#allocation11_spill]] %s2938_s17  ;;  %p331_p8 = scmp.eq.s32.totalorder %s2311_s30, 3 }
   0xf   : > { %p2497_p9 = scmp.lt.s32.totalorder %s2822_s28, 4  ;;  %p2950_p10 = por %p325_p7, %p43_p0 }
  0x10   : > { %p2954_p11 = por %p331_p8, %p49_p3  ;;  %s387_s22 = sand.u32 1, %s2818_s27  }
  0x11   : > { %s4169_s20 = scalar_select %p2950_p10, 1, 0 }
  0x12   : > { %s4170_s21 = scalar_select %p2954_p11, 1, 0 }
  0x13   : > { %s2370_s23 = sshll.u32 %s2822_s28, 11  ;;  %s2314_s24 = sshll.u32 %s387_s22, 7 }
  0x14   : > { %s2963_s17 = scalar_lea.hbm %s4136_s0, %s2370_s23  ;;  %s391_s30 = scalar_lea.vmem [#allocation2], %s2314_s24 }
  0x15   : > { %s399_s14 = sshll.u32 %s391_s30, 4  ;;  %p2967_p12 = pnand %p2497_p9, %p2940_p5  ;;  %s2971_s14 = int_to_ptr.vmem [resolvable:$true] %s399_s14 }
  0x16   : > { %s2973_s27 = scalar_lea.sflag [#allocation3], %s387_s22  ;;  %s2726_s15 = scalar_lea.hbm %s2963_s17, 2048 }
  0x17   : > { %p2727_p13 = scmp.ne.s32.totalorder %s2963_s17, %s2726_s15  ;;  %p2728_p0 = pneg %p2967_p12 }
  0x18   : > { %s2731_s24 = scalar_lea.hbm %s4136_s0, 8192  ;;  %p2732_p3 = scmp.lt.u32.totalorder %s2963_s17, %s4136_s0 }
  0x19   : > { %p2729_p1 = pnand %p2728_p0, %p2727_p13  ;;  %p2733_p4 = scmp.lt.u32.totalorder %s2731_s24, %s2726_s15 }
  0x1a   : > { %p2735_p7 = scmp.lt.u32.totalorder %s2726_s15, %s2963_s17 }
  0x1b   : > { %p2730_p2 = pneg %p2729_p1  ;;  %p2734_p5 = por %p2733_p4, %p2732_p3 }
  0x1d   : > { %p2736_p8 = por %p2735_p7, %p2734_p5 }
  0x1f   : > { %p2737_p9 = pnand %p2736_p8, %p2730_p2 }
  0x21   : > { %2740 = shalt.err (!%p2737_p9)
}
  0x22   : > { %s2741_s22 = scalar_lea.vmem %s2971_s14, 2048  ;;  %s2824_s23 = smov [#allocation2]  }
  0x23   : > { %p2742_p13 = scmp.ne.s32.totalorder %s2971_s14, %s2741_s22  ;;  %s2746_s18 = sshll.u32 %s2824_s23, 4  ;;  %s2747_s18 = int_to_ptr.vmem [resolvable:$false] %s2746_s18 }
  0x24   : > { %s2748_s16 = scalar_lea.vmem %s2747_s18, 4096  ;;  %p2749_p10 = scmp.lt.s32.totalorder %s2971_s14, %s2747_s18 }
  0x25   : > { %p2744_p1 = pnand %p2742_p13, %p2728_p0  ;;  %p2750_p3 = scmp.lt.s32.totalorder %s2748_s16, %s2741_s22 }
  0x27   : > { %p2745_p11 = pneg %p2744_p1  ;;  %p2751_p4 = por %p2750_p3, %p2749_p10 }
  0x29   : > { %p2752_p5 = pnand %p2751_p4, %p2745_p11 }
  0x2b   : > { %2755 = shalt.err (!%p2752_p5)
}
  0x2c   : > { %s2825_s15 = smov 128   ;;  %s2826_s24 = smov 8  }
  0x2d   : > { %2492 = dma.hbm_to_vmem [thread:$0]  (!%p2967_p12), %s2963_s17, 2048, %s2971_s14, %s2973_s27, %s2825_s15, %s2825_s15, %s2826_s24  }
  0x2e   : > { %p2318_p0 = scmp.ge.s32.totalorder %s2822_s28, 1  ;;  %p407_p2 = scmp.lt.s32.totalorder %s2822_s28, 5 }
  0x30   : > { %p408_p7 = pnand %p2318_p0, %p407_p2 }
  0x32   : > { %411 = sbr.rel (%p408_p7) target bundleno = 1777 (0x6f1), region = 72 }
  0x39   : > { %s3004_s30 = sand.u32 1, %s2814_s26  }
  0x3a   : > { %s2319_s22 = sshll.u32 %s3004_s30, 7  ;;  %s414_s23 = scalar_lea.sflag [#allocation3], %s3004_s30 }
  0x3b   : > { %s3010_s18 = scalar_lea.vmem [#allocation2], %s2319_s22 }
  0x3c   : > { %2801 = dma.done.wait (%p2944_p6), %s414_s23, 2048  }
  0x3d   : > { %2803 = vsyncadd (%p2944_p6), %s414_s23, 4294965248  ;;  %v471_v0 = vld [vmem:[%s3010_s18 + $0x40] sm:$0xff]  ;;  %v472_v2 = vld [vmem:[%s3010_s18 + $0x48] sm:$0xff]  ;;  %vm862_vm0 = vcmask 523264   ;;  %s4054_s15 = scalar_lea.vmem [#allocation5], %s2319_s22  ;;  %s2372_s22 = sshll.u32 %s2922_s29, 11 }
  0x3e   : > { %v463_v1 = vld [vmem:[%s3010_s18] sm:$0xff]  ;;  %497 = vadd.xlane.f32.xlu0 %v471_v0  ;;  %v464_v3 = vld [vmem:[%s3010_s18 + $0x8] sm:$0xff]  ;;  %v473_v4 = vld [vmem:[%s3010_s18 + $0x50] sm:$0xff]  ;;  %s2238_s24 = sshll.u32 %s4054_s15, 4  ;;  %s4087_s25 = scalar_lea.hbm %s4149_s13, %s2372_s22  ;;  %s4089_s24 = int_to_ptr.vmem [resolvable:$true] %s2238_s24 }
  0x3f   : > { %481 = vadd.xlane.f32.xlu1 %v463_v1  ;;  %v474_v5 = vld [vmem:[%s3010_s18 + $0x58] sm:$0xff]  ;;  %v465_v6 = vld [vmem:[%s3010_s18 + $0x10] sm:$0xff]  ;;  %v475_v8 = vld [vmem:[%s3010_s18 + $0x60] sm:$0xff]  ;;  %s2224_s29 = scalar_lea.sflag [#allocation4], %s3004_s30  ;;  %s2756_s27 = scalar_lea.vmem %s4089_s24, 2048 }
  0x40   : > { %v466_v7 = vld [vmem:[%s3010_s18 + $0x18] sm:$0xff]  ;;  %v476_v9 = vld [vmem:[%s3010_s18 + $0x68] sm:$0xff]  ;;  %v3027_v10 = vld [vmem:[%s3010_s18 + $0x20] sm:$0xff]  ;;  %p2757_p6 = scmp.ne.s32.totalorder %s4089_s24, %s2756_s27  ;;  %p4185_p10 = scmp.ne.s32.totalorder %s4169_s20, 0 }
  0x41   : > { %v3030_v11 = vld [vmem:[%s3010_s18 + $0x28] sm:$0xff]  ;;  %v3033_v12 = vld [vmem:[%s3010_s18 + $0x70] sm:$0xff]  ;;  %v3036_v13 = vld [vmem:[%s3010_s18 + $0x78] sm:$0xff]  ;;  %s2828_s14 = smov [#allocation5]  }
  0x42   : > { %499 = vadd.xlane.f32.xlu0 %v472_v2  ;;  %v3043_v14 = vld [vmem:[%s3010_s18 + $0x30] sm:$0xff]  ;;  %v3046_v15 = vld [vmem:[%s3010_s18 + $0x38] sm:$0xff]  ;;  %p2758_p11 = pnand %p2757_p6, %p4185_p10  ;;  %s2760_s17 = sshll.u32 %s2828_s14, 4  ;;  %s2761_s17 = int_to_ptr.vmem [resolvable:$false] %s2760_s17 }
  0x43   : > { %483 = vadd.xlane.f32.xlu1 %v464_v3  ;;  %s2762_s19 = scalar_lea.vmem %s2761_s17, 4096  ;;  %p2763_p8 = scmp.lt.s32.totalorder %s4089_s24, %s2761_s17 }
  0x44   : > { %p2759_p12 = pneg %p2758_p11  ;;  %p2764_p9 = scmp.lt.s32.totalorder %s2762_s19, %s2756_s27 }
  0x46   : > { %501 = vadd.xlane.f32.xlu0 %v473_v4  ;;  %p2765_p13 = por %p2764_p9, %p2763_p8 }
  0x47   : > { %503 = vadd.xlane.f32.xlu1 %v474_v5 }
  0x48   : > { %p2766_p1 = pnand %p2765_p13, %p2759_p12 }
  0x4a   : > { %485 = vadd.xlane.f32.xlu0 %v465_v6 }
  0x4b   : > { %487 = vadd.xlane.f32.xlu1 %v466_v7 }
  0x4e   : > { %505 = vadd.xlane.f32.xlu0 %v475_v8 }
  0x4f   : > { %507 = vadd.xlane.f32.xlu1 %v476_v9 }
  0x52   : > { %489 = vadd.xlane.f32.xlu0 %v3027_v10 }
  0x53   : > { %491 = vadd.xlane.f32.xlu1 %v3030_v11 }
  0x56   : > { %509 = vadd.xlane.f32.xlu0 %v3033_v12 }
  0x57   : > { %511 = vadd.xlane.f32.xlu1 %v3036_v13 }
  0x5a   : > { %493 = vadd.xlane.f32.xlu0 %v3043_v14 }
  0x5b   : > { %495 = vadd.xlane.f32.xlu1 %v3046_v15 }
  0xcb   : > { %v498_v16 = vpop.xlane.xlu0 %497 }
  0xcc   : > { %v482_v17 = vpop.xlane.xlu1 %481  ;;  %v522_v18 = vmul.f32 0.0078125, %v498_v16 }
  0xcd   : > { %v514_v19 = vmul.f32 0.0078125, %v482_v17 }
  0xce   : > { %v3050_v20 = vsub.f32 %v471_v0, %v522_v18  ;;  %v4155_v18 = vmov 0  }
  0xcf   : > { %v3052_v21 = vsub.f32 %v463_v1, %v514_v19  ;;  %v500_v22 = vpop.xlane.xlu0 %499  ;;  %919 = vmatprep.mubr.bf16.mxu0 %v4155_v18  ;;  %2537 = vset.pattern.permute.xlu1 %v4155_v18  ;;  %v729_v19 = vld [vmem:[%s4142_s6 + $0x18] sm:$0xff] }
  0xd0   : > { %v484_v23 = vpop.xlane.xlu1 %483  ;;  %v523_v24 = vmul.f32 0.0078125, %v500_v22  ;;  %v554_v25 = vmul.f32 %v3050_v20, %v3050_v20  ;;  %2536 = vset.pattern.permute.xlu0 %v4155_v18  ;;  %1416 = vmatprep.mubr.bf16.mxu1 %v4155_v18  ;;  %v730_v22 = vld [vmem:[%s4142_s6 + $0x20] sm:$0xff] }
  0xd1   : > { %v515_v26 = vmul.f32 0.0078125, %v484_v23  ;;  %v546_v29 = vmul.f32 %v3052_v21, %v3052_v21  ;;  %v731_v23 = vld [vmem:[%s4142_s6 + $0x28] sm:$0xff] }
  0xd2   : > { %v3056_v27 = vsub.f32 %v472_v2, %v523_v24  ;;  %578 = vadd.xlane.f32.xlu0 %v554_v25  ;;  %v726_v24 = vld [vmem:[%s4142_s6] sm:$0xff]  ;;  %v735_v25 = vld [vmem:[%s4142_s6 + $0x48] sm:$0xff] }
  0xd3   : > { %v3058_v28 = vsub.f32 %v464_v3, %v515_v26  ;;  %v502_v30 = vpop.xlane.xlu0 %501  ;;  %v732_v26 = vld [vmem:[%s4142_s6 + $0x30] sm:$0xff] }
  0xd4   : > { %v504_v31 = vpop.xlane.xlu1 %503  ;;  %v524_v32 = vmul.f32 0.0078125, %v502_v30  ;;  %v555_v33 = vmul.f32 %v3056_v27, %v3056_v27  ;;  %v733_v30 = vld [vmem:[%s4142_s6 + $0x38] sm:$0xff] }
  0xd5   : > { %v525_v34 = vmul.f32 0.0078125, %v504_v31  ;;  %v547_v37 = vmul.f32 %v3058_v28, %v3058_v28  ;;  %v739_v31 = vld [vmem:[%s4142_s6 + $0x68] sm:$0xff] }
  0xd6   : > { %v3064_v35 = vsub.f32 %v473_v4, %v524_v32  ;;  %580 = vadd.xlane.f32.xlu1 %v555_v33  ;;  %562 = vadd.xlane.f32.xlu0 %v546_v29  ;;  %v737_v29 = vld [vmem:[%s4142_s6 + $0x58] sm:$0xff] }
  0xd7   : > { %v3066_v36 = vsub.f32 %v474_v5, %v525_v34  ;;  %v486_v38 = vpop.xlane.xlu0 %485  ;;  %v734_v34 = vld [vmem:[%s4142_s6 + $0x40] sm:$0xff] }
  0xd8   : > { %v488_v39 = vpop.xlane.xlu1 %487  ;;  %v516_v40 = vmul.f32 0.0078125, %v486_v38  ;;  %v556_v41 = vmul.f32 %v3064_v35, %v3064_v35  ;;  %v741_v38 = vld [vmem:[%s4142_s6 + $0x78] sm:$0xff] }
  0xd9   : > { %v517_v42 = vmul.f32 0.0078125, %v488_v39  ;;  %v557_v45 = vmul.f32 %v3066_v36, %v3066_v36 }
  0xda   : > { %v3072_v43 = vsub.f32 %v465_v6, %v516_v40  ;;  %582 = vadd.xlane.f32.xlu0 %v556_v41  ;;  %564 = vadd.xlane.f32.xlu1 %v547_v37 }
  0xdb   : > { %v3074_v44 = vsub.f32 %v466_v7, %v517_v42  ;;  %v506_v46 = vpop.xlane.xlu0 %505 }
  0xdc   : > { %v508_v47 = vpop.xlane.xlu1 %507  ;;  %v526_v48 = vmul.f32 0.0078125, %v506_v46  ;;  %v548_v49 = vmul.f32 %v3072_v43, %v3072_v43 }
  0xdd   : > { %v527_v50 = vmul.f32 0.0078125, %v508_v47  ;;  %v549_v53 = vmul.f32 %v3074_v44, %v3074_v44 }
  0xde   : > { %v3080_v51 = vsub.f32 %v475_v8, %v526_v48  ;;  %566 = vadd.xlane.f32.xlu0 %v548_v49  ;;  %584 = vadd.xlane.f32.xlu1 %v557_v45  ;;  %v736_v45 = vld [vmem:[%s4142_s6 + $0x50] sm:$0xff]  ;;  %v1313_v48 = vld [vmem:[%s4144_s8 + $0x8] sm:$0xff] }
  0xdf   : > { %v3082_v52 = vsub.f32 %v476_v9, %v527_v50  ;;  %v490_v54 = vpop.xlane.xlu0 %489 }
  0xe0   : > { %v492_v55 = vpop.xlane.xlu1 %491  ;;  %v518_v56 = vmul.f32 0.0078125, %v490_v54  ;;  %v558_v57 = vmul.f32 %v3080_v51, %v3080_v51 }
  0xe1   : > { %v519_v58 = vmul.f32 0.0078125, %v492_v55  ;;  %v559_v61 = vmul.f32 %v3082_v52, %v3082_v52  ;;  %v738_v55 = vld [vmem:[%s4142_s6 + $0x60] sm:$0xff] }
  0xe2   : > { %v3089_v59 = vsub.f32 %v3027_v10, %v518_v56  ;;  %586 = vadd.xlane.f32.xlu0 %v558_v57  ;;  %568 = vadd.xlane.f32.xlu1 %v549_v53 }
  0xe3   : > { %v3092_v60 = vsub.f32 %v3030_v11, %v519_v58  ;;  %v510_v62 = vpop.xlane.xlu0 %509  ;;  %v1315_v58 = vld [vmem:[%s4144_s8 + $0x18] sm:$0xff] }
  0xe4   : > { %v512_v63 = vpop.xlane.xlu1 %511  ;;  %v528_v0 = vmul.f32 0.0078125, %v510_v62  ;;  %v550_v1 = vmul.f32 %v3089_v59, %v3089_v59 }
  0xe5   : > { %v529_v2 = vmul.f32 0.0078125, %v512_v63  ;;  %v551_v5 = vmul.f32 %v3092_v60, %v3092_v60 }
  0xe6   : > { %v3099_v3 = vsub.f32 %v3033_v12, %v528_v0  ;;  %570 = vadd.xlane.f32.xlu0 %v550_v1  ;;  %588 = vadd.xlane.f32.xlu1 %v559_v61  ;;  %v740_v1 = vld [vmem:[%s4142_s6 + $0x70] sm:$0xff] }
  0xe7   : > { %v3102_v4 = vsub.f32 %v3036_v13, %v529_v2  ;;  %v494_v6 = vpop.xlane.xlu0 %493 }
  0xe8   : > { %v496_v7 = vpop.xlane.xlu1 %495  ;;  %v520_v8 = vmul.f32 0.0078125, %v494_v6  ;;  %v560_v9 = vmul.f32 %v3099_v3, %v3099_v3 }
  0xe9   : > { %v521_v10 = vmul.f32 0.0078125, %v496_v7  ;;  %v561_v13 = vmul.f32 %v3102_v4, %v3102_v4  ;;  %v1317_v7 = vld [vmem:[%s4144_s8 + $0x28] sm:$0xff] }
  0xea   : > { %v3109_v11 = vsub.f32 %v3043_v14, %v520_v8  ;;  %590 = vadd.xlane.f32.xlu0 %v560_v9  ;;  %572 = vadd.xlane.f32.xlu1 %v551_v5  ;;  %v727_v14 = vld [vmem:[%s4142_s6 + $0x8] sm:$0xff] }
  0xeb   : > { %v3112_v12 = vsub.f32 %v3046_v15, %v521_v10  ;;  %v728_v15 = vld [vmem:[%s4142_s6 + $0x10] sm:$0xff] }
  0xec   : > { %v552_v16 = vmul.f32 %v3109_v11, %v3109_v11 }
  0xed   : > { %v553_v17 = vmul.f32 %v3112_v12, %v3112_v12 }
  0xee   : > { %574 = vadd.xlane.f32.xlu0 %v552_v16  ;;  %592 = vadd.xlane.f32.xlu1 %v561_v13 }
  0xf2   : > { %576 = vadd.xlane.f32.xlu1 %v553_v17  ;;  %v3185_v17 = vld [vmem:[%s4137_s1] ss:$0 sm:$0xff] }
 0x103   : > { %749 = vperm.xlu1 %2537, %v727_v14   ;;  %v1312_v14 = vld [vmem:[%s4144_s8] sm:$0xff] }
 0x104   : > { %744 = vperm.xlu0 %2536, %v726_v24  }
 0x107   : > { %754 = vperm.xlu1 %2537, %v728_v15  }
 0x108   : > { %789 = vperm.xlu0 %2536, %v735_v25  }
 0x10b   : > { %759 = vperm.xlu1 %2537, %v729_v19  }
 0x10c   : > { %799 = vperm.xlu0 %2536, %v737_v29  }
 0x10f   : > { %764 = vperm.xlu1 %2537, %v730_v22  }
 0x110   : > { %809 = vperm.xlu0 %2536, %v739_v31   ;;  %v3197_v31 = vld [vmem:[%s4138_s2] ss:$0 sm:$0xff] }
 0x113   : > { %769 = vperm.xlu1 %2537, %v731_v23  }
 0x114   : > { %819 = vperm.xlu0 %2536, %v741_v38  }
 0x117   : > { %774 = vperm.xlu1 %2537, %v732_v26  }
 0x118   : > { %1327 = vperm.xlu0 %2536, %v1313_v48  }
 0x11b   : > { %779 = vperm.xlu1 %2537, %v733_v30  }
 0x11c   : > { %1337 = vperm.xlu0 %2536, %v1315_v58  }
 0x11f   : > { %784 = vperm.xlu1 %2537, %v734_v34  }
 0x120   : > { %1347 = vperm.xlu0 %2536, %v1317_v7  }
 0x123   : > { %794 = vperm.xlu1 %2537, %v736_v45  }
 0x127   : > { %804 = vperm.xlu1 %2537, %v738_v55  }
 0x12b   : > { %814 = vperm.xlu1 %2537, %v740_v1  }
 0x12f   : > { %1322 = vperm.xlu1 %2537, %v1312_v14  }
 0x15f   : > { %v579_v32 = vpop.xlane.xlu0 %578 }
 0x160   : > { %v602_v33 = vmul.f32 0.0078125, %v579_v32 }
 0x162   : > { %v618_v37 = vadd.f32 1e-05, %v602_v33  ;;  %v1314_v33 = vld [vmem:[%s4144_s8 + $0x10] sm:$0xff] }
 0x163   : > { %v563_v39 = vpop.xlane.xlu0 %562  ;;  %v581_v40 = vpop.xlane.xlu1 %580  ;;  %1332 = vperm.xlu1 %2537, %v1314_v33  }
 0x164   : > { %2566 = vrsqrt.f32 %v618_v37  ;;  %v594_v41 = vmul.f32 0.0078125, %v563_v39  ;;  %v603_v42 = vmul.f32 0.0078125, %v581_v40 }
 0x166   : > { %v610_v46 = vadd.f32 1e-05, %v594_v41  ;;  %v619_v47 = vadd.f32 1e-05, %v603_v42 }
 0x167   : > { %v583_v49 = vpop.xlane.xlu0 %582  ;;  %v565_v50 = vpop.xlane.xlu1 %564 }
 0x168   : > { %2568 = vrsqrt.f32 %v610_v46  ;;  %v604_v53 = vmul.f32 0.0078125, %v583_v49  ;;  %v595_v54 = vmul.f32 0.0078125, %v565_v50  ;;  %v1316_v49 = vld [vmem:[%s4144_s8 + $0x20] sm:$0xff] }
 0x169   : > { %2570 = vrsqrt.f32 %v619_v47  ;;  %1342 = vperm.xlu1 %2537, %v1316_v49  }
 0x16a   : > { %v620_v56 = vadd.f32 1e-05, %v604_v53  ;;  %v611_v57 = vadd.f32 1e-05, %v595_v54 }
 0x16b   : > { %v567_v61 = vpop.xlane.xlu0 %566  ;;  %v585_v62 = vpop.xlane.xlu1 %584 }
 0x16c   : > { %2572 = vrsqrt.f32 %v620_v56  ;;  %v596_v63 = vmul.f32 0.0078125, %v567_v61  ;;  %v605_v0 = vmul.f32 0.0078125, %v585_v62 }
 0x16d   : > { %2574 = vrsqrt.f32 %v611_v57 }
 0x16e   : > { %v2567_v2 = vpop.eup %2566  ;;  %v612_v5 = vadd.f32 1e-05, %v596_v63  ;;  %v621_v6 = vadd.f32 1e-05, %v605_v0 }
 0x16f   : > { %v587_v8 = vpop.xlane.xlu0 %586  ;;  %v569_v9 = vpop.xlane.xlu1 %568  ;;  %v650_v10 = vmul.f32 %v2567_v2, %v3050_v20  ;;  %v1319_v20 = vld [vmem:[%s4144_s8 + $0x38] sm:$0xff] }
 0x170   : > { %2576 = vrsqrt.f32 %v612_v5  ;;  %v606_v13 = vmul.f32 0.0078125, %v587_v8  ;;  %v597_v16 = vmul.f32 0.0078125, %v569_v9  ;;  %1357 = vperm.xlu0 %2536, %v1319_v20   ;;  %v1318_v5 = vld [vmem:[%s4144_s8 + $0x30] sm:$0xff] }
 0x171   : > { %2578 = vrsqrt.f32 %v621_v6  ;;  %v672_v26 = vmul.f32 %v3185_v17, %v650_v10  ;;  %1352 = vperm.xlu1 %2537, %v1318_v5   ;;  %v2543_v5 = vld [vmem:[%s4141_s5 + $0x28] sm:$0xff]  }
 0x172   : > { %v2569_v15 = vpop.eup %2568  ;;  %v622_v19 = vadd.f32 1e-05, %v606_v13  ;;  %v613_v22 = vadd.f32 1e-05, %v597_v16 }
 0x173   : > { %v2571_v23 = vpop.eup %2570  ;;  %v571_v24 = vpop.xlane.xlu0 %570  ;;  %v642_v34 = vmul.f32 %v2569_v15, %v3052_v21  ;;  %v3206_v46 = vadd.f32 %v3197_v31, %v672_v26 }
 0x174   : > { %v589_v25 = vpop.xlane.xlu1 %588  ;;  %2580 = vrsqrt.f32 %v622_v19  ;;  %v598_v29 = vmul.f32 0.0078125, %v571_v24  ;;  %v651_v32 = vmul.f32 %v2571_v23, %v3056_v27 }
 0x175   : > { %v607_v30 = vmul.f32 0.0078125, %v589_v25  ;;  %2582 = vrsqrt.f32 %v613_v22  ;;  %v664_v53 = vmul.f32 %v3185_v17, %v642_v34 }
 0x176   : > { %v2573_v37 = vpop.eup %2572  ;;  %v614_v38 = vadd.f32 1e-05, %v598_v29  ;;  %v673_v40 = vmul.f32 %v3185_v17, %v651_v32 }
 0x177   : > { %v623_v39 = vadd.f32 1e-05, %v607_v30  ;;  %v2575_v41 = vpop.eup %2574  ;;  %v591_v42 = vpop.xlane.xlu0 %590  ;;  %v652_v27 = vmul.f32 %v2573_v37, %v3064_v35  ;;  %v3227_v6 = vadd.f32 %v3197_v31, %v664_v53 }
 0x178   : > { %v573_v45 = vpop.xlane.xlu1 %572  ;;  %2584 = vrsqrt.f32 %v614_v38  ;;  %v608_v47 = vmul.f32 0.0078125, %v591_v42  ;;  %v3210_v21 = vadd.f32 %v3197_v31, %v673_v40  ;;  %v643_v50 = vmul.f32 %v2575_v41, %v3058_v28 }
 0x179   : > { %v599_v48 = vmul.f32 0.0078125, %v573_v45  ;;  %2586 = vrsqrt.f32 %v623_v39  ;;  %v674_v63 = vmul.f32 %v3185_v17, %v652_v27 }
 0x17a   : > { %v2577_v54 = vpop.eup %2576  ;;  %v624_v55 = vadd.f32 1e-05, %v608_v47  ;;  %v719_v35 = vpack.c.bf16 %v3210_v21, %v3206_v46  ;;  %v665_v62 = vmul.f32 %v3185_v17, %v643_v50 }
 0x17b   : > { %v615_v56 = vadd.f32 1e-05, %v599_v48  ;;  %v2579_v57 = vpop.eup %2578  ;;  %v575_v58 = vpop.xlane.xlu0 %574  ;;  %v644_v0 = vmul.f32 %v2577_v54, %v3072_v43  ;;  %v3236_v14 = vadd.f32 %v3197_v31, %v674_v63 }
 0x17c   : > { %v593_v61 = vpop.xlane.xlu1 %592  ;;  %2588 = vrsqrt.f32 %v624_v55  ;;  %v600_v28 = vmul.f32 0.0078125, %v575_v58  ;;  %887 = vmatprep.subr.bf16.mxu0 %v719_v35  ;;  %v653_v2 = vmul.f32 %v2579_v57, %v3066_v36  ;;  %v3230_v7 = vadd.f32 %v3197_v31, %v665_v62 }
 0x17d   : > { %v609_v1 = vmul.f32 0.0078125, %v593_v61  ;;  %2590 = vrsqrt.f32 %v615_v56  ;;  %4172 = vst [vmem:[#allocation12_spill] sm:$0xff] %v3236_v14  ;;  %v666_v15 = vmul.f32 %v3185_v17, %v644_v0 }
 0x17e   : > { %v2581_v8 = vpop.eup %2580  ;;  %v616_v43 = vadd.f32 1e-05, %v600_v28  ;;  %v675_v10 = vmul.f32 %v3185_v17, %v653_v2  ;;  %v718_v36 = vpack.c.bf16 %v3230_v7, %v3227_v6  ;;  %v2538_v28 = vld [vmem:[%s4141_s5] sm:$0xff]  }
 0x17f   : > { %v625_v9 = vadd.f32 1e-05, %v609_v1  ;;  %v2583_v13 = vpop.eup %2582  ;;  %v654_v19 = vmul.f32 %v2581_v8, %v3080_v51  ;;  %v3248_v51 = vadd.f32 %v3197_v31, %v666_v15  ;;  %v2541_v1 = vld [vmem:[%s4141_s5 + $0x18] sm:$0xff]   ;;  %v2542_v2 = vld [vmem:[%s4141_s5 + $0x20] sm:$0xff]   ;;  %v2544_v8 = vld [vmem:[%s4141_s5 + $0x30] sm:$0xff]  }
 0x180   : > { %v577_v16 = vpop.xlane.xlu1 %576  ;;  %2592 = vrsqrt.f32 %v616_v43  ;;  %v3241_v20 = vadd.f32 %v3197_v31, %v675_v10  ;;  %v645_v23 = vmul.f32 %v2583_v13, %v3074_v44  ;;  %888 = vmatpush1.bf16.msra.mxu0 %v718_v36  ;;  %v2545_v43 = vld [vmem:[%s4141_s5 + $0x38] sm:$0xff]  }
 0x181   : > { %v601_v22 = vmul.f32 0.0078125, %v577_v16  ;;  %2594 = vrsqrt.f32 %v625_v9  ;;  %v676_v32 = vmul.f32 %v3185_v17, %v654_v19 }
 0x182   : > { %4173 = vst [vmem:[#allocation13_spill] sm:$0xff] %v3241_v20  ;;  %v2585_v24 = vpop.eup %2584  ;;  %v721_v26 = vpack.c.bf16 %v3241_v20, %v3236_v14  ;;  %v667_v29 = vmul.f32 %v3185_v17, %v645_v23 }
 0x183   : > { %v617_v25 = vadd.f32 1e-05, %v601_v22  ;;  %v2587_v30 = vpop.eup %2586  ;;  %v646_v34 = vmul.f32 %v2585_v24, %v3089_v59  ;;  %v3260_v41 = vadd.f32 %v3197_v31, %v676_v32  ;;  %v745_v13 = vpop.permute.xlu0 %744 }
 0x184   : > { %889 = vmatprep.subr.bf16.mxu0 %v721_v26  ;;  %v3252_v33 = vadd.f32 %v3197_v31, %v667_v29  ;;  %v655_v44 = vmul.f32 %v2587_v30, %v3082_v52  ;;  %v750_v9 = vpop.permute.xlu1 %749 }
 0x185   : > { %2596 = vrsqrt.f32 %v617_v25  ;;  %4174 = vst [vmem:[#allocation14_spill] sm:$0xff] %v3260_v41  ;;  %v668_v52 = vmul.f32 %v3185_v17, %v646_v34 }
 0x186   : > { %v2589_v37 = vpop.eup %2588  ;;  %v720_v38 = vpack.c.bf16 %v3252_v33, %v3248_v51  ;;  %v677_v39 = vmul.f32 %v3185_v17, %v655_v44 }
 0x187   : > { %v2591_v40 = vpop.eup %2590  ;;  %v656_v59 = vmul.f32 %v2589_v37, %v3099_v3  ;;  %v3273_v53 = vadd.f32 %v3197_v31, %v668_v52 }
 0x188   : > { %890 = vmatpush1.bf16.msra.mxu0 %v720_v38  ;;  %v3263_v42 = vadd.f32 %v3197_v31, %v677_v39  ;;  %v647_v45 = vmul.f32 %v2591_v40, %v3092_v60  ;;  %v755_v10 = vpop.permute.xlu1 %754 }
 0x189   : > { %v678_v3 = vmul.f32 %v3185_v17, %v656_v59 }
 0x18a   : > { %4175 = vst [vmem:[#allocation15_spill] sm:$0xff] %v3263_v42  ;;  %v2593_v27 = vpop.eup %2592  ;;  %v723_v47 = vpack.c.bf16 %v3263_v42, %v3260_v41  ;;  %v669_v48 = vmul.f32 %v3185_v17, %v647_v45 }
 0x18b   : > { %v2595_v49 = vpop.eup %2594  ;;  %v648_v50 = vmul.f32 %v2593_v27, %v3109_v11  ;;  %v3286_v58 = vadd.f32 %v3197_v31, %v678_v3 }
 0x18c   : > { %891 = vmatprep.subr.bf16.mxu0 %v723_v47  ;;  %v3276_v54 = vadd.f32 %v3197_v31, %v669_v48  ;;  %v657_v60 = vmul.f32 %v2595_v49, %v3102_v4  ;;  %v760_v19 = vpop.permute.xlu1 %759 }
 0x18d   : > { %v670_v11 = vmul.f32 %v3185_v17, %v648_v50  ;;  %4176 = vst [vmem:[#allocation16_spill] sm:$0xff] %v3286_v58 }
 0x18e   : > { %v722_v56 = vpack.c.bf16 %v3276_v54, %v3273_v53  ;;  %v679_v35 = vmul.f32 %v3185_v17, %v657_v60 }
 0x18f   : > { %v2597_v55 = vpop.eup %2596  ;;  %v3295_v63 = vadd.f32 %v3197_v31, %v670_v11 }
 0x190   : > { %v649_v57 = vmul.f32 %v2597_v55, %v3112_v12  ;;  %892 = vmatpush1.bf16.msra.mxu0 %v722_v56  ;;  %v3289_v61 = vadd.f32 %v3197_v31, %v679_v35  ;;  %v765_v40 = vpop.permute.xlu1 %764 }
 0x192   : > { %4177 = vst [vmem:[#allocation17_spill] sm:$0xff] %v3289_v61  ;;  %v671_v4 = vmul.f32 %v3185_v17, %v649_v57  ;;  %v725_v62 = vpack.c.bf16 %v3289_v61, %v3286_v58  ;;  %v2539_v17 = vld [vmem:[%s4141_s5 + $0x8] sm:$0xff]  }
 0x194   : > { %v3298_v0 = vadd.f32 %v3197_v31, %v671_v4  ;;  %893 = vmatprep.subr.bf16.mxu0 %v725_v62  ;;  %v2540_v31 = vld [vmem:[%s4141_s5 + $0x10] sm:$0xff]  }
 0x196   : > { %v724_v12 = vpack.c.bf16 %v3298_v0, %v3295_v63 }
 0x198   : > { %894 = vmatpush1.bf16.msra.mxu0 %v724_v12 }
 0x19b   : > { %2331 = vmatmul.mubr.msk.bf16.vlgmr.msra.gmra.mrb[0].mxu0 %vm862_vm0, %v2538_v28 }
 0x19c   : > { %929 = vmatprep.mubr.bf16.mxu0 %v4155_v18 }
 0x1a3   : > { %2332 = vmatmul.mubr.msk.bf16.gmra.mrb[4].mxu0 %vm862_vm0, %v2539_v17 }
 0x1a4   : > { %939 = vmatprep.mubr.bf16.mxu0 %v4155_v18 }
 0x1ab   : > { %2333 = vmatmul.mubr.msk.bf16.gmra.mrb[8].mxu0 %vm862_vm0, %v2540_v31 }
 0x1ac   : > { %949 = vmatprep.mubr.bf16.mxu0 %v4155_v18 }
 0x1b3   : > { %2334 = vmatmul.mubr.msk.bf16.gmra.mrb[12].mxu0 %vm862_vm0, %v2541_v1 }
 0x1b4   : > { %959 = vmatprep.mubr.bf16.mxu0 %v4155_v18 }
 0x1bb   : > { %2335 = vmatmul.mubr.msk.bf16.gmra.mrb[16].mxu0 %vm862_vm0, %v2542_v2 }
 0x1bc   : > { %969 = vmatprep.mubr.bf16.mxu0 %v4155_v18 }
 0x1c3   : > { %2336 = vmatmul.mubr.msk.bf16.gmra.mrb[20].mxu0 %vm862_vm0, %v2543_v5  ;;  %v770_v5 = vpop.permute.xlu1 %769 }
 0x1c4   : > { %979 = vmatprep.mubr.bf16.mxu0 %v4155_v18 }
 0x1cb   : > { %2337 = vmatmul.mubr.msk.bf16.gmra.mrb[24].mxu0 %vm862_vm0, %v2544_v8 }
 0x1cc   : > { %989 = vmatprep.mubr.bf16.mxu0 %v4155_v18 }
 0x1d3   : > { %2338 = vmatmul.mubr.msk.bf16.gmra.mrb[28].mxu0 %vm862_vm0, %v2545_v43 }
 0x26e   : > { %v921_v36 = vpop.f32.mrb[0].mxu0 }
 0x26f   : > { %v3341_v16 = vadd.f32 %v921_v36, %v745_v13  ;;  %v923_v15 = vpop.f32.mrb[1].mxu0 }
 0x270   : > { %v3343_v22 = vadd.f32 %v923_v15, %v745_v13  ;;  %v925_v23 = vpop.f32.mrb[2].mxu0 }
 0x271   : > { %v1000_v24 = vmul.f32 %v3341_v16, %v3341_v16  ;;  %v3347_v25 = vadd.f32 %v925_v23, %v750_v9  ;;  %v927_v26 = vpop.f32.mrb[3].mxu0 }
 0x272   : > { %v1001_v29 = vmul.f32 %v3343_v22, %v3343_v22  ;;  %v3351_v30 = vadd.f32 %v927_v26, %v750_v9 }
 0x273   : > { %v1032_v32 = vmul.f32 %v1000_v24, %v3341_v16  ;;  %v1002_v44 = vmul.f32 %v3347_v25, %v3347_v25 }
 0x274   : > { %v1033_v34 = vmul.f32 %v1001_v29, %v3343_v22  ;;  %v1003_v37 = vmul.f32 %v3351_v30, %v3351_v30 }
 0x275   : > { %v1064_v38 = vmul.f32 0.044715, %v1032_v32  ;;  %v1034_v39 = vmul.f32 %v1002_v44, %v3347_v25 }
 0x276   : > { %v1065_v45 = vmul.f32 0.044715, %v1033_v34  ;;  %v1035_v52 = vmul.f32 %v1003_v37, %v3351_v30  ;;  %v931_v59 = vpop.f32.mrb[4].mxu0 }
 0x277   : > { %v1096_v27 = vadd.f32 %v1064_v38, %v3341_v16  ;;  %v1066_v47 = vmul.f32 0.044715, %v1034_v39  ;;  %v3362_v48 = vadd.f32 %v931_v59, %v755_v10  ;;  %v933_v49 = vpop.f32.mrb[5].mxu0 }
 0x278   : > { %v1067_v50 = vmul.f32 0.044715, %v1035_v52  ;;  %v3364_v60 = vadd.f32 %v933_v49, %v755_v10  ;;  %v935_v3 = vpop.f32.mrb[6].mxu0  ;;  %v1097_v55 = vadd.f32 %v1065_v45, %v3343_v22 }
 0x279   : > { %v1128_v56 = vmul.f32 0.7978846, %v1096_v27  ;;  %v1098_v35 = vadd.f32 %v1066_v47, %v3347_v25  ;;  %v1004_v57 = vmul.f32 %v3362_v48, %v3362_v48  ;;  %v3370_v11 = vadd.f32 %v935_v3, %v760_v19  ;;  %v937_v4 = vpop.f32.mrb[7].mxu0  ;;  %v775_v27 = vpop.permute.xlu1 %774 }
 0x27a   : > { %v1005_v62 = vmul.f32 %v3364_v60, %v3364_v60  ;;  %v3374_v12 = vadd.f32 %v937_v4, %v760_v19  ;;  %v1099_v28 = vadd.f32 %v1067_v50, %v3351_v30  ;;  %v1129_v17 = vmul.f32 0.7978846, %v1097_v55 }
 0x27b   : > { %v1130_v31 = vmul.f32 0.7978846, %v1098_v35  ;;  %v1036_v1 = vmul.f32 %v1004_v57, %v3362_v48  ;;  %v1006_v2 = vmul.f32 %v3370_v11, %v3370_v11  ;;  %2598 = vtanh.f32 %v1128_v56 }
 0x27c   : > { %v1037_v8 = vmul.f32 %v1005_v62, %v3364_v60  ;;  %v1007_v43 = vmul.f32 %v3374_v12, %v3374_v12  ;;  %v1131_v9 = vmul.f32 0.7978846, %v1099_v28  ;;  %2600 = vtanh.f32 %v1129_v17 }
 0x27d   : > { %v1068_v10 = vmul.f32 0.044715, %v1036_v1  ;;  %v1038_v13 = vmul.f32 %v1006_v2, %v3370_v11  ;;  %2602 = vtanh.f32 %v1130_v31 }
 0x27e   : > { %v1069_v36 = vmul.f32 0.044715, %v1037_v8  ;;  %v1039_v15 = vmul.f32 %v1007_v43, %v3374_v12  ;;  %v941_v19 = vpop.f32.mrb[8].mxu0  ;;  %2604 = vtanh.f32 %v1131_v9 }
 0x27f   : > { %v1100_v23 = vadd.f32 %v1068_v10, %v3362_v48  ;;  %v1070_v24 = vmul.f32 0.044715, %v1038_v13  ;;  %v3386_v26 = vadd.f32 %v941_v19, %v765_v40  ;;  %v943_v29 = vpop.f32.mrb[9].mxu0  ;;  %v780_v19 = vpop.permute.xlu1 %779 }
 0x280   : > { %v1101_v32 = vadd.f32 %v1069_v36, %v3364_v60  ;;  %v1071_v44 = vmul.f32 0.044715, %v1039_v15  ;;  %v3389_v34 = vadd.f32 %v943_v29, %v765_v40  ;;  %v945_v37 = vpop.f32.mrb[10].mxu0 }
 0x281   : > { %v1132_v38 = vmul.f32 0.7978846, %v1100_v23  ;;  %v1102_v39 = vadd.f32 %v1070_v24, %v3370_v11  ;;  %v1008_v45 = vmul.f32 %v3386_v26, %v3386_v26  ;;  %v3394_v52 = vadd.f32 %v945_v37, %v770_v5  ;;  %v947_v59 = vpop.f32.mrb[11].mxu0 }
 0x282   : > { %v1133_v47 = vmul.f32 0.7978846, %v1101_v32  ;;  %v1103_v49 = vadd.f32 %v1071_v44, %v3374_v12  ;;  %v1009_v50 = vmul.f32 %v3389_v34, %v3389_v34  ;;  %v3399_v40 = vadd.f32 %v947_v59, %v770_v5 }
 0x283   : > { %2606 = vtanh.f32 %v1132_v38  ;;  %v1134_v3 = vmul.f32 0.7978846, %v1102_v39  ;;  %v1040_v55 = vmul.f32 %v1008_v45, %v3386_v26  ;;  %v1010_v56 = vmul.f32 %v3394_v52, %v3394_v52 }
 0x284   : > { %2608 = vtanh.f32 %v1133_v47  ;;  %v1135_v35 = vmul.f32 0.7978846, %v1103_v49  ;;  %v1041_v57 = vmul.f32 %v1009_v50, %v3389_v34  ;;  %v1011_v4 = vmul.f32 %v3399_v40, %v3399_v40 }
 0x285   : > { %v2599_v62 = vpop.eup %2598  ;;  %2610 = vtanh.f32 %v1134_v3  ;;  %v1072_v28 = vmul.f32 0.044715, %v1040_v55  ;;  %v1042_v17 = vmul.f32 %v1010_v56, %v3394_v52 }
 0x286   : > { %v2601_v31 = vpop.eup %2600  ;;  %2612 = vtanh.f32 %v1135_v35  ;;  %v1073_v1 = vmul.f32 0.044715, %v1041_v57  ;;  %v1043_v2 = vmul.f32 %v1011_v4, %v3399_v40  ;;  %v951_v5 = vpop.f32.mrb[12].mxu0  ;;  %v3409_v8 = vadd.f32 1.0, %v2599_v62 }
 0x287   : > { %v2603_v43 = vpop.eup %2602  ;;  %v1104_v9 = vadd.f32 %v1072_v28, %v3386_v26  ;;  %v1074_v10 = vmul.f32 0.044715, %v1042_v17  ;;  %v3412_v13 = vadd.f32 %v951_v5, %v775_v27  ;;  %v953_v36 = vpop.f32.mrb[13].mxu0  ;;  %v1193_v15 = vadd.f32 1.0, %v2601_v31 }
 0x288   : > { %v1105_v23 = vadd.f32 %v1073_v1, %v3389_v34  ;;  %v1075_v24 = vmul.f32 0.044715, %v1043_v2  ;;  %v3415_v29 = vadd.f32 %v953_v36, %v775_v27  ;;  %v955_v32 = vpop.f32.mrb[14].mxu0  ;;  %v3417_v44 = vadd.f32 1.0, %v2603_v43  ;;  %v2605_v47 = vpop.eup %2604 }
 0x289   : > { %v1136_v37 = vmul.f32 0.7978846, %v1104_v9  ;;  %v1106_v38 = vadd.f32 %v1074_v10, %v3394_v52  ;;  %v1012_v39 = vmul.f32 %v3412_v13, %v3412_v13  ;;  %v3422_v45 = vadd.f32 %v955_v32, %v780_v19  ;;  %v957_v59 = vpop.f32.mrb[15].mxu0  ;;  %v785_v5 = vpop.permute.xlu1 %784 }
 0x28a   : > { %v1137_v49 = vmul.f32 0.7978846, %v1105_v23  ;;  %v1107_v50 = vadd.f32 %v1075_v24, %v3399_v40  ;;  %v1013_v27 = vmul.f32 %v3415_v29, %v3415_v29  ;;  %v3427_v3 = vadd.f32 %v957_v59, %v780_v19  ;;  %v790_v59 = vpop.permute.xlu0 %789 }
 0x28b   : > { %2614 = vtanh.f32 %v1136_v37  ;;  %v1138_v55 = vmul.f32 0.7978846, %v1106_v38  ;;  %v1044_v56 = vmul.f32 %v1012_v39, %v3412_v13  ;;  %v1014_v35 = vmul.f32 %v3422_v45, %v3422_v45 }
 0x28c   : > { %2616 = vtanh.f32 %v1137_v49  ;;  %v1139_v57 = vmul.f32 0.7978846, %v1107_v50  ;;  %v1045_v4 = vmul.f32 %v1013_v27, %v3415_v29  ;;  %v1015_v62 = vmul.f32 %v3427_v3, %v3427_v3 }
 0x28d   : > { %v3435_v28 = vpop.eup %2606  ;;  %2618 = vtanh.f32 %v1138_v55  ;;  %v1076_v17 = vmul.f32 0.044715, %v1044_v56  ;;  %v1046_v31 = vmul.f32 %v1014_v35, %v3422_v45  ;;  %v1195_v1 = vadd.f32 1.0, %v2605_v47 }
 0x28e   : > { %v3438_v2 = vpop.eup %2608  ;;  %2620 = vtanh.f32 %v1139_v57  ;;  %v1077_v43 = vmul.f32 0.044715, %v1045_v4  ;;  %v1047_v9 = vmul.f32 %v1015_v62, %v3427_v3  ;;  %v961_v10 = vpop.f32.mrb[16].mxu0  ;;  %v1225_v36 = vmul.f32 0.5, %v1193_v15 }
 0x28f   : > { %v3441_v19 = vpop.eup %2610  ;;  %v1108_v23 = vadd.f32 %v1076_v17, %v3412_v13  ;;  %v1078_v24 = vmul.f32 0.044715, %v1046_v31  ;;  %v3444_v32 = vadd.f32 %v961_v10, %v785_v5  ;;  %v963_v37 = vpop.f32.mrb[17].mxu0  ;;  %v1227_v38 = vmul.f32 0.5, %v1195_v1 }
 0x290   : > { %v3446_v39 = vpop.eup %2612  ;;  %v1109_v47 = vadd.f32 %v1077_v43, %v3415_v29  ;;  %v1079_v49 = vmul.f32 0.044715, %v1047_v9  ;;  %v3449_v50 = vadd.f32 %v963_v37, %v785_v5  ;;  %v965_v27 = vpop.f32.mrb[18].mxu0  ;;  %v1257_v15 = vmul.f32 %v1225_v36, %v3343_v22 }
 0x291   : > { %v1140_v55 = vmul.f32 0.7978846, %v1108_v23  ;;  %v1110_v56 = vadd.f32 %v1078_v24, %v3422_v45  ;;  %v1016_v35 = vmul.f32 %v3444_v32, %v3444_v32  ;;  %v3455_v57 = vadd.f32 %v965_v27, %v790_v59  ;;  %v967_v4 = vpop.f32.mrb[19].mxu0 }
 0x292   : > { %v1141_v62 = vmul.f32 0.7978846, %v1109_v47  ;;  %v1111_v17 = vadd.f32 %v1079_v49, %v3427_v3  ;;  %v1017_v31 = vmul.f32 %v3449_v50, %v3449_v50  ;;  %v3460_v1 = vadd.f32 %v967_v4, %v790_v59  ;;  %v795_v4 = vpop.permute.xlu1 %794 }
 0x293   : > { %2622 = vtanh.f32 %v1140_v55  ;;  %v1142_v5 = vmul.f32 0.7978846, %v1110_v56  ;;  %v1048_v22 = vmul.f32 %v1016_v35, %v3444_v32  ;;  %v1018_v43 = vmul.f32 %v3455_v57, %v3455_v57 }
 0x294   : > { %2624 = vtanh.f32 %v1141_v62  ;;  %v1143_v9 = vmul.f32 0.7978846, %v1111_v17  ;;  %v1049_v10 = vmul.f32 %v1017_v31, %v3449_v50  ;;  %v1019_v36 = vmul.f32 %v3460_v1, %v3460_v1 }
 0x295   : > { %v3468_v23 = vpop.eup %2614  ;;  %2626 = vtanh.f32 %v1142_v5  ;;  %v1080_v24 = vmul.f32 0.044715, %v1048_v22  ;;  %v1050_v37 = vmul.f32 %v1018_v43, %v3455_v57  ;;  %v1259_v59 = vmul.f32 %v1227_v38, %v3351_v30 }
 0x296   : > { %v3472_v47 = vpop.eup %2616  ;;  %2628 = vtanh.f32 %v1143_v9  ;;  %v1081_v49 = vmul.f32 0.044715, %v1049_v10  ;;  %v1051_v27 = vmul.f32 %v1019_v36, %v3460_v1  ;;  %v1224_v55 = vmul.f32 0.5, %v3409_v8  ;;  %v971_v56 = vpop.f32.mrb[20].mxu0 }
 0x297   : > { %v3476_v35 = vpop.eup %2618  ;;  %v1112_v62 = vadd.f32 %v1080_v24, %v3444_v32  ;;  %v1082_v17 = vmul.f32 0.044715, %v1050_v37  ;;  %v1297_v31 = vpack.c.bf16 %v1259_v59, %v1257_v15  ;;  %v1226_v5 = vmul.f32 0.5, %v3417_v44  ;;  %v973_v22 = vpop.f32.mrb[21].mxu0 }
 0x298   : > { %v3480_v30 = vpop.eup %2620  ;;  %v1113_v38 = vadd.f32 %v1081_v49, %v3449_v50  ;;  %v1083_v43 = vmul.f32 0.044715, %v1051_v27  ;;  %v1256_v9 = vmul.f32 %v1224_v55, %v3341_v16  ;;  %v3484_v10 = vadd.f32 %v971_v56, %v795_v4  ;;  %v975_v8 = vpop.f32.mrb[22].mxu0 }
 0x299   : > { %v800_v36 = vpop.permute.xlu0 %799  ;;  %v1144_v18 = vmul.f32 0.7978846, %v1112_v62  ;;  %v1114_v61 = vadd.f32 %v1082_v17, %v3455_v57  ;;  %1384 = vmatprep.subr.bf16.mxu1 %v1297_v31  ;;  %v1258_v15 = vmul.f32 %v1226_v5, %v3347_v25  ;;  %v3488_v24 = vadd.f32 %v973_v22, %v795_v4  ;;  %v977_v44 = vpop.f32.mrb[23].mxu0 }
 0x29a   : > { %v1145_v37 = vmul.f32 0.7978846, %v1113_v38  ;;  %v1115_v59 = vadd.f32 %v1083_v43, %v3460_v1  ;;  %v1020_v49 = vmul.f32 %v3484_v10, %v3484_v10  ;;  %v3493_v16 = vadd.f32 %v975_v8, %v800_v36  ;;  %v805_v58 = vpop.permute.xlu1 %804 }
 0x29b   : > { %2630 = vtanh.f32 %v1144_v18  ;;  %v1146_v27 = vmul.f32 0.7978846, %v1114_v61  ;;  %v1296_v55 = vpack.c.bf16 %v1258_v15, %v1256_v9  ;;  %v1021_v56 = vmul.f32 %v3488_v24, %v3488_v24 }
 0x29c   : > { %2632 = vtanh.f32 %v1145_v37  ;;  %v1147_v62 = vmul.f32 0.7978846, %v1115_v59  ;;  %v1052_v25 = vmul.f32 %v1020_v49, %v3484_v10  ;;  %v1022_v4 = vmul.f32 %v3493_v16, %v3493_v16 }
 0x29d   : > { %v3500_v17 = vpop.eup %2622  ;;  %2634 = vtanh.f32 %v1146_v27  ;;  %1385 = vmatpush1.bf16.msra.mxu1 %v1296_v55  ;;  %v1053_v31 = vmul.f32 %v1021_v56, %v3488_v24  ;;  %v3503_v5 = vadd.f32 %v977_v44, %v800_v36  ;;  %v1197_v18 = vadd.f32 1.0, %v3438_v2 }
 0x29e   : > { %v3506_v61 = vpop.eup %2624  ;;  %2636 = vtanh.f32 %v1147_v62  ;;  %v1084_v22 = vmul.f32 0.044715, %v1052_v25  ;;  %v1054_v38 = vmul.f32 %v1022_v4, %v3493_v16  ;;  %v1199_v43 = vadd.f32 1.0, %v3446_v39  ;;  %v981_v9 = vpop.f32.mrb[24].mxu0 }
 0x29f   : > { %v3510_v8 = vpop.eup %2626  ;;  %v1085_v15 = vmul.f32 0.044715, %v1053_v31  ;;  %v1023_v37 = vmul.f32 %v3503_v5, %v3503_v5  ;;  %v1229_v59 = vmul.f32 0.5, %v1197_v18  ;;  %v1196_v36 = vadd.f32 1.0, %v3435_v28  ;;  %v983_v44 = vpop.f32.mrb[25].mxu0 }
 0x2a0   : > { %v3515_v2 = vpop.eup %2628  ;;  %v1116_v49 = vadd.f32 %v1084_v22, %v3484_v10  ;;  %v1086_v27 = vmul.f32 0.044715, %v1054_v38  ;;  %v1231_v55 = vmul.f32 0.5, %v1199_v43  ;;  %v1198_v56 = vadd.f32 1.0, %v3441_v19  ;;  %v985_v39 = vpop.f32.mrb[26].mxu0 }
 0x2a1   : > { %v1117_v62 = vadd.f32 %v1085_v15, %v3488_v24  ;;  %v1055_v25 = vmul.f32 %v1023_v37, %v3503_v5  ;;  %v1261_v4 = vmul.f32 %v1229_v59, %v3364_v60  ;;  %v1228_v31 = vmul.f32 0.5, %v1196_v36  ;;  %v987_v18 = vpop.f32.mrb[27].mxu0  ;;  %v810_v36 = vpop.permute.xlu0 %809 }
 0x2a2   : > { %v1148_v28 = vmul.f32 0.7978846, %v1116_v49  ;;  %v1118_v42 = vadd.f32 %v1086_v27, %v3493_v16  ;;  %v1263_v41 = vmul.f32 %v1231_v55, %v3374_v12  ;;  %v1230_v22 = vmul.f32 0.5, %v1198_v56 }
 0x2a3   : > { %v1149_v38 = vmul.f32 0.7978846, %v1117_v62  ;;  %v1087_v43 = vmul.f32 0.044715, %v1055_v25  ;;  %v1260_v19 = vmul.f32 %v1228_v31, %v3362_v48  ;;  %v3525_v20 = vadd.f32 %v981_v9, %v805_v58 }
 0x2a4   : > { %2638 = vtanh.f32 %v1148_v28  ;;  %v1150_v15 = vmul.f32 0.7978846, %v1118_v42  ;;  %v1299_v37 = vpack.c.bf16 %v1263_v41, %v1261_v4  ;;  %v1262_v60 = vmul.f32 %v1230_v22, %v3370_v11 }
 0x2a5   : > { %v3528_v59 = vpop.eup %2630  ;;  %2640 = vtanh.f32 %v1149_v38  ;;  %v1119_v49 = vadd.f32 %v1087_v43, %v3503_v5  ;;  %v1024_v12 = vmul.f32 %v3525_v20, %v3525_v20  ;;  %v3533_v27 = vadd.f32 %v983_v44, %v805_v58 }
 0x2a6   : > { %v3535_v55 = vpop.eup %2632  ;;  %2642 = vtanh.f32 %v1150_v15  ;;  %1386 = vmatprep.subr.bf16.mxu1 %v1299_v37  ;;  %v1298_v48 = vpack.c.bf16 %v1262_v60, %v1260_v19  ;;  %v3537_v42 = vadd.f32 %v985_v39, %v810_v36  ;;  %v3539_v41 = vadd.f32 %v987_v18, %v810_v36  ;;  %v991_v11 = vpop.f32.mrb[28].mxu0 }
 0x2a7   : > { %v3541_v9 = vpop.eup %2634  ;;  %v1151_v56 = vmul.f32 0.7978846, %v1119_v49  ;;  %v1056_v62 = vmul.f32 %v1024_v12, %v3525_v20  ;;  %v1025_v25 = vmul.f32 %v3533_v27, %v3533_v27  ;;  %v1201_v58 = vadd.f32 1.0, %v3472_v47  ;;  %v993_v44 = vpop.f32.mrb[29].mxu0 }
 0x2a8   : > { %v3547_v4 = vpop.eup %2636  ;;  %1387 = vmatpush1.bf16.msra.mxu1 %v1298_v48  ;;  %v1026_v39 = vmul.f32 %v3537_v42, %v3537_v42  ;;  %v1027_v31 = vmul.f32 %v3539_v41, %v3539_v41  ;;  %v1203_v18 = vadd.f32 1.0, %v3480_v30  ;;  %v1200_v28 = vadd.f32 1.0, %v3468_v23  ;;  %v995_v22 = vpop.f32.mrb[30].mxu0 }
 0x2a9   : > { %2644 = vtanh.f32 %v1151_v56  ;;  %v1088_v38 = vmul.f32 0.044715, %v1056_v62  ;;  %v1057_v43 = vmul.f32 %v1025_v25, %v3533_v27  ;;  %v1233_v47 = vmul.f32 0.5, %v1201_v58  ;;  %v997_v19 = vpop.f32.mrb[31].mxu0  ;;  %v815_v48 = vpop.permute.xlu1 %814 }
 0x2aa   : > { %v1058_v15 = vmul.f32 %v1026_v39, %v3537_v42  ;;  %v1059_v37 = vmul.f32 %v1027_v31, %v3539_v41  ;;  %v1235_v60 = vmul.f32 0.5, %v1203_v18  ;;  %v1202_v36 = vadd.f32 1.0, %v3476_v35 }
 0x2ab   : > { %v1120_v49 = vadd.f32 %v1088_v38, %v3525_v20  ;;  %v1089_v12 = vmul.f32 0.044715, %v1057_v43  ;;  %v1265_v30 = vmul.f32 %v1233_v47, %v3389_v34  ;;  %v1232_v23 = vmul.f32 0.5, %v1200_v28 }
 0x2ac   : > { %v1090_v56 = vmul.f32 0.044715, %v1058_v15  ;;  %v1091_v62 = vmul.f32 0.044715, %v1059_v37  ;;  %v1267_v25 = vmul.f32 %v1235_v60, %v3399_v40  ;;  %v1234_v58 = vmul.f32 0.5, %v1202_v36  ;;  %v820_v40 = vpop.permute.xlu0 %819 }
 0x2ad   : > { %v1152_v14 = vmul.f32 0.7978846, %v1120_v49  ;;  %v1121_v39 = vadd.f32 %v1089_v12, %v3533_v27  ;;  %v1264_v31 = vmul.f32 %v1232_v23, %v3386_v26  ;;  %v3564_v18 = vadd.f32 %v991_v11, %v815_v48 }
 0x2ae   : > { %v3566_v35 = vpop.eup %2638  ;;  %v1122_v38 = vadd.f32 %v1090_v56, %v3537_v42  ;;  %v1123_v34 = vadd.f32 %v1091_v62, %v3539_v41  ;;  %v1301_v28 = vpack.c.bf16 %v1267_v25, %v1265_v30  ;;  %v1266_v43 = vmul.f32 %v1234_v58, %v3394_v52 }
 0x2af   : > { %v3571_v47 = vpop.eup %2640  ;;  %2646 = vtanh.f32 %v1152_v14  ;;  %v1153_v15 = vmul.f32 0.7978846, %v1121_v39  ;;  %v1028_v37 = vmul.f32 %v3564_v18, %v3564_v18  ;;  %v3575_v26 = vadd.f32 %v993_v44, %v815_v48 }
 0x2b0   : > { %v3577_v11 = vpop.eup %2642  ;;  %v1154_v60 = vmul.f32 0.7978846, %v1122_v38  ;;  %v1155_v36 = vmul.f32 0.7978846, %v1123_v34  ;;  %1388 = vmatprep.subr.bf16.mxu1 %v1301_v28  ;;  %v1300_v49 = vpack.c.bf16 %v1266_v43, %v1264_v31  ;;  %v3579_v12 = vadd.f32 %v995_v22, %v820_v40 }
 0x2b1   : > { %2648 = vtanh.f32 %v1153_v15  ;;  %v1060_v52 = vmul.f32 %v1028_v37, %v3564_v18  ;;  %v1029_v14 = vmul.f32 %v3575_v26, %v3575_v26  ;;  %v3584_v30 = vadd.f32 %v997_v19, %v820_v40 }
 0x2b2   : > { %2650 = vtanh.f32 %v1154_v60  ;;  %1389 = vmatpush1.bf16.msra.mxu1 %v1300_v49  ;;  %v1030_v44 = vmul.f32 %v3579_v12, %v3579_v12  ;;  %v1205_v23 = vadd.f32 1.0, %v3506_v61  ;;  %v1207_v48 = vadd.f32 1.0, %v3515_v2 }
 0x2b3   : > { %v2645_v56 = vpop.eup %2644  ;;  %2652 = vtanh.f32 %v1155_v36  ;;  %v1092_v22 = vmul.f32 0.044715, %v1060_v52  ;;  %v1061_v62 = vmul.f32 %v1029_v14, %v3575_v26  ;;  %v1031_v25 = vmul.f32 %v3584_v30, %v3584_v30 }
 0x2b4   : > { %v1062_v19 = vmul.f32 %v1030_v44, %v3579_v12  ;;  %v1237_v58 = vmul.f32 0.5, %v1205_v23  ;;  %v1239_v39 = vmul.f32 0.5, %v1207_v48  ;;  %v1204_v31 = vadd.f32 1.0, %v3500_v17 }
 0x2b5   : > { %v1124_v38 = vadd.f32 %v1092_v22, %v3564_v18  ;;  %v1093_v34 = vmul.f32 0.044715, %v1061_v62  ;;  %v1063_v61 = vmul.f32 %v1031_v25, %v3584_v30  ;;  %v1206_v2 = vadd.f32 1.0, %v3510_v8 }
 0x2b6   : > { %v1094_v28 = vmul.f32 0.044715, %v1062_v19  ;;  %v1269_v43 = vmul.f32 %v1237_v58, %v3415_v29  ;;  %v1271_v40 = vmul.f32 %v1239_v39, %v3427_v3  ;;  %v1236_v15 = vmul.f32 0.5, %v1204_v31 }
 0x2b7   : > { %v1156_v37 = vmul.f32 0.7978846, %v1124_v38  ;;  %v1125_v60 = vadd.f32 %v1093_v34, %v3575_v26  ;;  %v1095_v36 = vmul.f32 0.044715, %v1063_v61  ;;  %v1238_v49 = vmul.f32 0.5, %v1206_v2 }
 0x2b8   : > { %v1126_v17 = vadd.f32 %v1094_v28, %v3579_v12  ;;  %v1303_v52 = vpack.c.bf16 %v1271_v40, %v1269_v43  ;;  %v1268_v14 = vmul.f32 %v1236_v15, %v3412_v13  ;;  %v1209_v44 = vadd.f32 1.0, %v3535_v55 }
 0x2b9   : > { %v2647_v23 = vpop.eup %2646  ;;  %2654 = vtanh.f32 %v1156_v37  ;;  %v1157_v8 = vmul.f32 0.7978846, %v1125_v60  ;;  %v1127_v29 = vadd.f32 %v1095_v36, %v3584_v30  ;;  %v1270_v3 = vmul.f32 %v1238_v49, %v3422_v45 }
 0x2ba   : > { %v1158_v48 = vmul.f32 0.7978846, %v1126_v17  ;;  %1390 = vmatprep.subr.bf16.mxu1 %v1303_v52  ;;  %v1211_v22 = vadd.f32 1.0, %v3547_v4  ;;  %v1241_v62 = vmul.f32 0.5, %v1209_v44  ;;  %v1208_v25 = vadd.f32 1.0, %v3528_v59 }
 0x2bb   : > { %v2649_v19 = vpop.eup %2648  ;;  %2656 = vtanh.f32 %v1157_v8  ;;  %v1159_v58 = vmul.f32 0.7978846, %v1127_v29  ;;  %v1302_v13 = vpack.c.bf16 %v1270_v3, %v1268_v14  ;;  %v1210_v55 = vadd.f32 1.0, %v3541_v9 }
 0x2bc   : > { %v2651_v39 = vpop.eup %2650  ;;  %2658 = vtanh.f32 %v1158_v48  ;;  %v1243_v31 = vmul.f32 0.5, %v1211_v22  ;;  %v1273_v38 = vmul.f32 %v1241_v62, %v3449_v50  ;;  %v1240_v34 = vmul.f32 0.5, %v1208_v25 }
 0x2bd   : > { %v2653_v45 = vpop.eup %2652  ;;  %2660 = vtanh.f32 %v1159_v58  ;;  %1391 = vmatpush1.bf16.msra.mxu1 %v1302_v13  ;;  %v1242_v61 = vmul.f32 0.5, %v1210_v55  ;;  %v1213_v4 = vadd.f32 1.0, %v3571_v47  ;;  %v1215_v2 = vadd.f32 1.0, %v2645_v56 }
 0x2be   : > { %v1275_v59 = vmul.f32 %v1243_v31, %v3460_v1  ;;  %v1272_v28 = vmul.f32 %v1240_v34, %v3444_v32  ;;  %v1212_v43 = vadd.f32 1.0, %v3566_v35  ;;  %v1214_v9 = vadd.f32 1.0, %v3577_v11 }
 0x2bf   : > { %v1274_v40 = vmul.f32 %v1242_v61, %v3455_v57  ;;  %v1245_v15 = vmul.f32 0.5, %v1213_v4  ;;  %v1247_v50 = vmul.f32 0.5, %v1215_v2  ;;  %v1217_v37 = vadd.f32 1.0, %v2649_v19 }
 0x2c0   : > { %v1305_v60 = vpack.c.bf16 %v1275_v59, %v1273_v38  ;;  %v1244_v36 = vmul.f32 0.5, %v1212_v43  ;;  %v1246_v49 = vmul.f32 0.5, %v1214_v9  ;;  %v1219_v17 = vadd.f32 1.0, %v2653_v45 }
 0x2c1   : > { %v1304_v52 = vpack.c.bf16 %v1274_v40, %v1272_v28  ;;  %v1277_v47 = vmul.f32 %v1245_v15, %v3488_v24  ;;  %v1279_v1 = vmul.f32 %v1247_v50, %v3503_v5  ;;  %v1249_v56 = vmul.f32 0.5, %v1217_v37  ;;  %v1328_v40 = vpop.permute.xlu0 %1327 }
 0x2c2   : > { %1392 = vmatprep.subr.bf16.mxu1 %v1305_v60  ;;  %v1276_v32 = vmul.f32 %v1244_v36, %v3484_v10  ;;  %v1278_v35 = vmul.f32 %v1246_v49, %v3493_v16  ;;  %v1251_v11 = vmul.f32 0.5, %v1219_v17  ;;  %v1216_v57 = vadd.f32 1.0, %v2647_v23 }
 0x2c3   : > { %v2655_v14 = vpop.eup %2654  ;;  %1393 = vmatpush1.bf16.msra.mxu1 %v1304_v52  ;;  %v1307_v44 = vpack.c.bf16 %v1279_v1, %v1277_v47  ;;  %v1281_v8 = vmul.f32 %v1249_v56, %v3533_v27  ;;  %v1218_v29 = vadd.f32 1.0, %v2651_v39  ;;  %v4178_v59 = vmov 0  }
 0x2c4   : > { %v1306_v3 = vpack.c.bf16 %v1278_v35, %v1276_v32  ;;  %v1283_v48 = vmul.f32 %v1251_v11, %v3539_v41  ;;  %v1248_v24 = vmul.f32 0.5, %v1216_v57  ;;  %v1220_v22 = vadd.f32 1.0, %v2655_v14 }
 0x2c5   : > { %v2657_v5 = vpop.eup %2656  ;;  %1394 = vmatprep.subr.bf16.mxu1 %v1307_v44  ;;  %v1250_v62 = vmul.f32 0.5, %v1218_v29  ;;  %v1338_v1 = vpop.permute.xlu0 %1337 }
 0x2c6   : > { %v2659_v25 = vpop.eup %2658  ;;  %v1309_v10 = vpack.c.bf16 %v1283_v48, %v1281_v8  ;;  %v1221_v19 = vadd.f32 1.0, %v2657_v5  ;;  %v1280_v23 = vmul.f32 %v1248_v24, %v3525_v20  ;;  %v1252_v27 = vmul.f32 0.5, %v1220_v22 }
 0x2c7   : > { %v2661_v16 = vpop.eup %2660  ;;  %1395 = vmatpush1.bf16.msra.mxu1 %v1306_v3  ;;  %v1282_v58 = vmul.f32 %v1250_v62, %v3537_v42  ;;  %v1222_v13 = vadd.f32 1.0, %v2659_v25  ;;  %v2546_v42 = vld [vmem:[%s4143_s7] sm:$0xff]  }
 0x2c8   : > { %1396 = vmatprep.subr.bf16.mxu1 %v1309_v10  ;;  %v1223_v55 = vadd.f32 1.0, %v2661_v16  ;;  %v1253_v39 = vmul.f32 0.5, %v1221_v19  ;;  %v1284_v34 = vmul.f32 %v1252_v27, %v3564_v18  ;;  %v2547_v18 = vld [vmem:[%s4143_s7 + $0x8] sm:$0xff]  }
 0x2c9   : > { %v1308_v41 = vpack.c.bf16 %v1282_v58, %v1280_v23  ;;  %v1254_v31 = vmul.f32 0.5, %v1222_v13  ;;  %v1348_v8 = vpop.permute.xlu0 %1347 }
 0x2ca   : > { %v1255_v38 = vmul.f32 0.5, %v1223_v55  ;;  %v1285_v61 = vmul.f32 %v1253_v39, %v3575_v26  ;;  %v2548_v26 = vld [vmem:[%s4143_s7 + $0x10] sm:$0xff]  }
 0x2cb   : > { %1397 = vmatpush1.bf16.msra.mxu1 %v1308_v41  ;;  %v1286_v45 = vmul.f32 %v1254_v31, %v3579_v12  ;;  %v2549_v12 = vld [vmem:[%s4143_s7 + $0x18] sm:$0xff]  }
 0x2cc   : > { %v1287_v4 = vmul.f32 %v1255_v38, %v3584_v30  ;;  %v1323_v30 = vpop.permute.xlu1 %1322 }
 0x2cd   : > { %v1310_v20 = vpack.c.bf16 %v1286_v45, %v1284_v34  ;;  %v1358_v25 = vpop.permute.xlu0 %1357  ;;  %v4181_v34 = vld [vmem:[#allocation14_spill] sm:$0xff] }
 0x2ce   : > { %v1311_v2 = vpack.c.bf16 %v1287_v4, %v1285_v61  ;;  %v4182_v61 = vld [vmem:[#allocation15_spill] sm:$0xff] }
 0x2d0   : > { %1398 = vmatprep.subr.bf16.mxu1 %v1311_v2  ;;  %v1333_v49 = vpop.permute.xlu1 %1332  ;;  %v4183_v2 = vld [vmem:[#allocation16_spill] sm:$0xff] }
 0x2d1   : > { %1399 = vmatpush1.bf16.msra.mxu1 %v1310_v20 }
 0x2d4   : > { %1417 = vmatmul.mubr.bf16.vlgmr.msra.gmra.mrb[0].mxu1 %v2546_v42 }
 0x2d5   : > { %1426 = vmatprep.mubr.bf16.mxu1 %v4178_v59 }
 0x2dc   : > { %1427 = vmatmul.mubr.bf16.gmra.mrb[4].mxu1 %v2547_v18 }
 0x2dd   : > { %1436 = vmatprep.mubr.bf16.mxu1 %v4178_v59 }
 0x2e4   : > { %1437 = vmatmul.mubr.bf16.gmra.mrb[8].mxu1 %v2548_v26 }
 0x2e5   : > { %1446 = vmatprep.mubr.bf16.mxu1 %v4178_v59  ;;  %v4184_v59 = vld [vmem:[#allocation17_spill] sm:$0xff] }
 0x2ec   : > { %1447 = vmatmul.mubr.bf16.gmra.mrb[12].mxu1 %v2549_v12 }
 0x3a7   : > { %v1418_v28 = vpop.f32.mrb[0].mxu1 }
 0x3a8   : > { %v1419_v43 = vadd.f32 %v1418_v28, %v1323_v30  ;;  %v1420_v9 = vpop.f32.mrb[1].mxu1 }
 0x3a9   : > { %v1422_v15 = vpop.f32.mrb[2].mxu1  ;;  %v1421_v19 = vadd.f32 %v1420_v9, %v1323_v30 }
 0x3aa   : > { %v3644_v50 = vadd.f32 %v1419_v43, %v3227_v6  ;;  %v1423_v37 = vadd.f32 %v1422_v15, %v1328_v40  ;;  %v1424_v60 = vpop.f32.mrb[3].mxu1 }
 0x3ab   : > { %v1425_v58 = vadd.f32 %v1424_v60, %v1328_v40  ;;  %v3675_v13 = vadd.f32 %v1421_v19, %v3206_v46 }
 0x3ac   : > { %v3647_v36 = vadd.f32 %v1423_v37, %v3230_v7  ;;  %1475 = vadd.xlane.f32.xlu1 %v3644_v50  ;;  %v1343_v7 = vpop.permute.xlu1 %1342 }
 0x3ad   : > { %v3679_v55 = vadd.f32 %v1425_v58, %v3210_v21 }
 0x3ae   : > { %1477 = vadd.xlane.f32.xlu0 %v3647_v36 }
 0x3af   : > { %v1428_v17 = vpop.f32.mrb[4].mxu1 }
 0x3b0   : > { %v1429_v52 = vadd.f32 %v1428_v17, %v1333_v49  ;;  %v1430_v47 = vpop.f32.mrb[5].mxu1 }
 0x3b1   : > { %v1432_v56 = vpop.f32.mrb[6].mxu1  ;;  %v1431_v27 = vadd.f32 %v1430_v47, %v1333_v49 }
 0x3b2   : > { %v3652_v32 = vadd.f32 %v1429_v52, %v3248_v51  ;;  %v1433_v6 = vadd.f32 %v1432_v56, %v1338_v1  ;;  %v1434_v35 = vpop.f32.mrb[7].mxu1 }
 0x3b3   : > { %v1435_v39 = vadd.f32 %v1434_v35, %v1338_v1 }
 0x3b4   : > { %v3655_v11 = vadd.f32 %v1433_v6, %v3252_v33  ;;  %1479 = vadd.xlane.f32.xlu0 %v3652_v32  ;;  %v1353_v33 = vpop.permute.xlu1 %1352 }
 0x3b6   : > { %1481 = vadd.xlane.f32.xlu1 %v3655_v11 }
 0x3b7   : > { %v1438_v57 = vpop.f32.mrb[8].mxu1 }
 0x3b8   : > { %v1439_v14 = vadd.f32 %v1438_v57, %v1343_v7  ;;  %v1440_v44 = vpop.f32.mrb[9].mxu1 }
 0x3b9   : > { %v1442_v29 = vpop.f32.mrb[10].mxu1  ;;  %v1441_v31 = vadd.f32 %v1440_v44, %v1343_v7 }
 0x3ba   : > { %v3660_v3 = vadd.f32 %v1439_v14, %v3273_v53  ;;  %v1443_v51 = vadd.f32 %v1442_v29, %v1348_v8  ;;  %v1444_v48 = vpop.f32.mrb[11].mxu1 }
 0x3bb   : > { %v1445_v46 = vadd.f32 %v1444_v48, %v1348_v8  ;;  %v3691_v45 = vadd.f32 %v1441_v31, %v4181_v34 }
 0x3bc   : > { %v3663_v24 = vadd.f32 %v1443_v51, %v3276_v54  ;;  %1483 = vadd.xlane.f32.xlu0 %v3660_v3 }
 0x3bd   : > { %v3695_v4 = vadd.f32 %v1445_v46, %v4182_v61 }
 0x3be   : > { %1485 = vadd.xlane.f32.xlu1 %v3663_v24 }
 0x3bf   : > { %v1448_v22 = vpop.f32.mrb[12].mxu1 }
 0x3c0   : > { %v1449_v5 = vadd.f32 %v1448_v22, %v1353_v33  ;;  %v1450_v62 = vpop.f32.mrb[13].mxu1 }
 0x3c1   : > { %v1452_v10 = vpop.f32.mrb[14].mxu1  ;;  %v1451_v21 = vadd.f32 %v1450_v62, %v1353_v33  ;;  %v2550_v33 = vld [vmem:[%s4145_s9] sm:$0xff]  }
 0x3c2   : > { %v3668_v16 = vadd.f32 %v1449_v5, %v3295_v63  ;;  %v1453_v53 = vadd.f32 %v1452_v10, %v1358_v25  ;;  %v1454_v23 = vpop.f32.mrb[15].mxu1  ;;  %v4179_v63 = vld [vmem:[#allocation12_spill] sm:$0xff]  ;;  %2405 = vmatprep.subr.bf16.mxu1 %v2550_v33 }
 0x3c3   : > { %v3683_v41 = vadd.f32 %v1431_v27, %v4179_v63  ;;  %v1455_v20 = vadd.f32 %v1454_v23, %v1358_v25  ;;  %v3699_v42 = vadd.f32 %v1451_v21, %v4183_v2  ;;  %v2551_v25 = vld [vmem:[%s4145_s9 + $0x8] sm:$0xff]   ;;  %2406 = vmatpush3.bf16.msra.mxu1 %v2550_v33  ;;  %v2554_v33 = vld [vmem:[%s4145_s9 + $0x20] sm:$0xff]  }
 0x3c4   : > { %v3671_v54 = vadd.f32 %v1453_v53, %v3298_v0  ;;  %1487 = vadd.xlane.f32.xlu0 %v3668_v16  ;;  %v4180_v0 = vld [vmem:[#allocation13_spill] sm:$0xff]  ;;  %2407 = vmatprep.subr.bf16.mxu1 %v2551_v25 }
 0x3c5   : > { %v3687_v38 = vadd.f32 %v1435_v39, %v4180_v0  ;;  %v3703_v18 = vadd.f32 %v1455_v20, %v4184_v59 }
 0x3c6   : > { %1489 = vadd.xlane.f32.xlu1 %v3671_v54 }
 0x3c7   : > { %2408 = vmatpush3.bf16.msra.mxu1 %v2551_v25  ;;  %v2557_v25 = vld [vmem:[%s4145_s9 + $0x38] sm:$0xff]  }
 0x3c8   : > { %1491 = vadd.xlane.f32.xlu0 %v3675_v13 }
 0x3ca   : > { %1493 = vadd.xlane.f32.xlu1 %v3679_v55 }
 0x3cc   : > { %1495 = vadd.xlane.f32.xlu0 %v3683_v41 }
 0x3ce   : > { %1497 = vadd.xlane.f32.xlu1 %v3687_v38 }
 0x3d0   : > { %1499 = vadd.xlane.f32.xlu0 %v3691_v45 }
 0x3d2   : > { %1501 = vadd.xlane.f32.xlu1 %v3695_v4 }
 0x3d4   : > { %1503 = vadd.xlane.f32.xlu0 %v3699_v42 }
 0x3d6   : > { %1505 = vadd.xlane.f32.xlu1 %v3703_v18 }
 0x439   : > { %v1476_v26 = vpop.xlane.xlu1 %1475 }
 0x43a   : > { %v1507_v12 = vmul.f32 0.0078125, %v1476_v26 }
 0x43b   : > { %v1478_v30 = vpop.xlane.xlu0 %1477 }
 0x43c   : > { %v3708_v28 = vsub.f32 %v3644_v50, %v1507_v12  ;;  %v1508_v43 = vmul.f32 0.0078125, %v1478_v30 }
 0x43e   : > { %v3711_v9 = vsub.f32 %v3647_v36, %v1508_v43  ;;  %v1539_v40 = vmul.f32 %v3708_v28, %v3708_v28 }
 0x440   : > { %1555 = vadd.xlane.f32.xlu0 %v1539_v40  ;;  %v1540_v15 = vmul.f32 %v3711_v9, %v3711_v9 }
 0x441   : > { %v1480_v37 = vpop.xlane.xlu0 %1479 }
 0x442   : > { %v1509_v60 = vmul.f32 0.0078125, %v1480_v37  ;;  %1557 = vadd.xlane.f32.xlu1 %v1540_v15 }
 0x443   : > { %v1482_v49 = vpop.xlane.xlu1 %1481 }
 0x444   : > { %v3718_v17 = vsub.f32 %v3652_v32, %v1509_v60  ;;  %v1510_v52 = vmul.f32 0.0078125, %v1482_v49 }
 0x446   : > { %v3721_v47 = vsub.f32 %v3655_v11, %v1510_v52  ;;  %v1541_v1 = vmul.f32 %v3718_v17, %v3718_v17 }
 0x448   : > { %1559 = vadd.xlane.f32.xlu0 %v1541_v1  ;;  %v1542_v56 = vmul.f32 %v3721_v47, %v3721_v47 }
 0x449   : > { %v1484_v6 = vpop.xlane.xlu0 %1483 }
 0x44a   : > { %v1511_v35 = vmul.f32 0.0078125, %v1484_v6  ;;  %1561 = vadd.xlane.f32.xlu1 %v1542_v56 }
 0x44b   : > { %v1486_v7 = vpop.xlane.xlu1 %1485 }
 0x44c   : > { %v3728_v57 = vsub.f32 %v3660_v3, %v1511_v35  ;;  %v1512_v14 = vmul.f32 0.0078125, %v1486_v7 }
 0x44e   : > { %v3731_v44 = vsub.f32 %v3663_v24, %v1512_v14  ;;  %v1543_v8 = vmul.f32 %v3728_v57, %v3728_v57  ;;  %v2552_v14 = vld [vmem:[%s4145_s9 + $0x10] sm:$0xff]  }
 0x44f   : > { %2409 = vmatprep.subr.bf16.mxu1 %v2552_v14 }
 0x450   : > { %1563 = vadd.xlane.f32.xlu0 %v1543_v8  ;;  %v1544_v29 = vmul.f32 %v3731_v44, %v3731_v44  ;;  %2410 = vmatpush3.bf16.msra.mxu1 %v2552_v14 }
 0x451   : > { %v1488_v51 = vpop.xlane.xlu0 %1487 }
 0x452   : > { %v1513_v48 = vmul.f32 0.0078125, %v1488_v51  ;;  %1565 = vadd.xlane.f32.xlu1 %v1544_v29 }
 0x453   : > { %v1490_v22 = vpop.xlane.xlu1 %1489 }
 0x454   : > { %v3741_v5 = vsub.f32 %v3668_v16, %v1513_v48  ;;  %v1514_v62 = vmul.f32 0.0078125, %v1490_v22  ;;  %v2553_v48 = vld [vmem:[%s4145_s9 + $0x18] sm:$0xff]   ;;  %v2555_v22 = vld [vmem:[%s4145_s9 + $0x28] sm:$0xff]  }
 0x455   : > { %v1492_v10 = vpop.xlane.xlu0 %1491  ;;  %2411 = vmatprep.subr.bf16.mxu1 %v2553_v48 }
 0x456   : > { %v3747_v19 = vsub.f32 %v3671_v54, %v1514_v62  ;;  %v1515_v53 = vmul.f32 0.0078125, %v1492_v10  ;;  %v1545_v23 = vmul.f32 %v3741_v5, %v3741_v5  ;;  %2412 = vmatpush3.bf16.msra.mxu1 %v2553_v48  ;;  %v2556_v62 = vld [vmem:[%s4145_s9 + $0x30] sm:$0xff]   ;;  %v3814_v10 = vld [vmem:[%s4147_s11] sm:$0xff]  }
 0x457   : > { %v1494_v58 = vpop.xlane.xlu1 %1493  ;;  %2413 = vmatprep.subr.bf16.mxu1 %v2554_v33  ;;  %2437 = vmatprep.subr.bf16.mxu0 %v3814_v10 }
 0x458   : > { %v3752_v27 = vsub.f32 %v3675_v13, %v1515_v53  ;;  %v1516_v39 = vmul.f32 0.0078125, %v1494_v58  ;;  %1567 = vadd.xlane.f32.xlu0 %v1545_v23  ;;  %v1546_v63 = vmul.f32 %v3747_v19, %v3747_v19  ;;  %v3819_v53 = vld [vmem:[%s4147_s11 + $0x8] sm:$0xff]   ;;  %2438 = vmatpush3.bf16.msra.mxu0 %v3814_v10 }
 0x459   : > { %v1496_v31 = vpop.xlane.xlu0 %1495  ;;  %2439 = vmatprep.subr.bf16.mxu0 %v3819_v53 }
 0x45a   : > { %v3757_v0 = vsub.f32 %v3679_v55, %v1516_v39  ;;  %v1517_v46 = vmul.f32 0.0078125, %v1496_v31  ;;  %1569 = vadd.xlane.f32.xlu1 %v1546_v63  ;;  %v1547_v34 = vmul.f32 %v3752_v27, %v3752_v27  ;;  %2414 = vmatpush3.bf16.msra.mxu1 %v2554_v33 }
 0x45b   : > { %v1498_v21 = vpop.xlane.xlu1 %1497  ;;  %2415 = vmatprep.subr.bf16.mxu1 %v2555_v22 }
 0x45c   : > { %v3762_v61 = vsub.f32 %v3683_v41, %v1517_v46  ;;  %v1518_v20 = vmul.f32 0.0078125, %v1498_v21  ;;  %1571 = vadd.xlane.f32.xlu0 %v1547_v34  ;;  %v1548_v2 = vmul.f32 %v3757_v0, %v3757_v0  ;;  %2440 = vmatpush3.bf16.msra.mxu0 %v3819_v53 }
 0x45d   : > { %v1500_v59 = vpop.xlane.xlu0 %1499 }
 0x45e   : > { %v3767_v26 = vsub.f32 %v3687_v38, %v1518_v20  ;;  %v1519_v12 = vmul.f32 0.0078125, %v1500_v59  ;;  %1573 = vadd.xlane.f32.xlu1 %v1548_v2  ;;  %v1549_v30 = vmul.f32 %v3762_v61, %v3762_v61  ;;  %2416 = vmatpush3.bf16.msra.mxu1 %v2555_v22 }
 0x45f   : > { %v1502_v43 = vpop.xlane.xlu1 %1501  ;;  %2417 = vmatprep.subr.bf16.mxu1 %v2556_v62 }
 0x460   : > { %v3772_v40 = vsub.f32 %v3691_v45, %v1519_v12  ;;  %v1520_v15 = vmul.f32 0.0078125, %v1502_v43  ;;  %1575 = vadd.xlane.f32.xlu0 %v1549_v30  ;;  %v1550_v37 = vmul.f32 %v3767_v26, %v3767_v26  ;;  %v3829_v43 = vld [vmem:[%s4139_s3] ss:$0 sm:$0xff] }
 0x461   : > { %v1504_v60 = vpop.xlane.xlu0 %1503 }
 0x462   : > { %v3777_v49 = vsub.f32 %v3695_v4, %v1520_v15  ;;  %v1521_v52 = vmul.f32 0.0078125, %v1504_v60  ;;  %1577 = vadd.xlane.f32.xlu1 %v1550_v37  ;;  %v1551_v1 = vmul.f32 %v3772_v40, %v3772_v40  ;;  %2418 = vmatpush3.bf16.msra.mxu1 %v2556_v62 }
 0x463   : > { %v1506_v56 = vpop.xlane.xlu1 %1505  ;;  %2419 = vmatprep.subr.bf16.mxu1 %v2557_v25 }
 0x464   : > { %v3782_v6 = vsub.f32 %v3699_v42, %v1521_v52  ;;  %v1522_v35 = vmul.f32 0.0078125, %v1506_v56  ;;  %1579 = vadd.xlane.f32.xlu0 %v1551_v1  ;;  %v1552_v7 = vmul.f32 %v3777_v49, %v3777_v49 }
 0x466   : > { %v3790_v8 = vsub.f32 %v3703_v18, %v1522_v35  ;;  %1581 = vadd.xlane.f32.xlu1 %v1552_v7  ;;  %v1553_v29 = vmul.f32 %v3782_v6, %v3782_v6  ;;  %2420 = vmatpush3.bf16.msra.mxu1 %v2557_v25 }
 0x467   : > { %2469 = vmatprep.subr.bf16.mxu1 %v3814_v10 }
 0x468   : > { %1583 = vadd.xlane.f32.xlu0 %v1553_v29  ;;  %v1554_v51 = vmul.f32 %v3790_v8, %v3790_v8  ;;  %v3837_v29 = vld [vmem:[%s4140_s4] ss:$0 sm:$0xff] }
 0x46a   : > { %1585 = vadd.xlane.f32.xlu1 %v1554_v51 }
 0x4cd   : > { %v1556_v23 = vpop.xlane.xlu0 %1555 }
 0x4ce   : > { %v1587_v58 = vmul.f32 0.0078125, %v1556_v23 }
 0x4cf   : > { %v1558_v39 = vpop.xlane.xlu1 %1557 }
 0x4d0   : > { %v1603_v63 = vadd.f32 1e-05, %v1587_v58  ;;  %v1588_v31 = vmul.f32 0.0078125, %v1558_v39 }
 0x4d2   : > { %2662 = vrsqrt.f32 %v1603_v63  ;;  %v1604_v46 = vadd.f32 1e-05, %v1588_v31 }
 0x4d4   : > { %2664 = vrsqrt.f32 %v1604_v46 }
 0x4d5   : > { %v1560_v34 = vpop.xlane.xlu0 %1559 }
 0x4d6   : > { %v1589_v21 = vmul.f32 0.0078125, %v1560_v34 }
 0x4d7   : > { %v1562_v20 = vpop.xlane.xlu1 %1561 }
 0x4d8   : > { %v1605_v2 = vadd.f32 1e-05, %v1589_v21  ;;  %v1590_v59 = vmul.f32 0.0078125, %v1562_v20 }
 0x4da   : > { %2666 = vrsqrt.f32 %v1605_v2  ;;  %v1606_v12 = vadd.f32 1e-05, %v1590_v59 }
 0x4dc   : > { %v2663_v30 = vpop.eup %2662  ;;  %2668 = vrsqrt.f32 %v1606_v12 }
 0x4dd   : > { %v1564_v15 = vpop.xlane.xlu0 %1563  ;;  %v1635_v37 = vmul.f32 %v2663_v30, %v3708_v28 }
 0x4de   : > { %v2665_v60 = vpop.eup %2664  ;;  %v1591_v52 = vmul.f32 0.0078125, %v1564_v15 }
 0x4df   : > { %v1566_v1 = vpop.xlane.xlu1 %1565  ;;  %v1636_v56 = vmul.f32 %v2665_v60, %v3711_v9  ;;  %v1657_v35 = vmul.f32 %v3829_v43, %v1635_v37 }
 0x4e0   : > { %v1607_v7 = vadd.f32 1e-05, %v1591_v52  ;;  %v1592_v14 = vmul.f32 0.0078125, %v1566_v1 }
 0x4e1   : > { %v1658_v51 = vmul.f32 %v3829_v43, %v1636_v56  ;;  %v1679_v28 = vadd.f32 %v3837_v29, %v1657_v35 }
 0x4e2   : > { %2670 = vrsqrt.f32 %v1607_v7  ;;  %v1608_v48 = vadd.f32 1e-05, %v1592_v14 }
 0x4e3   : > { %v1680_v33 = vadd.f32 %v3837_v29, %v1658_v51 }
 0x4e4   : > { %v2667_v22 = vpop.eup %2666  ;;  %2672 = vrsqrt.f32 %v1608_v48 }
 0x4e5   : > { %v1637_v9 = vmul.f32 %v2667_v22, %v3718_v17  ;;  %v1568_v62 = vpop.xlane.xlu0 %1567  ;;  %v1695_v25 = vpack.c.bf16 %v1680_v33, %v1679_v28 }
 0x4e6   : > { %v2669_v23 = vpop.eup %2668  ;;  %v1593_v58 = vmul.f32 0.0078125, %v1568_v62 }
 0x4e7   : > { %v1659_v39 = vmul.f32 %v3829_v43, %v1637_v9  ;;  %v1638_v63 = vmul.f32 %v2669_v23, %v3721_v47  ;;  %2421 = vmatprep.mubr.bf16.mxu1 %v1695_v25  ;;  %v1570_v31 = vpop.xlane.xlu1 %1569 }
 0x4e8   : > { %v1609_v46 = vadd.f32 1e-05, %v1593_v58  ;;  %v1594_v34 = vmul.f32 0.0078125, %v1570_v31 }
 0x4e9   : > { %v1660_v21 = vmul.f32 %v3829_v43, %v1638_v63  ;;  %v1572_v20 = vpop.xlane.xlu0 %1571  ;;  %v1681_v17 = vadd.f32 %v3837_v29, %v1659_v39 }
 0x4ea   : > { %2674 = vrsqrt.f32 %v1609_v46  ;;  %v1610_v2 = vadd.f32 1e-05, %v1594_v34  ;;  %v1595_v59 = vmul.f32 0.0078125, %v1572_v20 }
 0x4eb   : > { %v1574_v12 = vpop.xlane.xlu1 %1573  ;;  %v1682_v30 = vadd.f32 %v3837_v29, %v1660_v21 }
 0x4ec   : > { %v2671_v15 = vpop.eup %2670  ;;  %2676 = vrsqrt.f32 %v1610_v2  ;;  %v1611_v37 = vadd.f32 1e-05, %v1595_v59  ;;  %v1596_v60 = vmul.f32 0.0078125, %v1574_v12 }
 0x4ed   : > { %v1576_v47 = vpop.xlane.xlu0 %1575  ;;  %v1696_v52 = vpack.c.bf16 %v1682_v30, %v1681_v17  ;;  %v1639_v1 = vmul.f32 %v2671_v15, %v3728_v57 }
 0x4ee   : > { %v2673_v56 = vpop.eup %2672  ;;  %2678 = vrsqrt.f32 %v1611_v37  ;;  %v1612_v35 = vadd.f32 1e-05, %v1596_v60  ;;  %v1597_v7 = vmul.f32 0.0078125, %v1576_v47 }
 0x4ef   : > { %2422 = vmatmul.mubr.bf16.vlgmr.msra.gmra.mrb[16].mxu1 %v1696_v52  ;;  %v1578_v14 = vpop.xlane.xlu1 %1577  ;;  %v1640_v51 = vmul.f32 %v2673_v56, %v3731_v44  ;;  %v1661_v48 = vmul.f32 %v3829_v43, %v1639_v1 }
 0x4f0   : > { %2680 = vrsqrt.f32 %v1612_v35  ;;  %v1613_v28 = vadd.f32 1e-05, %v1597_v7  ;;  %v1598_v33 = vmul.f32 0.0078125, %v1578_v14  ;;  %2477 = vmatpush3.bf16.msra.mxu1 %v3814_v10 }
 0x4f1   : > { %v1580_v22 = vpop.xlane.xlu0 %1579  ;;  %v1662_v9 = vmul.f32 %v3829_v43, %v1640_v51  ;;  %2470 = vmatprep.subr.bf16.mxu1 %v3819_v53  ;;  %v1683_v23 = vadd.f32 %v3837_v29, %v1661_v48 }
 0x4f2   : > { %2682 = vrsqrt.f32 %v1613_v28  ;;  %v1614_v57 = vadd.f32 1e-05, %v1598_v33  ;;  %v1599_v62 = vmul.f32 0.0078125, %v1580_v22 }
 0x4f3   : > { %v1582_v25 = vpop.xlane.xlu1 %1581  ;;  %v1684_v44 = vadd.f32 %v3837_v29, %v1662_v9 }
 0x4f4   : > { %v2675_v58 = vpop.eup %2674  ;;  %2684 = vrsqrt.f32 %v1614_v57  ;;  %v1615_v39 = vadd.f32 1e-05, %v1599_v62  ;;  %v1600_v63 = vmul.f32 0.0078125, %v1582_v25  ;;  %2478 = vmatpush3.bf16.msra.mxu1 %v3819_v53 }
 0x4f5   : > { %v1584_v10 = vpop.xlane.xlu0 %1583  ;;  %v1697_v31 = vpack.c.bf16 %v1684_v44, %v1683_v23  ;;  %v1641_v46 = vmul.f32 %v2675_v58, %v3741_v5 }
 0x4f6   : > { %v2677_v34 = vpop.eup %2676  ;;  %2686 = vrsqrt.f32 %v1615_v39  ;;  %v1616_v21 = vadd.f32 1e-05, %v1600_v63  ;;  %v1601_v20 = vmul.f32 0.0078125, %v1584_v10 }
 0x4f7   : > { %2425 = vmatprep.mubr.bf16.mxu1 %v1697_v31  ;;  %v1586_v2 = vpop.xlane.xlu1 %1585  ;;  %v1642_v59 = vmul.f32 %v2677_v34, %v3747_v19  ;;  %v1663_v12 = vmul.f32 %v3829_v43, %v1641_v46 }
 0x4f8   : > { %v2679_v17 = vpop.eup %2678  ;;  %2688 = vrsqrt.f32 %v1616_v21  ;;  %v1617_v30 = vadd.f32 1e-05, %v1601_v20  ;;  %v1602_v15 = vmul.f32 0.0078125, %v1586_v2 }
 0x4f9   : > { %v1664_v53 = vmul.f32 %v3829_v43, %v1642_v59  ;;  %v1643_v37 = vmul.f32 %v2679_v17, %v3752_v27  ;;  %v1685_v47 = vadd.f32 %v3837_v29, %v1663_v12  ;;  %v2564_v12 = vld [vmem:[%s4147_s11 + $0x30] sm:$0xff]   ;;  %v2565_v17 = vld [vmem:[%s4147_s11 + $0x38] sm:$0xff]  }
 0x4fa   : > { %v2681_v60 = vpop.eup %2680  ;;  %2690 = vrsqrt.f32 %v1617_v30  ;;  %v1618_v5 = vadd.f32 1e-05, %v1602_v15  ;;  %v3908_v30 = vld [vmem:[%s4146_s10] ss:$0 sm:$0xff] }
 0x4fb   : > { %v1686_v52 = vadd.f32 %v3837_v29, %v1664_v53  ;;  %v1644_v1 = vmul.f32 %v2681_v60, %v3757_v0  ;;  %v1665_v19 = vmul.f32 %v3829_v43, %v1643_v37 }
 0x4fc   : > { %v2683_v56 = vpop.eup %2682  ;;  %2692 = vrsqrt.f32 %v1618_v5 }
 0x4fd   : > { %v1698_v35 = vpack.c.bf16 %v1686_v52, %v1685_v47  ;;  %v1666_v7 = vmul.f32 %v3829_v43, %v1644_v1  ;;  %v1645_v14 = vmul.f32 %v2683_v56, %v3762_v61  ;;  %v1687_v27 = vadd.f32 %v3837_v29, %v1665_v19 }
 0x4fe   : > { %v2685_v51 = vpop.eup %2684 }
 0x4ff   : > { %2426 = vmatmul.mubr.bf16.gmra.mrb[20].mxu1 %v1698_v35  ;;  %v1688_v48 = vadd.f32 %v3837_v29, %v1666_v7  ;;  %v1646_v28 = vmul.f32 %v2685_v51, %v3767_v26  ;;  %v1667_v33 = vmul.f32 %v3829_v43, %v1645_v14 }
 0x500   : > { %v2687_v0 = vpop.eup %2686 }
 0x501   : > { %v1699_v22 = vpack.c.bf16 %v1688_v48, %v1687_v27  ;;  %v1668_v9 = vmul.f32 %v3829_v43, %v1646_v28  ;;  %v1647_v57 = vmul.f32 %v2687_v0, %v3772_v40  ;;  %v1689_v61 = vadd.f32 %v3837_v29, %v1667_v33 }
 0x502   : > { %v2689_v62 = vpop.eup %2688 }
 0x503   : > { %2429 = vmatprep.mubr.bf16.mxu1 %v1699_v22  ;;  %v1690_v25 = vadd.f32 %v3837_v29, %v1668_v9  ;;  %v1648_v23 = vmul.f32 %v2689_v62, %v3777_v49  ;;  %v1669_v44 = vmul.f32 %v3829_v43, %v1647_v57 }
 0x504   : > { %v2691_v58 = vpop.eup %2690 }
 0x505   : > { %v1700_v26 = vpack.c.bf16 %v1690_v25, %v1689_v61  ;;  %v1670_v39 = vmul.f32 %v3829_v43, %v1648_v23  ;;  %v1649_v63 = vmul.f32 %v2691_v58, %v3782_v6  ;;  %v1691_v40 = vadd.f32 %v3837_v29, %v1669_v44  ;;  %v2560_v6 = vld [vmem:[%s4147_s11 + $0x10] sm:$0xff]  }
 0x506   : > { %v2693_v10 = vpop.eup %2692  ;;  %2441 = vmatprep.subr.bf16.mxu0 %v2560_v6  ;;  %2471 = vmatprep.subr.bf16.mxu1 %v2560_v6 }
 0x507   : > { %2430 = vmatmul.mubr.bf16.gmra.mrb[24].mxu1 %v1700_v26  ;;  %v1692_v31 = vadd.f32 %v3837_v29, %v1670_v39  ;;  %v1650_v46 = vmul.f32 %v2693_v10, %v3790_v8  ;;  %v1671_v34 = vmul.f32 %v3829_v43, %v1649_v63  ;;  %2442 = vmatpush3.bf16.msra.mxu0 %v2560_v6  ;;  %v2561_v8 = vld [vmem:[%s4147_s11 + $0x18] sm:$0xff]  }
 0x508   : > { %2479 = vmatpush3.bf16.msra.mxu1 %v2560_v6  ;;  %2443 = vmatprep.subr.bf16.mxu0 %v2561_v8 }
 0x509   : > { %v1701_v21 = vpack.c.bf16 %v1692_v31, %v1691_v40  ;;  %v1672_v49 = vmul.f32 %v3829_v43, %v1650_v46  ;;  %v1693_v20 = vadd.f32 %v3837_v29, %v1671_v34  ;;  %2472 = vmatprep.subr.bf16.mxu1 %v2561_v8  ;;  %v2562_v43 = vld [vmem:[%s4147_s11 + $0x20] sm:$0xff]  }
 0x50b   : > { %2433 = vmatprep.mubr.bf16.mxu1 %v1701_v21  ;;  %v1694_v2 = vadd.f32 %v3837_v29, %v1672_v49  ;;  %2444 = vmatpush3.bf16.msra.mxu0 %v2561_v8  ;;  %v2563_v29 = vld [vmem:[%s4147_s11 + $0x28] sm:$0xff]  }
 0x50c   : > { %2480 = vmatpush3.bf16.msra.mxu1 %v2561_v8  ;;  %2445 = vmatprep.subr.bf16.mxu0 %v2562_v43 }
 0x50d   : > { %v1702_v59 = vpack.c.bf16 %v1694_v2, %v1693_v20  ;;  %2473 = vmatprep.subr.bf16.mxu1 %v2562_v43 }
 0x50f   : > { %2434 = vmatmul.mubr.bf16.gmra.mrb[28].mxu1 %v1702_v59  ;;  %2446 = vmatpush3.bf16.msra.mxu0 %v2562_v43 }
 0x510   : > { %2481 = vmatpush3.bf16.msra.mxu1 %v2562_v43  ;;  %2447 = vmatprep.subr.bf16.mxu0 %v2563_v29 }
 0x511   : > { %2474 = vmatprep.subr.bf16.mxu1 %v2563_v29 }
 0x513   : > { %2448 = vmatpush3.bf16.msra.mxu0 %v2563_v29 }
 0x514   : > { %2482 = vmatpush3.bf16.msra.mxu1 %v2563_v29  ;;  %2449 = vmatprep.subr.bf16.mxu0 %v2564_v12 }
 0x515   : > { %2475 = vmatprep.subr.bf16.mxu1 %v2564_v12 }
 0x517   : > { %2450 = vmatpush3.bf16.msra.mxu0 %v2564_v12 }
 0x518   : > { %2483 = vmatpush3.bf16.msra.mxu1 %v2564_v12  ;;  %2451 = vmatprep.subr.bf16.mxu0 %v2565_v17 }
 0x519   : > { %2476 = vmatprep.subr.bf16.mxu1 %v2565_v17 }
 0x51b   : > { %2452 = vmatpush3.bf16.msra.mxu0 %v2565_v17 }
 0x51c   : > { %2484 = vmatpush3.bf16.msra.mxu1 %v2565_v17 }
 0x5c2   : > { %v2423_v15 = vpop.f32.mrb[16].mxu1 }
 0x5c3   : > { %v3911_v53 = vadd.f32 %v2423_v15, %v3908_v30  ;;  %v1808_v37 = vpop.f32.mrb[17].mxu1 }
 0x5c4   : > { %v3914_v60 = vadd.f32 %v3908_v30, %v1808_v37  ;;  %v2424_v5 = vpop.f32.mrb[18].mxu1 }
 0x5c5   : > { %v1873_v47 = vmul.f32 %v3911_v53, %v3911_v53  ;;  %v3919_v52 = vadd.f32 %v2424_v5, %v3908_v30  ;;  %v1811_v1 = vpop.f32.mrb[19].mxu1 }
 0x5c6   : > { %v1871_v19 = vmul.f32 %v3914_v60, %v3914_v60  ;;  %v3924_v56 = vadd.f32 %v3908_v30, %v1811_v1 }
 0x5c7   : > { %v1889_v35 = vmul.f32 %v1873_v47, %v3911_v53  ;;  %v1874_v7 = vmul.f32 %v3919_v52, %v3919_v52 }
 0x5c8   : > { %v1887_v14 = vmul.f32 %v1871_v19, %v3914_v60  ;;  %v1872_v51 = vmul.f32 %v3924_v56, %v3924_v56 }
 0x5c9   : > { %v1905_v27 = vmul.f32 0.044715, %v1889_v35  ;;  %v1890_v48 = vmul.f32 %v1874_v7, %v3919_v52 }
 0x5ca   : > { %v1903_v28 = vmul.f32 0.044715, %v1887_v14  ;;  %v1888_v33 = vmul.f32 %v1872_v51, %v3924_v56 }
 0x5cb   : > { %v1921_v0 = vadd.f32 %v1905_v27, %v3911_v53  ;;  %v1906_v22 = vmul.f32 0.044715, %v1890_v48 }
 0x5cc   : > { %v1919_v9 = vadd.f32 %v1903_v28, %v3914_v60  ;;  %v1904_v57 = vmul.f32 0.044715, %v1888_v33 }
 0x5cd   : > { %v1937_v62 = vmul.f32 0.7978846, %v1921_v0  ;;  %v1922_v61 = vadd.f32 %v1906_v22, %v3919_v52 }
 0x5ce   : > { %v1935_v25 = vmul.f32 0.7978846, %v1919_v9  ;;  %v1920_v23 = vadd.f32 %v1904_v57, %v3924_v56 }
 0x5cf   : > { %2694 = vtanh.f32 %v1937_v62  ;;  %v1938_v44 = vmul.f32 0.7978846, %v1922_v61 }
 0x5d0   : > { %2696 = vtanh.f32 %v1935_v25  ;;  %v1936_v58 = vmul.f32 0.7978846, %v1920_v23 }
 0x5d1   : > { %2698 = vtanh.f32 %v1938_v44 }
 0x5d2   : > { %v2427_v26 = vpop.f32.mrb[20].mxu1  ;;  %2700 = vtanh.f32 %v1936_v58 }
 0x5d3   : > { %v3939_v39 = vadd.f32 %v2427_v26, %v3908_v30  ;;  %v1824_v63 = vpop.f32.mrb[21].mxu1 }
 0x5d4   : > { %v3942_v10 = vadd.f32 %v3908_v30, %v1824_v63  ;;  %v2428_v40 = vpop.f32.mrb[22].mxu1 }
 0x5d5   : > { %v1877_v31 = vmul.f32 %v3939_v39, %v3939_v39  ;;  %v3947_v46 = vadd.f32 %v2428_v40, %v3908_v30  ;;  %v1827_v34 = vpop.f32.mrb[23].mxu1 }
 0x5d6   : > { %v1875_v21 = vmul.f32 %v3942_v10, %v3942_v10  ;;  %v3952_v49 = vadd.f32 %v3908_v30, %v1827_v34 }
 0x5d7   : > { %v1893_v20 = vmul.f32 %v1877_v31, %v3939_v39  ;;  %v1878_v2 = vmul.f32 %v3947_v46, %v3947_v46 }
 0x5d8   : > { %v1891_v59 = vmul.f32 %v1875_v21, %v3942_v10  ;;  %v1876_v6 = vmul.f32 %v3952_v49, %v3952_v49 }
 0x5d9   : > { %v2695_v8 = vpop.eup %2694  ;;  %v1909_v43 = vmul.f32 0.044715, %v1893_v20  ;;  %v1894_v29 = vmul.f32 %v1878_v2, %v3947_v46 }
 0x5da   : > { %v2697_v12 = vpop.eup %2696  ;;  %v1969_v17 = vadd.f32 1.0, %v2695_v8  ;;  %v1907_v15 = vmul.f32 0.044715, %v1891_v59  ;;  %v1892_v37 = vmul.f32 %v1876_v6, %v3952_v49  ;;  %v2431_v5 = vpop.f32.mrb[24].mxu1 }
 0x5db   : > { %v2699_v47 = vpop.eup %2698  ;;  %v1925_v1 = vadd.f32 %v1909_v43, %v3939_v39  ;;  %v1910_v19 = vmul.f32 0.044715, %v1894_v29  ;;  %v3964_v35 = vadd.f32 %v2431_v5, %v3908_v30  ;;  %v1840_v7 = vpop.f32.mrb[25].mxu1  ;;  %v1967_v14 = vadd.f32 1.0, %v2697_v12 }
 0x5dc   : > { %v1985_v51 = vmul.f32 0.5, %v1969_v17  ;;  %v1970_v27 = vadd.f32 1.0, %v2699_v47  ;;  %v1923_v48 = vadd.f32 %v1907_v15, %v3942_v10  ;;  %v1908_v28 = vmul.f32 0.044715, %v1892_v37  ;;  %v2432_v33 = vpop.f32.mrb[26].mxu1  ;;  %v2701_v58 = vpop.eup %2700 }
 0x5dd   : > { %v1941_v0 = vmul.f32 0.7978846, %v1925_v1  ;;  %v1926_v22 = vadd.f32 %v1910_v19, %v3947_v46  ;;  %v1881_v9 = vmul.f32 %v3964_v35, %v3964_v35  ;;  %v3971_v57 = vadd.f32 %v3908_v30, %v1840_v7  ;;  %v1843_v62 = vpop.f32.mrb[27].mxu1 }
 0x5de   : > { %v3974_v61 = vmul.f32 %v1985_v51, %v3911_v53  ;;  %v1986_v25 = vmul.f32 0.5, %v1970_v27  ;;  %v1939_v23 = vmul.f32 0.7978846, %v1923_v48  ;;  %v1924_v44 = vadd.f32 %v1908_v28, %v3952_v49 }
 0x5df   : > { %2702 = vtanh.f32 %v1941_v0  ;;  %v1942_v26 = vmul.f32 0.7978846, %v1926_v22  ;;  %v1897_v63 = vmul.f32 %v1881_v9, %v3964_v35  ;;  %v1879_v40 = vmul.f32 %v3971_v57, %v3971_v57 }
 0x5e0   : > { %v3981_v31 = vmul.f32 %v1986_v25, %v3919_v52  ;;  %2704 = vtanh.f32 %v1939_v23  ;;  %v1940_v34 = vmul.f32 0.7978846, %v1924_v44  ;;  %v3984_v53 = vadd.f32 %v2432_v33, %v3908_v30 }
 0x5e1   : > { %2706 = vtanh.f32 %v1942_v26  ;;  %v1913_v21 = vmul.f32 0.044715, %v1897_v63  ;;  %v1895_v20 = vmul.f32 %v1879_v40, %v3971_v57  ;;  %v3988_v2 = vadd.f32 %v3908_v30, %v1843_v62 }
 0x5e2   : > { %v2016_v59 = vpack.c.bf16 %v3981_v31, %v3974_v61  ;;  %2708 = vtanh.f32 %v1940_v34  ;;  %v1882_v52 = vmul.f32 %v3984_v53, %v3984_v53  ;;  %v2435_v6 = vpop.f32.mrb[28].mxu1  ;;  %v1968_v8 = vadd.f32 1.0, %v2701_v58 }
 0x5e3   : > { %v1929_v43 = vadd.f32 %v1913_v21, %v3964_v35  ;;  %v1911_v29 = vmul.f32 0.044715, %v1895_v20  ;;  %v1880_v12 = vmul.f32 %v3988_v2, %v3988_v2  ;;  %v3998_v17 = vadd.f32 %v2435_v6, %v3908_v30  ;;  %v1856_v15 = vpop.f32.mrb[29].mxu1 }
 0x5e4   : > { %v1898_v37 = vmul.f32 %v1882_v52, %v3984_v53  ;;  %v4002_v5 = vadd.f32 %v3908_v30, %v1856_v15  ;;  %v2436_v47 = vpop.f32.mrb[30].mxu1  ;;  %v1983_v1 = vmul.f32 0.5, %v1967_v14  ;;  %v1984_v19 = vmul.f32 0.5, %v1968_v8 }
 0x5e5   : > { %v1945_v7 = vmul.f32 0.7978846, %v1929_v43  ;;  %v1927_v51 = vadd.f32 %v1911_v29, %v3971_v57  ;;  %v1896_v27 = vmul.f32 %v1880_v12, %v3988_v2  ;;  %v1885_v48 = vmul.f32 %v3998_v17, %v3998_v17  ;;  %v1859_v28 = vpop.f32.mrb[31].mxu1 }
 0x5e6   : > { %v1914_v33 = vmul.f32 0.044715, %v1898_v37  ;;  %v1883_v0 = vmul.f32 %v4002_v5, %v4002_v5  ;;  %v4011_v22 = vadd.f32 %v2436_v47, %v3908_v30  ;;  %v4014_v9 = vadd.f32 %v3908_v30, %v1859_v28 }
 0x5e7   : > { %2710 = vtanh.f32 %v1945_v7  ;;  %v1943_v14 = vmul.f32 0.7978846, %v1927_v51  ;;  %v1912_v62 = vmul.f32 0.044715, %v1896_v27  ;;  %v1901_v25 = vmul.f32 %v1885_v48, %v3998_v17 }
 0x5e8   : > { %v1930_v23 = vadd.f32 %v1914_v33, %v3984_v53  ;;  %v1899_v44 = vmul.f32 %v1883_v0, %v4002_v5  ;;  %v1886_v58 = vmul.f32 %v4011_v22, %v4011_v22  ;;  %v1884_v26 = vmul.f32 %v4014_v9, %v4014_v9 }
 0x5e9   : > { %v2703_v63 = vpop.eup %2702  ;;  %2712 = vtanh.f32 %v1943_v14  ;;  %v1928_v30 = vadd.f32 %v1912_v62, %v3988_v2  ;;  %v1917_v40 = vmul.f32 0.044715, %v1901_v25  ;;  %v1999_v34 = vmul.f32 %v1983_v1, %v3914_v60 }
 0x5ea   : > { %v2705_v21 = vpop.eup %2704  ;;  %v1946_v20 = vmul.f32 0.7978846, %v1930_v23  ;;  %v1915_v52 = vmul.f32 0.044715, %v1899_v44  ;;  %v1902_v6 = vmul.f32 %v1886_v58, %v4011_v22  ;;  %v1900_v8 = vmul.f32 %v1884_v26, %v4014_v9 }
 0x5eb   : > { %v2707_v43 = vpop.eup %2706  ;;  %v1944_v29 = vmul.f32 0.7978846, %v1928_v30  ;;  %v1933_v12 = vadd.f32 %v1917_v40, %v3998_v17  ;;  %v2000_v15 = vmul.f32 %v1984_v19, %v3924_v56  ;;  %v1971_v37 = vadd.f32 1.0, %v2705_v21 }
 0x5ec   : > { %v2709_v47 = vpop.eup %2708  ;;  %2714 = vtanh.f32 %v1946_v20  ;;  %v1931_v7 = vadd.f32 %v1915_v52, %v4002_v5  ;;  %v1918_v51 = vmul.f32 0.044715, %v1902_v6  ;;  %v1916_v60 = vmul.f32 0.044715, %v1900_v8 }
 0x5ed   : > { %2716 = vtanh.f32 %v1944_v29  ;;  %v1949_v1 = vmul.f32 0.7978846, %v1933_v12  ;;  %v2015_v27 = vpack.c.bf16 %v2000_v15, %v1999_v34  ;;  %v1972_v48 = vadd.f32 1.0, %v2709_v47 }
 0x5ee   : > { %v1947_v28 = vmul.f32 0.7978846, %v1931_v7  ;;  %v1934_v33 = vadd.f32 %v1918_v51, %v4011_v22  ;;  %v1932_v0 = vadd.f32 %v1916_v60, %v4014_v9  ;;  %v1987_v14 = vmul.f32 0.5, %v1971_v37 }
 0x5ef   : > { %2718 = vtanh.f32 %v1949_v1  ;;  %2453 = vmatprep.mubr.bf16.mxu0 %v2015_v27  ;;  %v1988_v56 = vmul.f32 0.5, %v1972_v48  ;;  %v1973_v19 = vadd.f32 1.0, %v2703_v63  ;;  %v1974_v62 = vadd.f32 1.0, %v2707_v43 }
 0x5f0   : > { %2720 = vtanh.f32 %v1947_v28  ;;  %v1950_v25 = vmul.f32 0.7978846, %v1934_v33  ;;  %v1948_v23 = vmul.f32 0.7978846, %v1932_v0  ;;  %2454 = vmatmul.mubr.bf16.vlgmr.msra.gmra.mrb[32].mxu0 %v2016_v59  ;;  %v2003_v58 = vmul.f32 %v1987_v14, %v3942_v10 }
 0x5f1   : > { %v2711_v44 = vpop.eup %2710  ;;  %v2004_v26 = vmul.f32 %v1988_v56, %v3952_v49  ;;  %v1989_v30 = vmul.f32 0.5, %v1973_v19  ;;  %v1990_v40 = vmul.f32 0.5, %v1974_v62 }
 0x5f2   : > { %2722 = vtanh.f32 %v1950_v25  ;;  %v1977_v34 = vadd.f32 1.0, %v2711_v44  ;;  %v2354_v44 = vld [vmem:[%s4148_s12] ss:$0 sm:$0xff] }
 0x5f3   : > { %v2713_v21 = vpop.eup %2712  ;;  %2724 = vtanh.f32 %v1948_v23  ;;  %v2017_v63 = vpack.c.bf16 %v2004_v26, %v2003_v58  ;;  %v2005_v20 = vmul.f32 %v1989_v30, %v3939_v39  ;;  %v2006_v52 = vmul.f32 %v1990_v40, %v3947_v46 }
 0x5f4   : > { %v1975_v6 = vadd.f32 1.0, %v2713_v21  ;;  %v1993_v10 = vmul.f32 0.5, %v1977_v34 }
 0x5f5   : > { %2457 = vmatprep.mubr.bf16.mxu0 %v2017_v63  ;;  %v2018_v61 = vpack.c.bf16 %v2006_v52, %v2005_v20 }
 0x5f6   : > { %v2715_v31 = vpop.eup %2714  ;;  %v1991_v43 = vmul.f32 0.5, %v1975_v6  ;;  %v2009_v7 = vmul.f32 %v1993_v10, %v3964_v35 }
 0x5f7   : > { %v2717_v59 = vpop.eup %2716  ;;  %v1978_v8 = vadd.f32 1.0, %v2715_v31 }
 0x5f8   : > { %2458 = vmatmul.mubr.bf16.gmra.mrb[36].mxu0 %v2018_v61  ;;  %v1976_v49 = vadd.f32 1.0, %v2717_v59  ;;  %v2007_v60 = vmul.f32 %v1991_v43, %v3971_v57 }
 0x5f9   : > { %v2719_v29 = vpop.eup %2718  ;;  %v1994_v12 = vmul.f32 0.5, %v1978_v8 }
 0x5fa   : > { %v2721_v15 = vpop.eup %2720  ;;  %v1981_v37 = vadd.f32 1.0, %v2719_v29  ;;  %v1992_v47 = vmul.f32 0.5, %v1976_v49 }
 0x5fb   : > { %v2010_v39 = vmul.f32 %v1994_v12, %v3984_v53  ;;  %v1979_v46 = vadd.f32 1.0, %v2721_v15 }
 0x5fc   : > { %v2723_v51 = vpop.eup %2722  ;;  %v2008_v1 = vmul.f32 %v1992_v47, %v3988_v2  ;;  %v1997_v48 = vmul.f32 0.5, %v1981_v37 }
 0x5fd   : > { %v2725_v27 = vpop.eup %2724  ;;  %v1982_v28 = vadd.f32 1.0, %v2723_v51  ;;  %v2020_v33 = vpack.c.bf16 %v2010_v39, %v2009_v7  ;;  %v1995_v56 = vmul.f32 0.5, %v1979_v46 }
 0x5fe   : > { %v2019_v0 = vpack.c.bf16 %v2008_v1, %v2007_v60  ;;  %v1980_v14 = vadd.f32 1.0, %v2725_v27  ;;  %v2013_v35 = vmul.f32 %v1997_v48, %v3998_v17 }
 0x5ff   : > { %v1998_v19 = vmul.f32 0.5, %v1982_v28  ;;  %v2011_v25 = vmul.f32 %v1995_v56, %v4002_v5 }
 0x600   : > { %2461 = vmatprep.mubr.bf16.mxu0 %v2019_v0  ;;  %v1996_v62 = vmul.f32 0.5, %v1980_v14 }
 0x601   : > { %v2014_v53 = vmul.f32 %v1998_v19, %v4011_v22  ;;  %2462 = vmatmul.mubr.bf16.gmra.mrb[40].mxu0 %v2020_v33 }
 0x602   : > { %v2012_v57 = vmul.f32 %v1996_v62, %v4014_v9 }
 0x603   : > { %v2022_v2 = vpack.c.bf16 %v2014_v53, %v2013_v35 }
 0x604   : > { %v2021_v23 = vpack.c.bf16 %v2012_v57, %v2011_v25 }
 0x606   : > { %2465 = vmatprep.mubr.bf16.mxu1 %v2021_v23 }
 0x607   : > { %2466 = vmatmul.mubr.bf16.vlgmr.msra.gmra.mrb[32].mxu1 %v2022_v2 }
 0x6c3   : > { %v2455_v58 = vpop.f32.mrb[32].mxu0 }
 0x6c4   : > { %v2137_v26 = vadd.f32 %v2455_v58, %v2354_v44  ;;  %v2128_v30 = vpop.f32.mrb[33].mxu0 }
 0x6c5   : > { %v2129_v17 = vadd.f32 %v2354_v44, %v2128_v30  ;;  %v2456_v40 = vpop.f32.mrb[34].mxu0 }
 0x6c6   : > { %v2193_v22 = vadd.f32 %v2137_v26, %v3652_v32  ;;  %v2140_v34 = vadd.f32 %v2456_v40, %v2354_v44  ;;  %v2131_v5 = vpop.f32.mrb[35].mxu0 }
 0x6c7   : > { %v2191_v9 = vadd.f32 %v2129_v17, %v3644_v50  ;;  %v2132_v21 = vadd.f32 %v2354_v44, %v2131_v5 }
 0x6c8   : > { %2209 = vst [vmem:[%s4054_s15 + $0x10] sm:$0xff] %v2193_v22  ;;  %v2194_v63 = vadd.f32 %v2140_v34, %v3655_v11 }
 0x6c9   : > { %2207 = vst [vmem:[%s4054_s15] sm:$0xff] %v2191_v9  ;;  %v2192_v32 = vadd.f32 %v2132_v21, %v3647_v36 }
 0x6ca   : > { %2210 = vst [vmem:[%s4054_s15 + $0x18] sm:$0xff] %v2194_v63 }
 0x6cb   : > { %2208 = vst [vmem:[%s4054_s15 + $0x8] sm:$0xff] %v2192_v32  ;;  %v2459_v50 = vpop.f32.mrb[36].mxu0 }
 0x6cc   : > { %v2153_v20 = vadd.f32 %v2459_v50, %v2354_v44  ;;  %v2144_v52 = vpop.f32.mrb[37].mxu0 }
 0x6cd   : > { %v2145_v6 = vadd.f32 %v2354_v44, %v2144_v52  ;;  %v2460_v61 = vpop.f32.mrb[38].mxu0 }
 0x6ce   : > { %v2197_v31 = vadd.f32 %v2153_v20, %v3668_v16  ;;  %v2156_v59 = vadd.f32 %v2460_v61, %v2354_v44  ;;  %v2147_v8 = vpop.f32.mrb[39].mxu0 }
 0x6cf   : > { %v2195_v10 = vadd.f32 %v2145_v6, %v3660_v3  ;;  %v2148_v11 = vadd.f32 %v2354_v44, %v2147_v8 }
 0x6d0   : > { %2213 = vst [vmem:[%s4054_s15 + $0x30] sm:$0xff] %v2197_v31  ;;  %v2198_v36 = vadd.f32 %v2156_v59, %v3671_v54 }
 0x6d1   : > { %2211 = vst [vmem:[%s4054_s15 + $0x20] sm:$0xff] %v2195_v10  ;;  %v2196_v49 = vadd.f32 %v2148_v11, %v3663_v24 }
 0x6d2   : > { %2214 = vst [vmem:[%s4054_s15 + $0x38] sm:$0xff] %v2198_v36 }
 0x6d3   : > { %2212 = vst [vmem:[%s4054_s15 + $0x28] sm:$0xff] %v2196_v49 }
 0x6d4   : > { %v2463_v43 = vpop.f32.mrb[40].mxu0 }
 0x6d5   : > { %v2169_v29 = vadd.f32 %v2463_v43, %v2354_v44  ;;  %v2160_v12 = vpop.f32.mrb[41].mxu0 }
 0x6d6   : > { %v2161_v16 = vadd.f32 %v2354_v44, %v2160_v12  ;;  %v2464_v15 = vpop.f32.mrb[42].mxu0 }
 0x6d7   : > { %v2201_v3 = vadd.f32 %v2169_v29, %v3683_v41  ;;  %v2172_v37 = vadd.f32 %v2464_v15, %v2354_v44  ;;  %v2163_v47 = vpop.f32.mrb[43].mxu0 }
 0x6d8   : > { %v2199_v54 = vadd.f32 %v2161_v16, %v3675_v13  ;;  %v2164_v7 = vadd.f32 %v2354_v44, %v2163_v47 }
 0x6d9   : > { %2217 = vst [vmem:[%s4054_s15 + $0x50] sm:$0xff] %v2201_v3  ;;  %v2202_v24 = vadd.f32 %v2172_v37, %v3687_v38 }
 0x6da   : > { %2215 = vst [vmem:[%s4054_s15 + $0x40] sm:$0xff] %v2199_v54  ;;  %v2200_v39 = vadd.f32 %v2164_v7, %v3679_v55  ;;  %v2467_v46 = vpop.f32.mrb[32].mxu1 }
 0x6db   : > { %2218 = vst [vmem:[%s4054_s15 + $0x58] sm:$0xff] %v2202_v24  ;;  %v2185_v51 = vadd.f32 %v2467_v46, %v2354_v44  ;;  %v2176_v60 = vpop.f32.mrb[33].mxu1 }
 0x6dc   : > { %2216 = vst [vmem:[%s4054_s15 + $0x48] sm:$0xff] %v2200_v39  ;;  %v2177_v41 = vadd.f32 %v2354_v44, %v2176_v60  ;;  %v2468_v1 = vpop.f32.mrb[34].mxu1 }
 0x6dd   : > { %v2205_v13 = vadd.f32 %v2185_v51, %v3699_v42  ;;  %v2188_v38 = vadd.f32 %v2468_v1, %v2354_v44  ;;  %v2179_v27 = vpop.f32.mrb[35].mxu1 }
 0x6de   : > { %v2203_v55 = vadd.f32 %v2177_v41, %v3691_v45  ;;  %v2180_v48 = vadd.f32 %v2354_v44, %v2179_v27 }
 0x6df   : > { %2221 = vst [vmem:[%s4054_s15 + $0x70] sm:$0xff] %v2205_v13  ;;  %v2206_v28 = vadd.f32 %v2188_v38, %v3703_v18 }
 0x6e0   : > { %2219 = vst [vmem:[%s4054_s15 + $0x60] sm:$0xff] %v2203_v55  ;;  %v2204_v42 = vadd.f32 %v2180_v48, %v3695_v4 }
 0x6e1   : > { %2222 = vst [vmem:[%s4054_s15 + $0x78] sm:$0xff] %v2206_v28 }
 0x6e2   : > { %2220 = vst [vmem:[%s4054_s15 + $0x68] sm:$0xff] %v2204_v42 }
 0x6e3   : > { %2769 = shalt.err (!%p2766_p1)
}
 0x6e4   : > { %s2770_s16 = scalar_lea.hbm %s4087_s25, 2048  ;;  %s2774_s23 = scalar_lea.hbm %s4149_s13, 8192 }
 0x6e5   : > { %p2771_p3 = scmp.ne.s32.totalorder %s4087_s25, %s2770_s16  ;;  %p2775_p0 = scmp.lt.u32.totalorder %s4087_s25, %s4149_s13 }
 0x6e6   : > { %p2776_p2 = scmp.lt.u32.totalorder %s2774_s23, %s2770_s16  ;;  %p2778_p6 = scmp.lt.u32.totalorder %s2770_s16, %s4087_s25 }
 0x6e7   : > { %p2772_p4 = pnand %p2771_p3, %p4185_p10 }
 0x6e8   : > { %p2777_p7 = por %p2776_p2, %p2775_p0 }
 0x6e9   : > { %p2773_p5 = pneg %p2772_p4 }
 0x6ea   : > { %p2779_p11 = por %p2778_p6, %p2777_p7 }
 0x6ec   : > { %p2780_p12 = pnand %p2779_p11, %p2773_p5 }
 0x6ee   : > { %2783 = shalt.err (!%p2780_p12)
}
 0x6ef   : > { %s2829_s27 = smov 128   ;;  %s2830_s17 = smov 8  }
 0x6f0   : > { %2487 = dma.vmem_to_hbm [thread:$0]  (%p4185_p10), %s4089_s24, 2048, %s4087_s25, %s2224_s29, %s2829_s27, %s2829_s27, %s2830_s17  }
 0x6f1 PF: > { %s4186_s19 = sld [smem:[#allocation8_spill]]  ;;  %p2498_p8 = scmp.ge.s32.totalorder %s2822_s28, 2 }
 0x6f2   : > { %p4187_p9 = scmp.ne.s32.totalorder %s4170_s21, 0 }
 0x6f4   : > { %p2494_p13 = pnand %p2498_p8, %p4187_p9 }
 0x6f7   : > { %s2253_s15 = sand.u32 1, %s4186_s19  }
 0x6f8   : > { %s2254_s16 = scalar_lea.sflag [#allocation4], %s2253_s15 }
 0x6f9   : > { %2805 = dma.done.wait (!%p2494_p13), %s2254_s16, 2048  }
 0x6fa   : > { %2807 = vsyncadd (!%p2494_p13), %s2254_s16, 4294965248  ;;  %s4188_s28 = sld [smem:[#allocation10_spill]]  ;;  %s4189_s22 = sld [smem:[#allocation9_spill]] }
 0x6fb   : > { %s4190_s27 = sld [smem:[#allocation11_spill]]  ;;  %s4191_s25 = smov %s2814_s26 }
 0x700   : > { %p26_p1 = scmp.ge.s32.totalorder %s4188_s28, 6   ;;  %s4192_s26 = smov %s4189_s22 }
 0x702   :  { %28 = sbr.rel (!%p26_p1) target bundleno = 5 (0x5), region = 117 }
 0x709   :  { %2259 = vsyncpa [#allocation3], 1 }
 0x70a   :  { %2261 = vsyncpa [#allocation3 + $0x1], 1 }
 0x70b   :  { %2262 = vsyncpa [#allocation4], 1 }
 0x70c   :  { %2264 = vsyncpa [#allocation4 + $0x1], 1 }

// kernel: tpu_custom_call.1
= control target key start
LH: loop header
LB: loop body
LE: loop exit
PB: predicated region body
PF: predicated region fallthrough
CT: control target
= control target key end

     0   :  { %18 = vsyncpa [#allocation3], 0  ;;  %s4136_s0 = inlined_call_operand.hbm [shape: f32[8,64,128], index: 0, kind: input, shape index: {}]   ;;  %s4137_s1 = inlined_call_operand.vmem [shape: f32[1,128], index: 1, kind: input, shape index: {}]   ;;  %s4138_s2 = inlined_call_operand.vmem [shape: f32[1,128], index: 2, kind: input, shape index: {}]   ;;  %s4139_s3 = inlined_call_operand.vmem [shape: f32[1,128], index: 3, kind: input, shape index: {}]   ;;  %s4140_s4 = inlined_call_operand.vmem [shape: f32[1,128], index: 4, kind: input, shape index: {}]   ;;  %s4141_s5 = inlined_call_operand.vmem [shape: bf16[128,64], index: 5, kind: input, shape index: {}]   ;;  %s4142_s6 = inlined_call_operand.vmem [shape: f32[128,1], index: 6, kind: input, shape index: {}]   ;;  %s4143_s7 = inlined_call_operand.vmem [shape: bf16[64,128], index: 7, kind: input, shape index: {}]   ;;  %s4144_s8 = inlined_call_operand.vmem [shape: f32[64,1], index: 8, kind: input, shape index: {}]   ;;  %s4145_s9 = inlined_call_operand.vmem [shape: bf16[128,128], index: 9, kind: input, shape index: {}]   ;;  %s4146_s10 = inlined_call_operand.vmem [shape: f32[1,128], index: 10, kind: input, shape index: {}]   ;;  %s4147_s11 = inlined_call_operand.vmem [shape: bf16[128,128], index: 11, kind: input, shape index: {}]   ;;  %s4148_s12 = inlined_call_operand.vmem [shape: f32[1,128], index: 12, kind: input, shape index: {}]   ;;  %s4149_s13 = inlined_call_operand.hbm [shape: f32[8,64,128], index: 13, kind: output, shape index: {}]  }
   0x1   :  { %20 = vsyncpa [#allocation3 + $0x1], 0 }
   0x2   :  { %21 = vsyncpa [#allocation4], 0 }
   0x3   :  { %23 = vsyncpa [#allocation4 + $0x1], 0  ;;  %s2901_s25 = smov 0   ;;  %s2903_s26 = smov 0  }
   0x4   :  { %s2905_s27 = smov 0   ;;  %s2907_s28 = smov 0  }
   0x5 LB: > { %4163 = sst [smem:[#allocation8_spill]] %s2810_s25  ;;  %s2922_s29 = sadd.s32 4294967295, %s2822_s28   ;;  %s2822_s28 = sphi %s2907_s28, %s4188_s28   ;;  %s2818_s27 = sphi %s2905_s27, %s4190_s27   ;;  %s2814_s26 = sphi %s2903_s26, %s4192_s26   ;;  %s2810_s25 = sphi %s2901_s25, %s4191_s25  }
   0x6   : > { %4164 = sst [smem:[#allocation9_spill]] %s2818_s27  ;;  %s2311_s30 = sadd.s32 4294967294, %s2822_s28  }
   0x7   : > { %s2926_s14 = sadd.s32 1, %s2822_s28   ;;  %s36_s15 = sadd.s32 1, %s2818_s27 }
   0x8   : > { %4165 = sst [smem:[#allocation10_spill]] %s2926_s14  ;;  %s33_s16 = ssub.s32 %s2822_s28, %s2926_s14 }
   0x9   : > { %p43_p0 = scmp.ne.s32.totalorder %s2818_s27, %s2814_s26  ;;  %p34_p1 = scmp.eq.s32.totalorder %s33_s16, 0 }
   0xa   : > { %p44_p2 = scmp.eq.s32.totalorder %s2822_s28, 0  ;;  %p49_p3 = scmp.ne.s32.totalorder %s2814_s26, %s2810_s25 }
   0xb   : > { %p50_p4 = scmp.eq.s32.totalorder %s2922_s29, 0  ;;  %p325_p7 = scmp.eq.s32.totalorder %s2922_s29, 3 }
   0xc   : > { %s2938_s17 = scalar_select %p34_p1, %s2818_s27, %s36_s15  }
   0xd   : > { %p2940_p5 = por %p44_p2, %p43_p0  ;;  %p2944_p6 = por %p50_p4, %p49_p3 }
   0xe   : > { %4166 = sst [smem:[#allocation11_spill]] %s2938_s17  ;;  %p331_p8 = scmp.eq.s32.totalorder %s2311_s30, 3 }
   0xf   : > { %p2497_p9 = scmp.lt.s32.totalorder %s2822_s28, 4  ;;  %p2950_p10 = por %p325_p7, %p43_p0 }
  0x10   : > { %p2954_p11 = por %p331_p8, %p49_p3  ;;  %s387_s22 = sand.u32 1, %s2818_s27  }
  0x11   : > { %s4169_s20 = scalar_select %p2950_p10, 1, 0 }
  0x12   : > { %s4170_s21 = scalar_select %p2954_p11, 1, 0 }
  0x13   : > { %s2370_s23 = sshll.u32 %s2822_s28, 11  ;;  %s2314_s24 = sshll.u32 %s387_s22, 7 }
  0x14   : > { %s2963_s17 = scalar_lea.hbm %s4136_s0, %s2370_s23  ;;  %s391_s30 = scalar_lea.vmem [#allocation2], %s2314_s24 }
  0x15   : > { %s399_s14 = sshll.u32 %s391_s30, 4  ;;  %p2967_p12 = pnand %p2497_p9, %p2940_p5  ;;  %s2971_s14 = int_to_ptr.vmem [resolvable:$true] %s399_s14 }
  0x16   : > { %s2973_s27 = scalar_lea.sflag [#allocation3], %s387_s22  ;;  %s2726_s15 = scalar_lea.hbm %s2963_s17, 2048 }
  0x17   : > { %p2727_p13 = scmp.ne.s32.totalorder %s2963_s17, %s2726_s15  ;;  %p2728_p0 = pneg %p2967_p12 }
  0x18   : > { %s2731_s24 = scalar_lea.hbm %s4136_s0, 8192  ;;  %p2732_p3 = scmp.lt.u32.totalorder %s2963_s17, %s4136_s0 }
  0x19   : > { %p2729_p1 = pnand %p2728_p0, %p2727_p13  ;;  %p2733_p4 = scmp.lt.u32.totalorder %s2731_s24, %s2726_s15 }
  0x1a   : > { %p2735_p7 = scmp.lt.u32.totalorder %s2726_s15, %s2963_s17 }
  0x1b   : > { %p2730_p2 = pneg %p2729_p1  ;;  %p2734_p5 = por %p2733_p4, %p2732_p3 }
  0x1d   : > { %p2736_p8 = por %p2735_p7, %p2734_p5 }
  0x1f   : > { %p2737_p9 = pnand %p2736_p8, %p2730_p2 }
  0x21   : > { %2740 = shalt.err (!%p2737_p9)
}
  0x22   : > { %s2741_s22 = scalar_lea.vmem %s2971_s14, 2048  ;;  %s2824_s23 = smov [#allocation2]  }
  0x23   : > { %p2742_p13 = scmp.ne.s32.totalorder %s2971_s14, %s2741_s22  ;;  %s2746_s18 = sshll.u32 %s2824_s23, 4  ;;  %s2747_s18 = int_to_ptr.vmem [resolvable:$false] %s2746_s18 }
  0x24   : > { %s2748_s16 = scalar_lea.vmem %s2747_s18, 4096  ;;  %p2749_p10 = scmp.lt.s32.totalorder %s2971_s14, %s2747_s18 }
  0x25   : > { %p2744_p1 = pnand %p2742_p13, %p2728_p0  ;;  %p2750_p3 = scmp.lt.s32.totalorder %s2748_s16, %s2741_s22 }
  0x27   : > { %p2745_p11 = pneg %p2744_p1  ;;  %p2751_p4 = por %p2750_p3, %p2749_p10 }
  0x29   : > { %p2752_p5 = pnand %p2751_p4, %p2745_p11 }
  0x2b   : > { %2755 = shalt.err (!%p2752_p5)
}
  0x2c   : > { %s2825_s15 = smov 128   ;;  %s2826_s24 = smov 8  }
  0x2d   : > { %2492 = dma.hbm_to_vmem [thread:$0]  (!%p2967_p12), %s2963_s17, 2048, %s2971_s14, %s2973_s27, %s2825_s15, %s2825_s15, %s2826_s24  }
  0x2e   : > { %p2318_p0 = scmp.ge.s32.totalorder %s2822_s28, 1  ;;  %p407_p2 = scmp.lt.s32.totalorder %s2822_s28, 5 }
  0x30   : > { %p408_p7 = pnand %p2318_p0, %p407_p2 }
  0x32   : > { %411 = sbr.rel (%p408_p7) target bundleno = 1777 (0x6f1), region = 72 }
  0x39   : > { %s3004_s30 = sand.u32 1, %s2814_s26  }
  0x3a   : > { %s2319_s22 = sshll.u32 %s3004_s30, 7  ;;  %s414_s23 = scalar_lea.sflag [#allocation3], %s3004_s30 }
  0x3b   : > { %s3010_s18 = scalar_lea.vmem [#allocation2], %s2319_s22 }
  0x3c   : > { %2801 = dma.done.wait (%p2944_p6), %s414_s23, 2048  }
  0x3d   : > { %2803 = vsyncadd (%p2944_p6), %s414_s23, 4294965248  ;;  %v471_v0 = vld [vmem:[%s3010_s18 + $0x40] sm:$0xff]  ;;  %v472_v2 = vld [vmem:[%s3010_s18 + $0x48] sm:$0xff]  ;;  %vm862_vm0 = vcmask 523264   ;;  %s4054_s15 = scalar_lea.vmem [#allocation5], %s2319_s22  ;;  %s2372_s22 = sshll.u32 %s2922_s29, 11 }
  0x3e   : > { %v463_v1 = vld [vmem:[%s3010_s18] sm:$0xff]  ;;  %497 = vadd.xlane.f32.xlu0 %v471_v0  ;;  %v464_v3 = vld [vmem:[%s3010_s18 + $0x8] sm:$0xff]  ;;  %v473_v4 = vld [vmem:[%s3010_s18 + $0x50] sm:$0xff]  ;;  %s2238_s24 = sshll.u32 %s4054_s15, 4  ;;  %s4087_s25 = scalar_lea.hbm %s4149_s13, %s2372_s22  ;;  %s4089_s24 = int_to_ptr.vmem [resolvable:$true] %s2238_s24 }
  0x3f   : > { %481 = vadd.xlane.f32.xlu1 %v463_v1  ;;  %v474_v5 = vld [vmem:[%s3010_s18 + $0x58] sm:$0xff]  ;;  %v465_v6 = vld [vmem:[%s3010_s18 + $0x10] sm:$0xff]  ;;  %v475_v8 = vld [vmem:[%s3010_s18 + $0x60] sm:$0xff]  ;;  %s2224_s29 = scalar_lea.sflag [#allocation4], %s3004_s30  ;;  %s2756_s27 = scalar_lea.vmem %s4089_s24, 2048 }
  0x40   : > { %v466_v7 = vld [vmem:[%s3010_s18 + $0x18] sm:$0xff]  ;;  %v476_v9 = vld [vmem:[%s3010_s18 + $0x68] sm:$0xff]  ;;  %v3027_v10 = vld [vmem:[%s3010_s18 + $0x20] sm:$0xff]  ;;  %p2757_p6 = scmp.ne.s32.totalorder %s4089_s24, %s2756_s27  ;;  %p4185_p10 = scmp.ne.s32.totalorder %s4169_s20, 0 }
  0x41   : > { %v3030_v11 = vld [vmem:[%s3010_s18 + $0x28] sm:$0xff]  ;;  %v3033_v12 = vld [vmem:[%s3010_s18 + $0x70] sm:$0xff]  ;;  %v3036_v13 = vld [vmem:[%s3010_s18 + $0x78] sm:$0xff]  ;;  %s2828_s14 = smov [#allocation5]  }
  0x42   : > { %499 = vadd.xlane.f32.xlu0 %v472_v2  ;;  %v3043_v14 = vld [vmem:[%s3010_s18 + $0x30] sm:$0xff]  ;;  %v3046_v15 = vld [vmem:[%s3010_s18 + $0x38] sm:$0xff]  ;;  %p2758_p11 = pnand %p2757_p6, %p4185_p10  ;;  %s2760_s17 = sshll.u32 %s2828_s14, 4  ;;  %s2761_s17 = int_to_ptr.vmem [resolvable:$false] %s2760_s17 }
  0x43   : > { %483 = vadd.xlane.f32.xlu1 %v464_v3  ;;  %s2762_s19 = scalar_lea.vmem %s2761_s17, 4096  ;;  %p2763_p8 = scmp.lt.s32.totalorder %s4089_s24, %s2761_s17 }
  0x44   : > { %p2759_p12 = pneg %p2758_p11  ;;  %p2764_p9 = scmp.lt.s32.totalorder %s2762_s19, %s2756_s27 }
  0x46   : > { %501 = vadd.xlane.f32.xlu0 %v473_v4  ;;  %p2765_p13 = por %p2764_p9, %p2763_p8 }
  0x47   : > { %503 = vadd.xlane.f32.xlu1 %v474_v5 }
  0x48   : > { %p2766_p1 = pnand %p2765_p13, %p2759_p12 }
  0x4a   : > { %485 = vadd.xlane.f32.xlu0 %v465_v6 }
  0x4b   : > { %487 = vadd.xlane.f32.xlu1 %v466_v7 }
  0x4e   : > { %505 = vadd.xlane.f32.xlu0 %v475_v8 }
  0x4f   : > { %507 = vadd.xlane.f32.xlu1 %v476_v9 }
  0x52   : > { %489 = vadd.xlane.f32.xlu0 %v3027_v10 }
  0x53   : > { %491 = vadd.xlane.f32.xlu1 %v3030_v11 }
  0x56   : > { %509 = vadd.xlane.f32.xlu0 %v3033_v12 }
  0x57   : > { %511 = vadd.xlane.f32.xlu1 %v3036_v13 }
  0x5a   : > { %493 = vadd.xlane.f32.xlu0 %v3043_v14 }
  0x5b   : > { %495 = vadd.xlane.f32.xlu1 %v3046_v15 }
  0xcb   : > { %v498_v16 = vpop.xlane.xlu0 %497 }
  0xcc   : > { %v482_v17 = vpop.xlane.xlu1 %481  ;;  %v522_v18 = vmul.f32 0.0078125, %v498_v16 }
  0xcd   : > { %v514_v19 = vmul.f32 0.0078125, %v482_v17 }
  0xce   : > { %v3050_v20 = vsub.f32 %v471_v0, %v522_v18  ;;  %v4155_v18 = vmov 0  }
  0xcf   : > { %v3052_v21 = vsub.f32 %v463_v1, %v514_v19  ;;  %v500_v22 = vpop.xlane.xlu0 %499  ;;  %919 = vmatprep.mubr.bf16.mxu0 %v4155_v18  ;;  %2537 = vset.pattern.permute.xlu1 %v4155_v18  ;;  %v729_v19 = vld [vmem:[%s4142_s6 + $0x18] sm:$0xff] }
  0xd0   : > { %v484_v23 = vpop.xlane.xlu1 %483  ;;  %v523_v24 = vmul.f32 0.0078125, %v500_v22  ;;  %v554_v25 = vmul.f32 %v3050_v20, %v3050_v20  ;;  %2536 = vset.pattern.permute.xlu0 %v4155_v18  ;;  %1416 = vmatprep.mubr.bf16.mxu1 %v4155_v18  ;;  %v730_v22 = vld [vmem:[%s4142_s6 + $0x20] sm:$0xff] }
  0xd1   : > { %v515_v26 = vmul.f32 0.0078125, %v484_v23  ;;  %v546_v29 = vmul.f32 %v3052_v21, %v3052_v21  ;;  %v731_v23 = vld [vmem:[%s4142_s6 + $0x28] sm:$0xff] }
  0xd2   : > { %v3056_v27 = vsub.f32 %v472_v2, %v523_v24  ;;  %578 = vadd.xlane.f32.xlu0 %v554_v25  ;;  %v726_v24 = vld [vmem:[%s4142_s6] sm:$0xff]  ;;  %v735_v25 = vld [vmem:[%s4142_s6 + $0x48] sm:$0xff] }
  0xd3   : > { %v3058_v28 = vsub.f32 %v464_v3, %v515_v26  ;;  %v502_v30 = vpop.xlane.xlu0 %501  ;;  %v732_v26 = vld [vmem:[%s4142_s6 + $0x30] sm:$0xff] }
  0xd4   : > { %v504_v31 = vpop.xlane.xlu1 %503  ;;  %v524_v32 = vmul.f32 0.0078125, %v502_v30  ;;  %v555_v33 = vmul.f32 %v3056_v27, %v3056_v27  ;;  %v733_v30 = vld [vmem:[%s4142_s6 + $0x38] sm:$0xff] }
  0xd5   : > { %v525_v34 = vmul.f32 0.0078125, %v504_v31  ;;  %v547_v37 = vmul.f32 %v3058_v28, %v3058_v28  ;;  %v739_v31 = vld [vmem:[%s4142_s6 + $0x68] sm:$0xff] }
  0xd6   : > { %v3064_v35 = vsub.f32 %v473_v4, %v524_v32  ;;  %580 = vadd.xlane.f32.xlu1 %v555_v33  ;;  %562 = vadd.xlane.f32.xlu0 %v546_v29  ;;  %v737_v29 = vld [vmem:[%s4142_s6 + $0x58] sm:$0xff] }
  0xd7   : > { %v3066_v36 = vsub.f32 %v474_v5, %v525_v34  ;;  %v486_v38 = vpop.xlane.xlu0 %485  ;;  %v734_v34 = vld [vmem:[%s4142_s6 + $0x40] sm:$0xff] }
  0xd8   : > { %v488_v39 = vpop.xlane.xlu1 %487  ;;  %v516_v40 = vmul.f32 0.0078125, %v486_v38  ;;  %v556_v41 = vmul.f32 %v3064_v35, %v3064_v35  ;;  %v741_v38 = vld [vmem:[%s4142_s6 + $0x78] sm:$0xff] }
  0xd9   : > { %v517_v42 = vmul.f32 0.0078125, %v488_v39  ;;  %v557_v45 = vmul.f32 %v3066_v36, %v3066_v36 }
  0xda   : > { %v3072_v43 = vsub.f32 %v465_v6, %v516_v40  ;;  %582 = vadd.xlane.f32.xlu0 %v556_v41  ;;  %564 = vadd.xlane.f32.xlu1 %v547_v37 }
  0xdb   : > { %v3074_v44 = vsub.f32 %v466_v7, %v517_v42  ;;  %v506_v46 = vpop.xlane.xlu0 %505 }
  0xdc   : > { %v508_v47 = vpop.xlane.xlu1 %507  ;;  %v526_v48 = vmul.f32 0.0078125, %v506_v46  ;;  %v548_v49 = vmul.f32 %v3072_v43, %v3072_v43 }
  0xdd   : > { %v527_v50 = vmul.f32 0.0078125, %v508_v47  ;;  %v549_v53 = vmul.f32 %v3074_v44, %v3074_v44 }
  0xde   : > { %v3080_v51 = vsub.f32 %v475_v8, %v526_v48  ;;  %566 = vadd.xlane.f32.xlu0 %v548_v49  ;;  %584 = vadd.xlane.f32.xlu1 %v557_v45  ;;  %v736_v45 = vld [vmem:[%s4142_s6 + $0x50] sm:$0xff]  ;;  %v1313_v48 = vld [vmem:[%s4144_s8 + $0x8] sm:$0xff] }
  0xdf   : > { %v3082_v52 = vsub.f32 %v476_v9, %v527_v50  ;;  %v490_v54 = vpop.xlane.xlu0 %489 }
  0xe0   : > { %v492_v55 = vpop.xlane.xlu1 %491  ;;  %v518_v56 = vmul.f32 0.0078125, %v490_v54  ;;  %v558_v57 = vmul.f32 %v3080_v51, %v3080_v51 }
  0xe1   : > { %v519_v58 = vmul.f32 0.0078125, %v492_v55  ;;  %v559_v61 = vmul.f32 %v3082_v52, %v3082_v52  ;;  %v738_v55 = vld [vmem:[%s4142_s6 + $0x60] sm:$0xff] }
  0xe2   : > { %v3089_v59 = vsub.f32 %v3027_v10, %v518_v56  ;;  %586 = vadd.xlane.f32.xlu0 %v558_v57  ;;  %568 = vadd.xlane.f32.xlu1 %v549_v53 }
  0xe3   : > { %v3092_v60 = vsub.f32 %v3030_v11, %v519_v58  ;;  %v510_v62 = vpop.xlane.xlu0 %509  ;;  %v1315_v58 = vld [vmem:[%s4144_s8 + $0x18] sm:$0xff] }
  0xe4   : > { %v512_v63 = vpop.xlane.xlu1 %511  ;;  %v528_v0 = vmul.f32 0.0078125, %v510_v62  ;;  %v550_v1 = vmul.f32 %v3089_v59, %v3089_v59 }
  0xe5   : > { %v529_v2 = vmul.f32 0.0078125, %v512_v63  ;;  %v551_v5 = vmul.f32 %v3092_v60, %v3092_v60 }
  0xe6   : > { %v3099_v3 = vsub.f32 %v3033_v12, %v528_v0  ;;  %570 = vadd.xlane.f32.xlu0 %v550_v1  ;;  %588 = vadd.xlane.f32.xlu1 %v559_v61  ;;  %v740_v1 = vld [vmem:[%s4142_s6 + $0x70] sm:$0xff] }
  0xe7   : > { %v3102_v4 = vsub.f32 %v3036_v13, %v529_v2  ;;  %v494_v6 = vpop.xlane.xlu0 %493 }
  0xe8   : > { %v496_v7 = vpop.xlane.xlu1 %495  ;;  %v520_v8 = vmul.f32 0.0078125, %v494_v6  ;;  %v560_v9 = vmul.f32 %v3099_v3, %v3099_v3 }
  0xe9   : > { %v521_v10 = vmul.f32 0.0078125, %v496_v7  ;;  %v561_v13 = vmul.f32 %v3102_v4, %v3102_v4  ;;  %v1317_v7 = vld [vmem:[%s4144_s8 + $0x28] sm:$0xff] }
  0xea   : > { %v3109_v11 = vsub.f32 %v3043_v14, %v520_v8  ;;  %590 = vadd.xlane.f32.xlu0 %v560_v9  ;;  %572 = vadd.xlane.f32.xlu1 %v551_v5  ;;  %v727_v14 = vld [vmem:[%s4142_s6 + $0x8] sm:$0xff] }
  0xeb   : > { %v3112_v12 = vsub.f32 %v3046_v15, %v521_v10  ;;  %v728_v15 = vld [vmem:[%s4142_s6 + $0x10] sm:$0xff] }
  0xec   : > { %v552_v16 = vmul.f32 %v3109_v11, %v3109_v11 }
  0xed   : > { %v553_v17 = vmul.f32 %v3112_v12, %v3112_v12 }
  0xee   : > { %574 = vadd.xlane.f32.xlu0 %v552_v16  ;;  %592 = vadd.xlane.f32.xlu1 %v561_v13 }
  0xf2   : > { %576 = vadd.xlane.f32.xlu1 %v553_v17  ;;  %v3185_v17 = vld [vmem:[%s4137_s1] ss:$0 sm:$0xff] }
 0x103   : > { %749 = vperm.xlu1 %2537, %v727_v14   ;;  %v1312_v14 = vld [vmem:[%s4144_s8] sm:$0xff] }
 0x104   : > { %744 = vperm.xlu0 %2536, %v726_v24  }
 0x107   : > { %754 = vperm.xlu1 %2537, %v728_v15  }
 0x108   : > { %789 = vperm.xlu0 %2536, %v735_v25  }
 0x10b   : > { %759 = vperm.xlu1 %2537, %v729_v19  }
 0x10c   : > { %799 = vperm.xlu0 %2536, %v737_v29  }
 0x10f   : > { %764 = vperm.xlu1 %2537, %v730_v22  }
 0x110   : > { %809 = vperm.xlu0 %2536, %v739_v31   ;;  %v3197_v31 = vld [vmem:[%s4138_s2] ss:$0 sm:$0xff] }
 0x113   : > { %769 = vperm.xlu1 %2537, %v731_v23  }
 0x114   : > { %819 = vperm.xlu0 %2536, %v741_v38  }
 0x117   : > { %774 = vperm.xlu1 %2537, %v732_v26  }
 0x118   : > { %1327 = vperm.xlu0 %2536, %v1313_v48  }
 0x11b   : > { %779 = vperm.xlu1 %2537, %v733_v30  }
 0x11c   : > { %1337 = vperm.xlu0 %2536, %v1315_v58  }
 0x11f   : > { %784 = vperm.xlu1 %2537, %v734_v34  }
 0x120   : > { %1347 = vperm.xlu0 %2536, %v1317_v7  }
 0x123   : > { %794 = vperm.xlu1 %2537, %v736_v45  }
 0x127   : > { %804 = vperm.xlu1 %2537, %v738_v55  }
 0x12b   : > { %814 = vperm.xlu1 %2537, %v740_v1  }
 0x12f   : > { %1322 = vperm.xlu1 %2537, %v1312_v14  }
 0x15f   : > { %v579_v32 = vpop.xlane.xlu0 %578 }
 0x160   : > { %v602_v33 = vmul.f32 0.0078125, %v579_v32 }
 0x162   : > { %v618_v37 = vadd.f32 1e-05, %v602_v33  ;;  %v1314_v33 = vld [vmem:[%s4144_s8 + $0x10] sm:$0xff] }
 0x163   : > { %v563_v39 = vpop.xlane.xlu0 %562  ;;  %v581_v40 = vpop.xlane.xlu1 %580  ;;  %1332 = vperm.xlu1 %2537, %v1314_v33  }
 0x164   : > { %2566 = vrsqrt.f32 %v618_v37  ;;  %v594_v41 = vmul.f32 0.0078125, %v563_v39  ;;  %v603_v42 = vmul.f32 0.0078125, %v581_v40 }
 0x166   : > { %v610_v46 = vadd.f32 1e-05, %v594_v41  ;;  %v619_v47 = vadd.f32 1e-05, %v603_v42 }
 0x167   : > { %v583_v49 = vpop.xlane.xlu0 %582  ;;  %v565_v50 = vpop.xlane.xlu1 %564 }
 0x168   : > { %2568 = vrsqrt.f32 %v610_v46  ;;  %v604_v53 = vmul.f32 0.0078125, %v583_v49  ;;  %v595_v54 = vmul.f32 0.0078125, %v565_v50  ;;  %v1316_v49 = vld [vmem:[%s4144_s8 + $0x20] sm:$0xff] }
 0x169   : > { %2570 = vrsqrt.f32 %v619_v47  ;;  %1342 = vperm.xlu1 %2537, %v1316_v49  }
 0x16a   : > { %v620_v56 = vadd.f32 1e-05, %v604_v53  ;;  %v611_v57 = vadd.f32 1e-05, %v595_v54 }
 0x16b   : > { %v567_v61 = vpop.xlane.xlu0 %566  ;;  %v585_v62 = vpop.xlane.xlu1 %584 }
 0x16c   : > { %2572 = vrsqrt.f32 %v620_v56  ;;  %v596_v63 = vmul.f32 0.0078125, %v567_v61  ;;  %v605_v0 = vmul.f32 0.0078125, %v585_v62 }
 0x16d   : > { %2574 = vrsqrt.f32 %v611_v57 }
 0x16e   : > { %v2567_v2 = vpop.eup %2566  ;;  %v612_v5 = vadd.f32 1e-05, %v596_v63  ;;  %v621_v6 = vadd.f32 1e-05, %v605_v0 }
 0x16f   : > { %v587_v8 = vpop.xlane.xlu0 %586  ;;  %v569_v9 = vpop.xlane.xlu1 %568  ;;  %v650_v10 = vmul.f32 %v2567_v2, %v3050_v20  ;;  %v1319_v20 = vld [vmem:[%s4144_s8 + $0x38] sm:$0xff] }
 0x170   : > { %2576 = vrsqrt.f32 %v612_v5  ;;  %v606_v13 = vmul.f32 0.0078125, %v587_v8  ;;  %v597_v16 = vmul.f32 0.0078125, %v569_v9  ;;  %1357 = vperm.xlu0 %2536, %v1319_v20   ;;  %v1318_v5 = vld [vmem:[%s4144_s8 + $0x30] sm:$0xff] }
 0x171   : > { %2578 = vrsqrt.f32 %v621_v6  ;;  %v672_v26 = vmul.f32 %v3185_v17, %v650_v10  ;;  %1352 = vperm.xlu1 %2537, %v1318_v5   ;;  %v2543_v5 = vld [vmem:[%s4141_s5 + $0x28] sm:$0xff]  }
 0x172   : > { %v2569_v15 = vpop.eup %2568  ;;  %v622_v19 = vadd.f32 1e-05, %v606_v13  ;;  %v613_v22 = vadd.f32 1e-05, %v597_v16 }
 0x173   : > { %v2571_v23 = vpop.eup %2570  ;;  %v571_v24 = vpop.xlane.xlu0 %570  ;;  %v642_v34 = vmul.f32 %v2569_v15, %v3052_v21  ;;  %v3206_v46 = vadd.f32 %v3197_v31, %v672_v26 }
 0x174   : > { %v589_v25 = vpop.xlane.xlu1 %588  ;;  %2580 = vrsqrt.f32 %v622_v19  ;;  %v598_v29 = vmul.f32 0.0078125, %v571_v24  ;;  %v651_v32 = vmul.f32 %v2571_v23, %v3056_v27 }
 0x175   : > { %v607_v30 = vmul.f32 0.0078125, %v589_v25  ;;  %2582 = vrsqrt.f32 %v613_v22  ;;  %v664_v53 = vmul.f32 %v3185_v17, %v642_v34 }
 0x176   : > { %v2573_v37 = vpop.eup %2572  ;;  %v614_v38 = vadd.f32 1e-05, %v598_v29  ;;  %v673_v40 = vmul.f32 %v3185_v17, %v651_v32 }
 0x177   : > { %v623_v39 = vadd.f32 1e-05, %v607_v30  ;;  %v2575_v41 = vpop.eup %2574  ;;  %v591_v42 = vpop.xlane.xlu0 %590  ;;  %v652_v27 = vmul.f32 %v2573_v37, %v3064_v35  ;;  %v3227_v6 = vadd.f32 %v3197_v31, %v664_v53 }
 0x178   : > { %v573_v45 = vpop.xlane.xlu1 %572  ;;  %2584 = vrsqrt.f32 %v614_v38  ;;  %v608_v47 = vmul.f32 0.0078125, %v591_v42  ;;  %v3210_v21 = vadd.f32 %v3197_v31, %v673_v40  ;;  %v643_v50 = vmul.f32 %v2575_v41, %v3058_v28 }
 0x179   : > { %v599_v48 = vmul.f32 0.0078125, %v573_v45  ;;  %2586 = vrsqrt.f32 %v623_v39  ;;  %v674_v63 = vmul.f32 %v3185_v17, %v652_v27 }
 0x17a   : > { %v2577_v54 = vpop.eup %2576  ;;  %v624_v55 = vadd.f32 1e-05, %v608_v47  ;;  %v719_v35 = vpack.c.bf16 %v3210_v21, %v3206_v46  ;;  %v665_v62 = vmul.f32 %v3185_v17, %v643_v50 }
 0x17b   : > { %v615_v56 = vadd.f32 1e-05, %v599_v48  ;;  %v2579_v57 = vpop.eup %2578  ;;  %v575_v58 = vpop.xlane.xlu0 %574  ;;  %v644_v0 = vmul.f32 %v2577_v54, %v3072_v43  ;;  %v3236_v14 = vadd.f32 %v3197_v31, %v674_v63 }
 0x17c   : > { %v593_v61 = vpop.xlane.xlu1 %592  ;;  %2588 = vrsqrt.f32 %v624_v55  ;;  %v600_v28 = vmul.f32 0.0078125, %v575_v58  ;;  %887 = vmatprep.subr.bf16.mxu0 %v719_v35  ;;  %v653_v2 = vmul.f32 %v2579_v57, %v3066_v36  ;;  %v3230_v7 = vadd.f32 %v3197_v31, %v665_v62 }
 0x17d   : > { %v609_v1 = vmul.f32 0.0078125, %v593_v61  ;;  %2590 = vrsqrt.f32 %v615_v56  ;;  %4172 = vst [vmem:[#allocation12_spill] sm:$0xff] %v3236_v14  ;;  %v666_v15 = vmul.f32 %v3185_v17, %v644_v0 }
 0x17e   : > { %v2581_v8 = vpop.eup %2580  ;;  %v616_v43 = vadd.f32 1e-05, %v600_v28  ;;  %v675_v10 = vmul.f32 %v3185_v17, %v653_v2  ;;  %v718_v36 = vpack.c.bf16 %v3230_v7, %v3227_v6  ;;  %v2538_v28 = vld [vmem:[%s4141_s5] sm:$0xff]  }
 0x17f   : > { %v625_v9 = vadd.f32 1e-05, %v609_v1  ;;  %v2583_v13 = vpop.eup %2582  ;;  %v654_v19 = vmul.f32 %v2581_v8, %v3080_v51  ;;  %v3248_v51 = vadd.f32 %v3197_v31, %v666_v15  ;;  %v2541_v1 = vld [vmem:[%s4141_s5 + $0x18] sm:$0xff]   ;;  %v2542_v2 = vld [vmem:[%s4141_s5 + $0x20] sm:$0xff]   ;;  %v2544_v8 = vld [vmem:[%s4141_s5 + $0x30] sm:$0xff]  }
 0x180   : > { %v577_v16 = vpop.xlane.xlu1 %576  ;;  %2592 = vrsqrt.f32 %v616_v43  ;;  %v3241_v20 = vadd.f32 %v3197_v31, %v675_v10  ;;  %v645_v23 = vmul.f32 %v2583_v13, %v3074_v44  ;;  %888 = vmatpush1.bf16.msra.mxu0 %v718_v36  ;;  %v2545_v43 = vld [vmem:[%s4141_s5 + $0x38] sm:$0xff]  }
 0x181   : > { %v601_v22 = vmul.f32 0.0078125, %v577_v16  ;;  %2594 = vrsqrt.f32 %v625_v9  ;;  %v676_v32 = vmul.f32 %v3185_v17, %v654_v19 }
 0x182   : > { %4173 = vst [vmem:[#allocation13_spill] sm:$0xff] %v3241_v20  ;;  %v2585_v24 = vpop.eup %2584  ;;  %v721_v26 = vpack.c.bf16 %v3241_v20, %v3236_v14  ;;  %v667_v29 = vmul.f32 %v3185_v17, %v645_v23 }
 0x183   : > { %v617_v25 = vadd.f32 1e-05, %v601_v22  ;;  %v2587_v30 = vpop.eup %2586  ;;  %v646_v34 = vmul.f32 %v2585_v24, %v3089_v59  ;;  %v3260_v41 = vadd.f32 %v3197_v31, %v676_v32  ;;  %v745_v13 = vpop.permute.xlu0 %744 }
 0x184   : > { %889 = vmatprep.subr.bf16.mxu0 %v721_v26  ;;  %v3252_v33 = vadd.f32 %v3197_v31, %v667_v29  ;;  %v655_v44 = vmul.f32 %v2587_v30, %v3082_v52  ;;  %v750_v9 = vpop.permute.xlu1 %749 }
 0x185   : > { %2596 = vrsqrt.f32 %v617_v25  ;;  %4174 = vst [vmem:[#allocation14_spill] sm:$0xff] %v3260_v41  ;;  %v668_v52 = vmul.f32 %v3185_v17, %v646_v34 }
 0x186   : > { %v2589_v37 = vpop.eup %2588  ;;  %v720_v38 = vpack.c.bf16 %v3252_v33, %v3248_v51  ;;  %v677_v39 = vmul.f32 %v3185_v17, %v655_v44 }
 0x187   : > { %v2591_v40 = vpop.eup %2590  ;;  %v656_v59 = vmul.f32 %v2589_v37, %v3099_v3  ;;  %v3273_v53 = vadd.f32 %v3197_v31, %v668_v52 }
 0x188   : > { %890 = vmatpush1.bf16.msra.mxu0 %v720_v38  ;;  %v3263_v42 = vadd.f32 %v3197_v31, %v677_v39  ;;  %v647_v45 = vmul.f32 %v2591_v40, %v3092_v60  ;;  %v755_v10 = vpop.permute.xlu1 %754 }
 0x189   : > { %v678_v3 = vmul.f32 %v3185_v17, %v656_v59 }
 0x18a   : > { %4175 = vst [vmem:[#allocation15_spill] sm:$0xff] %v3263_v42  ;;  %v2593_v27 = vpop.eup %2592  ;;  %v723_v47 = vpack.c.bf16 %v3263_v42, %v3260_v41  ;;  %v669_v48 = vmul.f32 %v3185_v17, %v647_v45 }
 0x18b   : > { %v2595_v49 = vpop.eup %2594  ;;  %v648_v50 = vmul.f32 %v2593_v27, %v3109_v11  ;;  %v3286_v58 = vadd.f32 %v3197_v31, %v678_v3 }
 0x18c   : > { %891 = vmatprep.subr.bf16.mxu0 %v723_v47  ;;  %v3276_v54 = vadd.f32 %v3197_v31, %v669_v48  ;;  %v657_v60 = vmul.f32 %v2595_v49, %v3102_v4  ;;  %v760_v19 = vpop.permute.xlu1 %759 }
 0x18d   : > { %v670_v11 = vmul.f32 %v3185_v17, %v648_v50  ;;  %4176 = vst [vmem:[#allocation16_spill] sm:$0xff] %v3286_v58 }
 0x18e   : > { %v722_v56 = vpack.c.bf16 %v3276_v54, %v3273_v53  ;;  %v679_v35 = vmul.f32 %v3185_v17, %v657_v60 }
 0x18f   : > { %v2597_v55 = vpop.eup %2596  ;;  %v3295_v63 = vadd.f32 %v3197_v31, %v670_v11 }
 0x190   : > { %v649_v57 = vmul.f32 %v2597_v55, %v3112_v12  ;;  %892 = vmatpush1.bf16.msra.mxu0 %v722_v56  ;;  %v3289_v61 = vadd.f32 %v3197_v31, %v679_v35  ;;  %v765_v40 = vpop.permute.xlu1 %764 }
 0x192   : > { %4177 = vst [vmem:[#allocation17_spill] sm:$0xff] %v3289_v61  ;;  %v671_v4 = vmul.f32 %v3185_v17, %v649_v57  ;;  %v725_v62 = vpack.c.bf16 %v3289_v61, %v3286_v58  ;;  %v2539_v17 = vld [vmem:[%s4141_s5 + $0x8] sm:$0xff]  }
 0x194   : > { %v3298_v0 = vadd.f32 %v3197_v31, %v671_v4  ;;  %893 = vmatprep.subr.bf16.mxu0 %v725_v62  ;;  %v2540_v31 = vld [vmem:[%s4141_s5 + $0x10] sm:$0xff]  }
 0x196   : > { %v724_v12 = vpack.c.bf16 %v3298_v0, %v3295_v63 }
 0x198   : > { %894 = vmatpush1.bf16.msra.mxu0 %v724_v12 }
 0x19b   : > { %2331 = vmatmul.mubr.msk.bf16.vlgmr.msra.gmra.mrb[0].mxu0 %vm862_vm0, %v2538_v28 }
 0x19c   : > { %929 = vmatprep.mubr.bf16.mxu0 %v4155_v18 }
 0x1a3   : > { %2332 = vmatmul.mubr.msk.bf16.gmra.mrb[4].mxu0 %vm862_vm0, %v2539_v17 }
 0x1a4   : > { %939 = vmatprep.mubr.bf16.mxu0 %v4155_v18 }
 0x1ab   : > { %2333 = vmatmul.mubr.msk.bf16.gmra.mrb[8].mxu0 %vm862_vm0, %v2540_v31 }
 0x1ac   : > { %949 = vmatprep.mubr.bf16.mxu0 %v4155_v18 }
 0x1b3   : > { %2334 = vmatmul.mubr.msk.bf16.gmra.mrb[12].mxu0 %vm862_vm0, %v2541_v1 }
 0x1b4   : > { %959 = vmatprep.mubr.bf16.mxu0 %v4155_v18 }
 0x1bb   : > { %2335 = vmatmul.mubr.msk.bf16.gmra.mrb[16].mxu0 %vm862_vm0, %v2542_v2 }
 0x1bc   : > { %969 = vmatprep.mubr.bf16.mxu0 %v4155_v18 }
 0x1c3   : > { %2336 = vmatmul.mubr.msk.bf16.gmra.mrb[20].mxu0 %vm862_vm0, %v2543_v5  ;;  %v770_v5 = vpop.permute.xlu1 %769 }
 0x1c4   : > { %979 = vmatprep.mubr.bf16.mxu0 %v4155_v18 }
 0x1cb   : > { %2337 = vmatmul.mubr.msk.bf16.gmra.mrb[24].mxu0 %vm862_vm0, %v2544_v8 }
 0x1cc   : > { %989 = vmatprep.mubr.bf16.mxu0 %v4155_v18 }
 0x1d3   : > { %2338 = vmatmul.mubr.msk.bf16.gmra.mrb[28].mxu0 %vm862_vm0, %v2545_v43 }
 0x26e   : > { %v921_v36 = vpop.f32.mrb[0].mxu0 }
 0x26f   : > { %v3341_v16 = vadd.f32 %v921_v36, %v745_v13  ;;  %v923_v15 = vpop.f32.mrb[1].mxu0 }
 0x270   : > { %v3343_v22 = vadd.f32 %v923_v15, %v745_v13  ;;  %v925_v23 = vpop.f32.mrb[2].mxu0 }
 0x271   : > { %v1000_v24 = vmul.f32 %v3341_v16, %v3341_v16  ;;  %v3347_v25 = vadd.f32 %v925_v23, %v750_v9  ;;  %v927_v26 = vpop.f32.mrb[3].mxu0 }
 0x272   : > { %v1001_v29 = vmul.f32 %v3343_v22, %v3343_v22  ;;  %v3351_v30 = vadd.f32 %v927_v26, %v750_v9 }
 0x273   : > { %v1032_v32 = vmul.f32 %v1000_v24, %v3341_v16  ;;  %v1002_v44 = vmul.f32 %v3347_v25, %v3347_v25 }
 0x274   : > { %v1033_v34 = vmul.f32 %v1001_v29, %v3343_v22  ;;  %v1003_v37 = vmul.f32 %v3351_v30, %v3351_v30 }
 0x275   : > { %v1064_v38 = vmul.f32 0.044715, %v1032_v32  ;;  %v1034_v39 = vmul.f32 %v1002_v44, %v3347_v25 }
 0x276   : > { %v1065_v45 = vmul.f32 0.044715, %v1033_v34  ;;  %v1035_v52 = vmul.f32 %v1003_v37, %v3351_v30  ;;  %v931_v59 = vpop.f32.mrb[4].mxu0 }
 0x277   : > { %v1096_v27 = vadd.f32 %v1064_v38, %v3341_v16  ;;  %v1066_v47 = vmul.f32 0.044715, %v1034_v39  ;;  %v3362_v48 = vadd.f32 %v931_v59, %v755_v10  ;;  %v933_v49 = vpop.f32.mrb[5].mxu0 }
 0x278   : > { %v1067_v50 = vmul.f32 0.044715, %v1035_v52  ;;  %v3364_v60 = vadd.f32 %v933_v49, %v755_v10  ;;  %v935_v3 = vpop.f32.mrb[6].mxu0  ;;  %v1097_v55 = vadd.f32 %v1065_v45, %v3343_v22 }
 0x279   : > { %v1128_v56 = vmul.f32 0.7978846, %v1096_v27  ;;  %v1098_v35 = vadd.f32 %v1066_v47, %v3347_v25  ;;  %v1004_v57 = vmul.f32 %v3362_v48, %v3362_v48  ;;  %v3370_v11 = vadd.f32 %v935_v3, %v760_v19  ;;  %v937_v4 = vpop.f32.mrb[7].mxu0  ;;  %v775_v27 = vpop.permute.xlu1 %774 }
 0x27a   : > { %v1005_v62 = vmul.f32 %v3364_v60, %v3364_v60  ;;  %v3374_v12 = vadd.f32 %v937_v4, %v760_v19  ;;  %v1099_v28 = vadd.f32 %v1067_v50, %v3351_v30  ;;  %v1129_v17 = vmul.f32 0.7978846, %v1097_v55 }
 0x27b   : > { %v1130_v31 = vmul.f32 0.7978846, %v1098_v35  ;;  %v1036_v1 = vmul.f32 %v1004_v57, %v3362_v48  ;;  %v1006_v2 = vmul.f32 %v3370_v11, %v3370_v11  ;;  %2598 = vtanh.f32 %v1128_v56 }
 0x27c   : > { %v1037_v8 = vmul.f32 %v1005_v62, %v3364_v60  ;;  %v1007_v43 = vmul.f32 %v3374_v12, %v3374_v12  ;;  %v1131_v9 = vmul.f32 0.7978846, %v1099_v28  ;;  %2600 = vtanh.f32 %v1129_v17 }
 0x27d   : > { %v1068_v10 = vmul.f32 0.044715, %v1036_v1  ;;  %v1038_v13 = vmul.f32 %v1006_v2, %v3370_v11  ;;  %2602 = vtanh.f32 %v1130_v31 }
 0x27e   : > { %v1069_v36 = vmul.f32 0.044715, %v1037_v8  ;;  %v1039_v15 = vmul.f32 %v1007_v43, %v3374_v12  ;;  %v941_v19 = vpop.f32.mrb[8].mxu0  ;;  %2604 = vtanh.f32 %v1131_v9 }
 0x27f   : > { %v1100_v23 = vadd.f32 %v1068_v10, %v3362_v48  ;;  %v1070_v24 = vmul.f32 0.044715, %v1038_v13  ;;  %v3386_v26 = vadd.f32 %v941_v19, %v765_v40  ;;  %v943_v29 = vpop.f32.mrb[9].mxu0  ;;  %v780_v19 = vpop.permute.xlu1 %779 }
 0x280   : > { %v1101_v32 = vadd.f32 %v1069_v36, %v3364_v60  ;;  %v1071_v44 = vmul.f32 0.044715, %v1039_v15  ;;  %v3389_v34 = vadd.f32 %v943_v29, %v765_v40  ;;  %v945_v37 = vpop.f32.mrb[10].mxu0 }
 0x281   : > { %v1132_v38 = vmul.f32 0.7978846, %v1100_v23  ;;  %v1102_v39 = vadd.f32 %v1070_v24, %v3370_v11  ;;  %v1008_v45 = vmul.f32 %v3386_v26, %v3386_v26  ;;  %v3394_v52 = vadd.f32 %v945_v37, %v770_v5  ;;  %v947_v59 = vpop.f32.mrb[11].mxu0 }
 0x282   : > { %v1133_v47 = vmul.f32 0.7978846, %v1101_v32  ;;  %v1103_v49 = vadd.f32 %v1071_v44, %v3374_v12  ;;  %v1009_v50 = vmul.f32 %v3389_v34, %v3389_v34  ;;  %v3399_v40 = vadd.f32 %v947_v59, %v770_v5 }
 0x283   : > { %2606 = vtanh.f32 %v1132_v38  ;;  %v1134_v3 = vmul.f32 0.7978846, %v1102_v39  ;;  %v1040_v55 = vmul.f32 %v1008_v45, %v3386_v26  ;;  %v1010_v56 = vmul.f32 %v3394_v52, %v3394_v52 }
 0x284   : > { %2608 = vtanh.f32 %v1133_v47  ;;  %v1135_v35 = vmul.f32 0.7978846, %v1103_v49  ;;  %v1041_v57 = vmul.f32 %v1009_v50, %v3389_v34  ;;  %v1011_v4 = vmul.f32 %v3399_v40, %v3399_v40 }
 0x285   : > { %v2599_v62 = vpop.eup %2598  ;;  %2610 = vtanh.f32 %v1134_v3  ;;  %v1072_v28 = vmul.f32 0.044715, %v1040_v55  ;;  %v1042_v17 = vmul.f32 %v1010_v56, %v3394_v52 }
 0x286   : > { %v2601_v31 = vpop.eup %2600  ;;  %2612 = vtanh.f32 %v1135_v35  ;;  %v1073_v1 = vmul.f32 0.044715, %v1041_v57  ;;  %v1043_v2 = vmul.f32 %v1011_v4, %v3399_v40  ;;  %v951_v5 = vpop.f32.mrb[12].mxu0  ;;  %v3409_v8 = vadd.f32 1.0, %v2599_v62 }
 0x287   : > { %v2603_v43 = vpop.eup %2602  ;;  %v1104_v9 = vadd.f32 %v1072_v28, %v3386_v26  ;;  %v1074_v10 = vmul.f32 0.044715, %v1042_v17  ;;  %v3412_v13 = vadd.f32 %v951_v5, %v775_v27  ;;  %v953_v36 = vpop.f32.mrb[13].mxu0  ;;  %v1193_v15 = vadd.f32 1.0, %v2601_v31 }
 0x288   : > { %v1105_v23 = vadd.f32 %v1073_v1, %v3389_v34  ;;  %v1075_v24 = vmul.f32 0.044715, %v1043_v2  ;;  %v3415_v29 = vadd.f32 %v953_v36, %v775_v27  ;;  %v955_v32 = vpop.f32.mrb[14].mxu0  ;;  %v3417_v44 = vadd.f32 1.0, %v2603_v43  ;;  %v2605_v47 = vpop.eup %2604 }
 0x289   : > { %v1136_v37 = vmul.f32 0.7978846, %v1104_v9  ;;  %v1106_v38 = vadd.f32 %v1074_v10, %v3394_v52  ;;  %v1012_v39 = vmul.f32 %v3412_v13, %v3412_v13  ;;  %v3422_v45 = vadd.f32 %v955_v32, %v780_v19  ;;  %v957_v59 = vpop.f32.mrb[15].mxu0  ;;  %v785_v5 = vpop.permute.xlu1 %784 }
 0x28a   : > { %v1137_v49 = vmul.f32 0.7978846, %v1105_v23  ;;  %v1107_v50 = vadd.f32 %v1075_v24, %v3399_v40  ;;  %v1013_v27 = vmul.f32 %v3415_v29, %v3415_v29  ;;  %v3427_v3 = vadd.f32 %v957_v59, %v780_v19  ;;  %v790_v59 = vpop.permute.xlu0 %789 }
 0x28b   : > { %2614 = vtanh.f32 %v1136_v37  ;;  %v1138_v55 = vmul.f32 0.7978846, %v1106_v38  ;;  %v1044_v56 = vmul.f32 %v1012_v39, %v3412_v13  ;;  %v1014_v35 = vmul.f32 %v3422_v45, %v3422_v45 }
 0x28c   : > { %2616 = vtanh.f32 %v1137_v49  ;;  %v1139_v57 = vmul.f32 0.7978846, %v1107_v50  ;;  %v1045_v4 = vmul.f32 %v1013_v27, %v3415_v29  ;;  %v1015_v62 = vmul.f32 %v3427_v3, %v3427_v3 }
 0x28d   : > { %v3435_v28 = vpop.eup %2606  ;;  %2618 = vtanh.f32 %v1138_v55  ;;  %v1076_v17 = vmul.f32 0.044715, %v1044_v56  ;;  %v1046_v31 = vmul.f32 %v1014_v35, %v3422_v45  ;;  %v1195_v1 = vadd.f32 1.0, %v2605_v47 }
 0x28e   : > { %v3438_v2 = vpop.eup %2608  ;;  %2620 = vtanh.f32 %v1139_v57  ;;  %v1077_v43 = vmul.f32 0.044715, %v1045_v4  ;;  %v1047_v9 = vmul.f32 %v1015_v62, %v3427_v3  ;;  %v961_v10 = vpop.f32.mrb[16].mxu0  ;;  %v1225_v36 = vmul.f32 0.5, %v1193_v15 }
 0x28f   : > { %v3441_v19 = vpop.eup %2610  ;;  %v1108_v23 = vadd.f32 %v1076_v17, %v3412_v13  ;;  %v1078_v24 = vmul.f32 0.044715, %v1046_v31  ;;  %v3444_v32 = vadd.f32 %v961_v10, %v785_v5  ;;  %v963_v37 = vpop.f32.mrb[17].mxu0  ;;  %v1227_v38 = vmul.f32 0.5, %v1195_v1 }
 0x290   : > { %v3446_v39 = vpop.eup %2612  ;;  %v1109_v47 = vadd.f32 %v1077_v43, %v3415_v29  ;;  %v1079_v49 = vmul.f32 0.044715, %v1047_v9  ;;  %v3449_v50 = vadd.f32 %v963_v37, %v785_v5  ;;  %v965_v27 = vpop.f32.mrb[18].mxu0  ;;  %v1257_v15 = vmul.f32 %v1225_v36, %v3343_v22 }
 0x291   : > { %v1140_v55 = vmul.f32 0.7978846, %v1108_v23  ;;  %v1110_v56 = vadd.f32 %v1078_v24, %v3422_v45  ;;  %v1016_v35 = vmul.f32 %v3444_v32, %v3444_v32  ;;  %v3455_v57 = vadd.f32 %v965_v27, %v790_v59  ;;  %v967_v4 = vpop.f32.mrb[19].mxu0 }
 0x292   : > { %v1141_v62 = vmul.f32 0.7978846, %v1109_v47  ;;  %v1111_v17 = vadd.f32 %v1079_v49, %v3427_v3  ;;  %v1017_v31 = vmul.f32 %v3449_v50, %v3449_v50  ;;  %v3460_v1 = vadd.f32 %v967_v4, %v790_v59  ;;  %v795_v4 = vpop.permute.xlu1 %794 }
 0x293   : > { %2622 = vtanh.f32 %v1140_v55  ;;  %v1142_v5 = vmul.f32 0.7978846, %v1110_v56  ;;  %v1048_v22 = vmul.f32 %v1016_v35, %v3444_v32  ;;  %v1018_v43 = vmul.f32 %v3455_v57, %v3455_v57 }
 0x294   : > { %2624 = vtanh.f32 %v1141_v62  ;;  %v1143_v9 = vmul.f32 0.7978846, %v1111_v17  ;;  %v1049_v10 = vmul.f32 %v1017_v31, %v3449_v50  ;;  %v1019_v36 = vmul.f32 %v3460_v1, %v3460_v1 }
 0x295   : > { %v3468_v23 = vpop.eup %2614  ;;  %2626 = vtanh.f32 %v1142_v5  ;;  %v1080_v24 = vmul.f32 0.044715, %v1048_v22  ;;  %v1050_v37 = vmul.f32 %v1018_v43, %v3455_v57  ;;  %v1259_v59 = vmul.f32 %v1227_v38, %v3351_v30 }
 0x296   : > { %v3472_v47 = vpop.eup %2616  ;;  %2628 = vtanh.f32 %v1143_v9  ;;  %v1081_v49 = vmul.f32 0.044715, %v1049_v10  ;;  %v1051_v27 = vmul.f32 %v1019_v36, %v3460_v1  ;;  %v1224_v55 = vmul.f32 0.5, %v3409_v8  ;;  %v971_v56 = vpop.f32.mrb[20].mxu0 }
 0x297   : > { %v3476_v35 = vpop.eup %2618  ;;  %v1112_v62 = vadd.f32 %v1080_v24, %v3444_v32  ;;  %v1082_v17 = vmul.f32 0.044715, %v1050_v37  ;;  %v1297_v31 = vpack.c.bf16 %v1259_v59, %v1257_v15  ;;  %v1226_v5 = vmul.f32 0.5, %v3417_v44  ;;  %v973_v22 = vpop.f32.mrb[21].mxu0 }
 0x298   : > { %v3480_v30 = vpop.eup %2620  ;;  %v1113_v38 = vadd.f32 %v1081_v49, %v3449_v50  ;;  %v1083_v43 = vmul.f32 0.044715, %v1051_v27  ;;  %v1256_v9 = vmul.f32 %v1224_v55, %v3341_v16  ;;  %v3484_v10 = vadd.f32 %v971_v56, %v795_v4  ;;  %v975_v8 = vpop.f32.mrb[22].mxu0 }
 0x299   : > { %v800_v36 = vpop.permute.xlu0 %799  ;;  %v1144_v18 = vmul.f32 0.7978846, %v1112_v62  ;;  %v1114_v61 = vadd.f32 %v1082_v17, %v3455_v57  ;;  %1384 = vmatprep.subr.bf16.mxu1 %v1297_v31  ;;  %v1258_v15 = vmul.f32 %v1226_v5, %v3347_v25  ;;  %v3488_v24 = vadd.f32 %v973_v22, %v795_v4  ;;  %v977_v44 = vpop.f32.mrb[23].mxu0 }
 0x29a   : > { %v1145_v37 = vmul.f32 0.7978846, %v1113_v38  ;;  %v1115_v59 = vadd.f32 %v1083_v43, %v3460_v1  ;;  %v1020_v49 = vmul.f32 %v3484_v10, %v3484_v10  ;;  %v3493_v16 = vadd.f32 %v975_v8, %v800_v36  ;;  %v805_v58 = vpop.permute.xlu1 %804 }
 0x29b   : > { %2630 = vtanh.f32 %v1144_v18  ;;  %v1146_v27 = vmul.f32 0.7978846, %v1114_v61  ;;  %v1296_v55 = vpack.c.bf16 %v1258_v15, %v1256_v9  ;;  %v1021_v56 = vmul.f32 %v3488_v24, %v3488_v24 }
 0x29c   : > { %2632 = vtanh.f32 %v1145_v37  ;;  %v1147_v62 = vmul.f32 0.7978846, %v1115_v59  ;;  %v1052_v25 = vmul.f32 %v1020_v49, %v3484_v10  ;;  %v1022_v4 = vmul.f32 %v3493_v16, %v3493_v16 }
 0x29d   : > { %v3500_v17 = vpop.eup %2622  ;;  %2634 = vtanh.f32 %v1146_v27  ;;  %1385 = vmatpush1.bf16.msra.mxu1 %v1296_v55  ;;  %v1053_v31 = vmul.f32 %v1021_v56, %v3488_v24  ;;  %v3503_v5 = vadd.f32 %v977_v44, %v800_v36  ;;  %v1197_v18 = vadd.f32 1.0, %v3438_v2 }
 0x29e   : > { %v3506_v61 = vpop.eup %2624  ;;  %2636 = vtanh.f32 %v1147_v62  ;;  %v1084_v22 = vmul.f32 0.044715, %v1052_v25  ;;  %v1054_v38 = vmul.f32 %v1022_v4, %v3493_v16  ;;  %v1199_v43 = vadd.f32 1.0, %v3446_v39  ;;  %v981_v9 = vpop.f32.mrb[24].mxu0 }
 0x29f   : > { %v3510_v8 = vpop.eup %2626  ;;  %v1085_v15 = vmul.f32 0.044715, %v1053_v31  ;;  %v1023_v37 = vmul.f32 %v3503_v5, %v3503_v5  ;;  %v1229_v59 = vmul.f32 0.5, %v1197_v18  ;;  %v1196_v36 = vadd.f32 1.0, %v3435_v28  ;;  %v983_v44 = vpop.f32.mrb[25].mxu0 }
 0x2a0   : > { %v3515_v2 = vpop.eup %2628  ;;  %v1116_v49 = vadd.f32 %v1084_v22, %v3484_v10  ;;  %v1086_v27 = vmul.f32 0.044715, %v1054_v38  ;;  %v1231_v55 = vmul.f32 0.5, %v1199_v43  ;;  %v1198_v56 = vadd.f32 1.0, %v3441_v19  ;;  %v985_v39 = vpop.f32.mrb[26].mxu0 }
 0x2a1   : > { %v1117_v62 = vadd.f32 %v1085_v15, %v3488_v24  ;;  %v1055_v25 = vmul.f32 %v1023_v37, %v3503_v5  ;;  %v1261_v4 = vmul.f32 %v1229_v59, %v3364_v60  ;;  %v1228_v31 = vmul.f32 0.5, %v1196_v36  ;;  %v987_v18 = vpop.f32.mrb[27].mxu0  ;;  %v810_v36 = vpop.permute.xlu0 %809 }
 0x2a2   : > { %v1148_v28 = vmul.f32 0.7978846, %v1116_v49  ;;  %v1118_v42 = vadd.f32 %v1086_v27, %v3493_v16  ;;  %v1263_v41 = vmul.f32 %v1231_v55, %v3374_v12  ;;  %v1230_v22 = vmul.f32 0.5, %v1198_v56 }
 0x2a3   : > { %v1149_v38 = vmul.f32 0.7978846, %v1117_v62  ;;  %v1087_v43 = vmul.f32 0.044715, %v1055_v25  ;;  %v1260_v19 = vmul.f32 %v1228_v31, %v3362_v48  ;;  %v3525_v20 = vadd.f32 %v981_v9, %v805_v58 }
 0x2a4   : > { %2638 = vtanh.f32 %v1148_v28  ;;  %v1150_v15 = vmul.f32 0.7978846, %v1118_v42  ;;  %v1299_v37 = vpack.c.bf16 %v1263_v41, %v1261_v4  ;;  %v1262_v60 = vmul.f32 %v1230_v22, %v3370_v11 }
 0x2a5   : > { %v3528_v59 = vpop.eup %2630  ;;  %2640 = vtanh.f32 %v1149_v38  ;;  %v1119_v49 = vadd.f32 %v1087_v43, %v3503_v5  ;;  %v1024_v12 = vmul.f32 %v3525_v20, %v3525_v20  ;;  %v3533_v27 = vadd.f32 %v983_v44, %v805_v58 }
 0x2a6   : > { %v3535_v55 = vpop.eup %2632  ;;  %2642 = vtanh.f32 %v1150_v15  ;;  %1386 = vmatprep.subr.bf16.mxu1 %v1299_v37  ;;  %v1298_v48 = vpack.c.bf16 %v1262_v60, %v1260_v19  ;;  %v3537_v42 = vadd.f32 %v985_v39, %v810_v36  ;;  %v3539_v41 = vadd.f32 %v987_v18, %v810_v36  ;;  %v991_v11 = vpop.f32.mrb[28].mxu0 }
 0x2a7   : > { %v3541_v9 = vpop.eup %2634  ;;  %v1151_v56 = vmul.f32 0.7978846, %v1119_v49  ;;  %v1056_v62 = vmul.f32 %v1024_v12, %v3525_v20  ;;  %v1025_v25 = vmul.f32 %v3533_v27, %v3533_v27  ;;  %v1201_v58 = vadd.f32 1.0, %v3472_v47  ;;  %v993_v44 = vpop.f32.mrb[29].mxu0 }
 0x2a8   : > { %v3547_v4 = vpop.eup %2636  ;;  %1387 = vmatpush1.bf16.msra.mxu1 %v1298_v48  ;;  %v1026_v39 = vmul.f32 %v3537_v42, %v3537_v42  ;;  %v1027_v31 = vmul.f32 %v3539_v41, %v3539_v41  ;;  %v1203_v18 = vadd.f32 1.0, %v3480_v30  ;;  %v1200_v28 = vadd.f32 1.0, %v3468_v23  ;;  %v995_v22 = vpop.f32.mrb[30].mxu0 }
 0x2a9   : > { %2644 = vtanh.f32 %v1151_v56  ;;  %v1088_v38 = vmul.f32 0.044715, %v1056_v62  ;;  %v1057_v43 = vmul.f32 %v1025_v25, %v3533_v27  ;;  %v1233_v47 = vmul.f32 0.5, %v1201_v58  ;;  %v997_v19 = vpop.f32.mrb[31].mxu0  ;;  %v815_v48 = vpop.permute.xlu1 %814 }
 0x2aa   : > { %v1058_v15 = vmul.f32 %v1026_v39, %v3537_v42  ;;  %v1059_v37 = vmul.f32 %v1027_v31, %v3539_v41  ;;  %v1235_v60 = vmul.f32 0.5, %v1203_v18  ;;  %v1202_v36 = vadd.f32 1.0, %v3476_v35 }
 0x2ab   : > { %v1120_v49 = vadd.f32 %v1088_v38, %v3525_v20  ;;  %v1089_v12 = vmul.f32 0.044715, %v1057_v43  ;;  %v1265_v30 = vmul.f32 %v1233_v47, %v3389_v34  ;;  %v1232_v23 = vmul.f32 0.5, %v1200_v28 }
 0x2ac   : > { %v1090_v56 = vmul.f32 0.044715, %v1058_v15  ;;  %v1091_v62 = vmul.f32 0.044715, %v1059_v37  ;;  %v1267_v25 = vmul.f32 %v1235_v60, %v3399_v40  ;;  %v1234_v58 = vmul.f32 0.5, %v1202_v36  ;;  %v820_v40 = vpop.permute.xlu0 %819 }
 0x2ad   : > { %v1152_v14 = vmul.f32 0.7978846, %v1120_v49  ;;  %v1121_v39 = vadd.f32 %v1089_v12, %v3533_v27  ;;  %v1264_v31 = vmul.f32 %v1232_v23, %v3386_v26  ;;  %v3564_v18 = vadd.f32 %v991_v11, %v815_v48 }
 0x2ae   : > { %v3566_v35 = vpop.eup %2638  ;;  %v1122_v38 = vadd.f32 %v1090_v56, %v3537_v42  ;;  %v1123_v34 = vadd.f32 %v1091_v62, %v3539_v41  ;;  %v1301_v28 = vpack.c.bf16 %v1267_v25, %v1265_v30  ;;  %v1266_v43 = vmul.f32 %v1234_v58, %v3394_v52 }
 0x2af   : > { %v3571_v47 = vpop.eup %2640  ;;  %2646 = vtanh.f32 %v1152_v14  ;;  %v1153_v15 = vmul.f32 0.7978846, %v1121_v39  ;;  %v1028_v37 = vmul.f32 %v3564_v18, %v3564_v18  ;;  %v3575_v26 = vadd.f32 %v993_v44, %v815_v48 }
 0x2b0   : > { %v3577_v11 = vpop.eup %2642  ;;  %v1154_v60 = vmul.f32 0.7978846, %v1122_v38  ;;  %v1155_v36 = vmul.f32 0.7978846, %v1123_v34  ;;  %1388 = vmatprep.subr.bf16.mxu1 %v1301_v28  ;;  %v1300_v49 = vpack.c.bf16 %v1266_v43, %v1264_v31  ;;  %v3579_v12 = vadd.f32 %v995_v22, %v820_v40 }
 0x2b1   : > { %2648 = vtanh.f32 %v1153_v15  ;;  %v1060_v52 = vmul.f32 %v1028_v37, %v3564_v18  ;;  %v1029_v14 = vmul.f32 %v3575_v26, %v3575_v26  ;;  %v3584_v30 = vadd.f32 %v997_v19, %v820_v40 }
 0x2b2   : > { %2650 = vtanh.f32 %v1154_v60  ;;  %1389 = vmatpush1.bf16.msra.mxu1 %v1300_v49  ;;  %v1030_v44 = vmul.f32 %v3579_v12, %v3579_v12  ;;  %v1205_v23 = vadd.f32 1.0, %v3506_v61  ;;  %v1207_v48 = vadd.f32 1.0, %v3515_v2 }
 0x2b3   : > { %v2645_v56 = vpop.eup %2644  ;;  %2652 = vtanh.f32 %v1155_v36  ;;  %v1092_v22 = vmul.f32 0.044715, %v1060_v52  ;;  %v1061_v62 = vmul.f32 %v1029_v14, %v3575_v26  ;;  %v1031_v25 = vmul.f32 %v3584_v30, %v3584_v30 }
 0x2b4   : > { %v1062_v19 = vmul.f32 %v1030_v44, %v3579_v12  ;;  %v1237_v58 = vmul.f32 0.5, %v1205_v23  ;;  %v1239_v39 = vmul.f32 0.5, %v1207_v48  ;;  %v1204_v31 = vadd.f32 1.0, %v3500_v17 }
 0x2b5   : > { %v1124_v38 = vadd.f32 %v1092_v22, %v3564_v18  ;;  %v1093_v34 = vmul.f32 0.044715, %v1061_v62  ;;  %v1063_v61 = vmul.f32 %v1031_v25, %v3584_v30  ;;  %v1206_v2 = vadd.f32 1.0, %v3510_v8 }
 0x2b6   : > { %v1094_v28 = vmul.f32 0.044715, %v1062_v19  ;;  %v1269_v43 = vmul.f32 %v1237_v58, %v3415_v29  ;;  %v1271_v40 = vmul.f32 %v1239_v39, %v3427_v3  ;;  %v1236_v15 = vmul.f32 0.5, %v1204_v31 }
 0x2b7   : > { %v1156_v37 = vmul.f32 0.7978846, %v1124_v38  ;;  %v1125_v60 = vadd.f32 %v1093_v34, %v3575_v26  ;;  %v1095_v36 = vmul.f32 0.044715, %v1063_v61  ;;  %v1238_v49 = vmul.f32 0.5, %v1206_v2 }
 0x2b8   : > { %v1126_v17 = vadd.f32 %v1094_v28, %v3579_v12  ;;  %v1303_v52 = vpack.c.bf16 %v1271_v40, %v1269_v43  ;;  %v1268_v14 = vmul.f32 %v1236_v15, %v3412_v13  ;;  %v1209_v44 = vadd.f32 1.0, %v3535_v55 }
 0x2b9   : > { %v2647_v23 = vpop.eup %2646  ;;  %2654 = vtanh.f32 %v1156_v37  ;;  %v1157_v8 = vmul.f32 0.7978846, %v1125_v60  ;;  %v1127_v29 = vadd.f32 %v1095_v36, %v3584_v30  ;;  %v1270_v3 = vmul.f32 %v1238_v49, %v3422_v45 }
 0x2ba   : > { %v1158_v48 = vmul.f32 0.7978846, %v1126_v17  ;;  %1390 = vmatprep.subr.bf16.mxu1 %v1303_v52  ;;  %v1211_v22 = vadd.f32 1.0, %v3547_v4  ;;  %v1241_v62 = vmul.f32 0.5, %v1209_v44  ;;  %v1208_v25 = vadd.f32 1.0, %v3528_v59 }
 0x2bb   : > { %v2649_v19 = vpop.eup %2648  ;;  %2656 = vtanh.f32 %v1157_v8  ;;  %v1159_v58 = vmul.f32 0.7978846, %v1127_v29  ;;  %v1302_v13 = vpack.c.bf16 %v1270_v3, %v1268_v14  ;;  %v1210_v55 = vadd.f32 1.0, %v3541_v9 }
 0x2bc   : > { %v2651_v39 = vpop.eup %2650  ;;  %2658 = vtanh.f32 %v1158_v48  ;;  %v1243_v31 = vmul.f32 0.5, %v1211_v22  ;;  %v1273_v38 = vmul.f32 %v1241_v62, %v3449_v50  ;;  %v1240_v34 = vmul.f32 0.5, %v1208_v25 }
 0x2bd   : > { %v2653_v45 = vpop.eup %2652  ;;  %2660 = vtanh.f32 %v1159_v58  ;;  %1391 = vmatpush1.bf16.msra.mxu1 %v1302_v13  ;;  %v1242_v61 = vmul.f32 0.5, %v1210_v55  ;;  %v1213_v4 = vadd.f32 1.0, %v3571_v47  ;;  %v1215_v2 = vadd.f32 1.0, %v2645_v56 }
 0x2be   : > { %v1275_v59 = vmul.f32 %v1243_v31, %v3460_v1  ;;  %v1272_v28 = vmul.f32 %v1240_v34, %v3444_v32  ;;  %v1212_v43 = vadd.f32 1.0, %v3566_v35  ;;  %v1214_v9 = vadd.f32 1.0, %v3577_v11 }
 0x2bf   : > { %v1274_v40 = vmul.f32 %v1242_v61, %v3455_v57  ;;  %v1245_v15 = vmul.f32 0.5, %v1213_v4  ;;  %v1247_v50 = vmul.f32 0.5, %v1215_v2  ;;  %v1217_v37 = vadd.f32 1.0, %v2649_v19 }
 0x2c0   : > { %v1305_v60 = vpack.c.bf16 %v1275_v59, %v1273_v38  ;;  %v1244_v36 = vmul.f32 0.5, %v1212_v43  ;;  %v1246_v49 = vmul.f32 0.5, %v1214_v9  ;;  %v1219_v17 = vadd.f32 1.0, %v2653_v45 }
 0x2c1   : > { %v1304_v52 = vpack.c.bf16 %v1274_v40, %v1272_v28  ;;  %v1277_v47 = vmul.f32 %v1245_v15, %v3488_v24  ;;  %v1279_v1 = vmul.f32 %v1247_v50, %v3503_v5  ;;  %v1249_v56 = vmul.f32 0.5, %v1217_v37  ;;  %v1328_v40 = vpop.permute.xlu0 %1327 }
 0x2c2   : > { %1392 = vmatprep.subr.bf16.mxu1 %v1305_v60  ;;  %v1276_v32 = vmul.f32 %v1244_v36, %v3484_v10  ;;  %v1278_v35 = vmul.f32 %v1246_v49, %v3493_v16  ;;  %v1251_v11 = vmul.f32 0.5, %v1219_v17  ;;  %v1216_v57 = vadd.f32 1.0, %v2647_v23 }
 0x2c3   : > { %v2655_v14 = vpop.eup %2654  ;;  %1393 = vmatpush1.bf16.msra.mxu1 %v1304_v52  ;;  %v1307_v44 = vpack.c.bf16 %v1279_v1, %v1277_v47  ;;  %v1281_v8 = vmul.f32 %v1249_v56, %v3533_v27  ;;  %v1218_v29 = vadd.f32 1.0, %v2651_v39  ;;  %v4178_v59 = vmov 0  }
 0x2c4   : > { %v1306_v3 = vpack.c.bf16 %v1278_v35, %v1276_v32  ;;  %v1283_v48 = vmul.f32 %v1251_v11, %v3539_v41  ;;  %v1248_v24 = vmul.f32 0.5, %v1216_v57  ;;  %v1220_v22 = vadd.f32 1.0, %v2655_v14 }
 0x2c5   : > { %v2657_v5 = vpop.eup %2656  ;;  %1394 = vmatprep.subr.bf16.mxu1 %v1307_v44  ;;  %v1250_v62 = vmul.f32 0.5, %v1218_v29  ;;  %v1338_v1 = vpop.permute.xlu0 %1337 }
 0x2c6   : > { %v2659_v25 = vpop.eup %2658  ;;  %v1309_v10 = vpack.c.bf16 %v1283_v48, %v1281_v8  ;;  %v1221_v19 = vadd.f32 1.0, %v2657_v5  ;;  %v1280_v23 = vmul.f32 %v1248_v24, %v3525_v20  ;;  %v1252_v27 = vmul.f32 0.5, %v1220_v22 }
 0x2c7   : > { %v2661_v16 = vpop.eup %2660  ;;  %1395 = vmatpush1.bf16.msra.mxu1 %v1306_v3  ;;  %v1282_v58 = vmul.f32 %v1250_v62, %v3537_v42  ;;  %v1222_v13 = vadd.f32 1.0, %v2659_v25  ;;  %v2546_v42 = vld [vmem:[%s4143_s7] sm:$0xff]  }
 0x2c8   : > { %1396 = vmatprep.subr.bf16.mxu1 %v1309_v10  ;;  %v1223_v55 = vadd.f32 1.0, %v2661_v16  ;;  %v1253_v39 = vmul.f32 0.5, %v1221_v19  ;;  %v1284_v34 = vmul.f32 %v1252_v27, %v3564_v18  ;;  %v2547_v18 = vld [vmem:[%s4143_s7 + $0x8] sm:$0xff]  }
 0x2c9   : > { %v1308_v41 = vpack.c.bf16 %v1282_v58, %v1280_v23  ;;  %v1254_v31 = vmul.f32 0.5, %v1222_v13  ;;  %v1348_v8 = vpop.permute.xlu0 %1347 }
 0x2ca   : > { %v1255_v38 = vmul.f32 0.5, %v1223_v55  ;;  %v1285_v61 = vmul.f32 %v1253_v39, %v3575_v26  ;;  %v2548_v26 = vld [vmem:[%s4143_s7 + $0x10] sm:$0xff]  }
 0x2cb   : > { %1397 = vmatpush1.bf16.msra.mxu1 %v1308_v41  ;;  %v1286_v45 = vmul.f32 %v1254_v31, %v3579_v12  ;;  %v2549_v12 = vld [vmem:[%s4143_s7 + $0x18] sm:$0xff]  }
 0x2cc   : > { %v1287_v4 = vmul.f32 %v1255_v38, %v3584_v30  ;;  %v1323_v30 = vpop.permute.xlu1 %1322 }
 0x2cd   : > { %v1310_v20 = vpack.c.bf16 %v1286_v45, %v1284_v34  ;;  %v1358_v25 = vpop.permute.xlu0 %1357  ;;  %v4181_v34 = vld [vmem:[#allocation14_spill] sm:$0xff] }
 0x2ce   : > { %v1311_v2 = vpack.c.bf16 %v1287_v4, %v1285_v61  ;;  %v4182_v61 = vld [vmem:[#allocation15_spill] sm:$0xff] }
 0x2d0   : > { %1398 = vmatprep.subr.bf16.mxu1 %v1311_v2  ;;  %v1333_v49 = vpop.permute.xlu1 %1332  ;;  %v4183_v2 = vld [vmem:[#allocation16_spill] sm:$0xff] }
 0x2d1   : > { %1399 = vmatpush1.bf16.msra.mxu1 %v1310_v20 }
 0x2d4   : > { %1417 = vmatmul.mubr.bf16.vlgmr.msra.gmra.mrb[0].mxu1 %v2546_v42 }
 0x2d5   : > { %1426 = vmatprep.mubr.bf16.mxu1 %v4178_v59 }
 0x2dc   : > { %1427 = vmatmul.mubr.bf16.gmra.mrb[4].mxu1 %v2547_v18 }
 0x2dd   : > { %1436 = vmatprep.mubr.bf16.mxu1 %v4178_v59 }
 0x2e4   : > { %1437 = vmatmul.mubr.bf16.gmra.mrb[8].mxu1 %v2548_v26 }
 0x2e5   : > { %1446 = vmatprep.mubr.bf16.mxu1 %v4178_v59  ;;  %v4184_v59 = vld [vmem:[#allocation17_spill] sm:$0xff] }
 0x2ec   : > { %1447 = vmatmul.mubr.bf16.gmra.mrb[12].mxu1 %v2549_v12 }
 0x3a7   : > { %v1418_v28 = vpop.f32.mrb[0].mxu1 }
 0x3a8   : > { %v1419_v43 = vadd.f32 %v1418_v28, %v1323_v30  ;;  %v1420_v9 = vpop.f32.mrb[1].mxu1 }
 0x3a9   : > { %v1422_v15 = vpop.f32.mrb[2].mxu1  ;;  %v1421_v19 = vadd.f32 %v1420_v9, %v1323_v30 }
 0x3aa   : > { %v3644_v50 = vadd.f32 %v1419_v43, %v3227_v6  ;;  %v1423_v37 = vadd.f32 %v1422_v15, %v1328_v40  ;;  %v1424_v60 = vpop.f32.mrb[3].mxu1 }
 0x3ab   : > { %v1425_v58 = vadd.f32 %v1424_v60, %v1328_v40  ;;  %v3675_v13 = vadd.f32 %v1421_v19, %v3206_v46 }
 0x3ac   : > { %v3647_v36 = vadd.f32 %v1423_v37, %v3230_v7  ;;  %1475 = vadd.xlane.f32.xlu1 %v3644_v50  ;;  %v1343_v7 = vpop.permute.xlu1 %1342 }
 0x3ad   : > { %v3679_v55 = vadd.f32 %v1425_v58, %v3210_v21 }
 0x3ae   : > { %1477 = vadd.xlane.f32.xlu0 %v3647_v36 }
 0x3af   : > { %v1428_v17 = vpop.f32.mrb[4].mxu1 }
 0x3b0   : > { %v1429_v52 = vadd.f32 %v1428_v17, %v1333_v49  ;;  %v1430_v47 = vpop.f32.mrb[5].mxu1 }
 0x3b1   : > { %v1432_v56 = vpop.f32.mrb[6].mxu1  ;;  %v1431_v27 = vadd.f32 %v1430_v47, %v1333_v49 }
 0x3b2   : > { %v3652_v32 = vadd.f32 %v1429_v52, %v3248_v51  ;;  %v1433_v6 = vadd.f32 %v1432_v56, %v1338_v1  ;;  %v1434_v35 = vpop.f32.mrb[7].mxu1 }
 0x3b3   : > { %v1435_v39 = vadd.f32 %v1434_v35, %v1338_v1 }
 0x3b4   : > { %v3655_v11 = vadd.f32 %v1433_v6, %v3252_v33  ;;  %1479 = vadd.xlane.f32.xlu0 %v3652_v32  ;;  %v1353_v33 = vpop.permute.xlu1 %1352 }
 0x3b6   : > { %1481 = vadd.xlane.f32.xlu1 %v3655_v11 }
 0x3b7   : > { %v1438_v57 = vpop.f32.mrb[8].mxu1 }
 0x3b8   : > { %v1439_v14 = vadd.f32 %v1438_v57, %v1343_v7  ;;  %v1440_v44 = vpop.f32.mrb[9].mxu1 }
 0x3b9   : > { %v1442_v29 = vpop.f32.mrb[10].mxu1  ;;  %v1441_v31 = vadd.f32 %v1440_v44, %v1343_v7 }
 0x3ba   : > { %v3660_v3 = vadd.f32 %v1439_v14, %v3273_v53  ;;  %v1443_v51 = vadd.f32 %v1442_v29, %v1348_v8  ;;  %v1444_v48 = vpop.f32.mrb[11].mxu1 }
 0x3bb   : > { %v1445_v46 = vadd.f32 %v1444_v48, %v1348_v8  ;;  %v3691_v45 = vadd.f32 %v1441_v31, %v4181_v34 }
 0x3bc   : > { %v3663_v24 = vadd.f32 %v1443_v51, %v3276_v54  ;;  %1483 = vadd.xlane.f32.xlu0 %v3660_v3 }
 0x3bd   : > { %v3695_v4 = vadd.f32 %v1445_v46, %v4182_v61 }
 0x3be   : > { %1485 = vadd.xlane.f32.xlu1 %v3663_v24 }
 0x3bf   : > { %v1448_v22 = vpop.f32.mrb[12].mxu1 }
 0x3c0   : > { %v1449_v5 = vadd.f32 %v1448_v22, %v1353_v33  ;;  %v1450_v62 = vpop.f32.mrb[13].mxu1 }
 0x3c1   : > { %v1452_v10 = vpop.f32.mrb[14].mxu1  ;;  %v1451_v21 = vadd.f32 %v1450_v62, %v1353_v33  ;;  %v2550_v33 = vld [vmem:[%s4145_s9] sm:$0xff]  }
 0x3c2   : > { %v3668_v16 = vadd.f32 %v1449_v5, %v3295_v63  ;;  %v1453_v53 = vadd.f32 %v1452_v10, %v1358_v25  ;;  %v1454_v23 = vpop.f32.mrb[15].mxu1  ;;  %v4179_v63 = vld [vmem:[#allocation12_spill] sm:$0xff]  ;;  %2405 = vmatprep.subr.bf16.mxu1 %v2550_v33 }
 0x3c3   : > { %v3683_v41 = vadd.f32 %v1431_v27, %v4179_v63  ;;  %v1455_v20 = vadd.f32 %v1454_v23, %v1358_v25  ;;  %v3699_v42 = vadd.f32 %v1451_v21, %v4183_v2  ;;  %v2551_v25 = vld [vmem:[%s4145_s9 + $0x8] sm:$0xff]   ;;  %2406 = vmatpush3.bf16.msra.mxu1 %v2550_v33  ;;  %v2554_v33 = vld [vmem:[%s4145_s9 + $0x20] sm:$0xff]  }
 0x3c4   : > { %v3671_v54 = vadd.f32 %v1453_v53, %v3298_v0  ;;  %1487 = vadd.xlane.f32.xlu0 %v3668_v16  ;;  %v4180_v0 = vld [vmem:[#allocation13_spill] sm:$0xff]  ;;  %2407 = vmatprep.subr.bf16.mxu1 %v2551_v25 }
 0x3c5   : > { %v3687_v38 = vadd.f32 %v1435_v39, %v4180_v0  ;;  %v3703_v18 = vadd.f32 %v1455_v20, %v4184_v59 }
 0x3c6   : > { %1489 = vadd.xlane.f32.xlu1 %v3671_v54 }
 0x3c7   : > { %2408 = vmatpush3.bf16.msra.mxu1 %v2551_v25  ;;  %v2557_v25 = vld [vmem:[%s4145_s9 + $0x38] sm:$0xff]  }
 0x3c8   : > { %1491 = vadd.xlane.f32.xlu0 %v3675_v13 }
 0x3ca   : > { %1493 = vadd.xlane.f32.xlu1 %v3679_v55 }
 0x3cc   : > { %1495 = vadd.xlane.f32.xlu0 %v3683_v41 }
 0x3ce   : > { %1497 = vadd.xlane.f32.xlu1 %v3687_v38 }
 0x3d0   : > { %1499 = vadd.xlane.f32.xlu0 %v3691_v45 }
 0x3d2   : > { %1501 = vadd.xlane.f32.xlu1 %v3695_v4 }
 0x3d4   : > { %1503 = vadd.xlane.f32.xlu0 %v3699_v42 }
 0x3d6   : > { %1505 = vadd.xlane.f32.xlu1 %v3703_v18 }
 0x439   : > { %v1476_v26 = vpop.xlane.xlu1 %1475 }
 0x43a   : > { %v1507_v12 = vmul.f32 0.0078125, %v1476_v26 }
 0x43b   : > { %v1478_v30 = vpop.xlane.xlu0 %1477 }
 0x43c   : > { %v3708_v28 = vsub.f32 %v3644_v50, %v1507_v12  ;;  %v1508_v43 = vmul.f32 0.0078125, %v1478_v30 }
 0x43e   : > { %v3711_v9 = vsub.f32 %v3647_v36, %v1508_v43  ;;  %v1539_v40 = vmul.f32 %v3708_v28, %v3708_v28 }
 0x440   : > { %1555 = vadd.xlane.f32.xlu0 %v1539_v40  ;;  %v1540_v15 = vmul.f32 %v3711_v9, %v3711_v9 }
 0x441   : > { %v1480_v37 = vpop.xlane.xlu0 %1479 }
 0x442   : > { %v1509_v60 = vmul.f32 0.0078125, %v1480_v37  ;;  %1557 = vadd.xlane.f32.xlu1 %v1540_v15 }
 0x443   : > { %v1482_v49 = vpop.xlane.xlu1 %1481 }
 0x444   : > { %v3718_v17 = vsub.f32 %v3652_v32, %v1509_v60  ;;  %v1510_v52 = vmul.f32 0.0078125, %v1482_v49 }
 0x446   : > { %v3721_v47 = vsub.f32 %v3655_v11, %v1510_v52  ;;  %v1541_v1 = vmul.f32 %v3718_v17, %v3718_v17 }
 0x448   : > { %1559 = vadd.xlane.f32.xlu0 %v1541_v1  ;;  %v1542_v56 = vmul.f32 %v3721_v47, %v3721_v47 }
 0x449   : > { %v1484_v6 = vpop.xlane.xlu0 %1483 }
 0x44a   : > { %v1511_v35 = vmul.f32 0.0078125, %v1484_v6  ;;  %1561 = vadd.xlane.f32.xlu1 %v1542_v56 }
 0x44b   : > { %v1486_v7 = vpop.xlane.xlu1 %1485 }
 0x44c   : > { %v3728_v57 = vsub.f32 %v3660_v3, %v1511_v35  ;;  %v1512_v14 = vmul.f32 0.0078125, %v1486_v7 }
 0x44e   : > { %v3731_v44 = vsub.f32 %v3663_v24, %v1512_v14  ;;  %v1543_v8 = vmul.f32 %v3728_v57, %v3728_v57  ;;  %v2552_v14 = vld [vmem:[%s4145_s9 + $0x10] sm:$0xff]  }
 0x44f   : > { %2409 = vmatprep.subr.bf16.mxu1 %v2552_v14 }
 0x450   : > { %1563 = vadd.xlane.f32.xlu0 %v1543_v8  ;;  %v1544_v29 = vmul.f32 %v3731_v44, %v3731_v44  ;;  %2410 = vmatpush3.bf16.msra.mxu1 %v2552_v14 }
 0x451   : > { %v1488_v51 = vpop.xlane.xlu0 %1487 }
 0x452   : > { %v1513_v48 = vmul.f32 0.0078125, %v1488_v51  ;;  %1565 = vadd.xlane.f32.xlu1 %v1544_v29 }
 0x453   : > { %v1490_v22 = vpop.xlane.xlu1 %1489 }
 0x454   : > { %v3741_v5 = vsub.f32 %v3668_v16, %v1513_v48  ;;  %v1514_v62 = vmul.f32 0.0078125, %v1490_v22  ;;  %v2553_v48 = vld [vmem:[%s4145_s9 + $0x18] sm:$0xff]   ;;  %v2555_v22 = vld [vmem:[%s4145_s9 + $0x28] sm:$0xff]  }
 0x455   : > { %v1492_v10 = vpop.xlane.xlu0 %1491  ;;  %2411 = vmatprep.subr.bf16.mxu1 %v2553_v48 }
 0x456   : > { %v3747_v19 = vsub.f32 %v3671_v54, %v1514_v62  ;;  %v1515_v53 = vmul.f32 0.0078125, %v1492_v10  ;;  %v1545_v23 = vmul.f32 %v3741_v5, %v3741_v5  ;;  %2412 = vmatpush3.bf16.msra.mxu1 %v2553_v48  ;;  %v2556_v62 = vld [vmem:[%s4145_s9 + $0x30] sm:$0xff]   ;;  %v3814_v10 = vld [vmem:[%s4147_s11] sm:$0xff]  }
 0x457   : > { %v1494_v58 = vpop.xlane.xlu1 %1493  ;;  %2413 = vmatprep.subr.bf16.mxu1 %v2554_v33  ;;  %2437 = vmatprep.subr.bf16.mxu0 %v3814_v10 }
 0x458   : > { %v3752_v27 = vsub.f32 %v3675_v13, %v1515_v53  ;;  %v1516_v39 = vmul.f32 0.0078125, %v1494_v58  ;;  %1567 = vadd.xlane.f32.xlu0 %v1545_v23  ;;  %v1546_v63 = vmul.f32 %v3747_v19, %v3747_v19  ;;  %v3819_v53 = vld [vmem:[%s4147_s11 + $0x8] sm:$0xff]   ;;  %2438 = vmatpush3.bf16.msra.mxu0 %v3814_v10 }
 0x459   : > { %v1496_v31 = vpop.xlane.xlu0 %1495  ;;  %2439 = vmatprep.subr.bf16.mxu0 %v3819_v53 }
 0x45a   : > { %v3757_v0 = vsub.f32 %v3679_v55, %v1516_v39  ;;  %v1517_v46 = vmul.f32 0.0078125, %v1496_v31  ;;  %1569 = vadd.xlane.f32.xlu1 %v1546_v63  ;;  %v1547_v34 = vmul.f32 %v3752_v27, %v3752_v27  ;;  %2414 = vmatpush3.bf16.msra.mxu1 %v2554_v33 }
 0x45b   : > { %v1498_v21 = vpop.xlane.xlu1 %1497  ;;  %2415 = vmatprep.subr.bf16.mxu1 %v2555_v22 }
 0x45c   : > { %v3762_v61 = vsub.f32 %v3683_v41, %v1517_v46  ;;  %v1518_v20 = vmul.f32 0.0078125, %v1498_v21  ;;  %1571 = vadd.xlane.f32.xlu0 %v1547_v34  ;;  %v1548_v2 = vmul.f32 %v3757_v0, %v3757_v0  ;;  %2440 = vmatpush3.bf16.msra.mxu0 %v3819_v53 }
 0x45d   : > { %v1500_v59 = vpop.xlane.xlu0 %1499 }
 0x45e   : > { %v3767_v26 = vsub.f32 %v3687_v38, %v1518_v20  ;;  %v1519_v12 = vmul.f32 0.0078125, %v1500_v59  ;;  %1573 = vadd.xlane.f32.xlu1 %v1548_v2  ;;  %v1549_v30 = vmul.f32 %v3762_v61, %v3762_v61  ;;  %2416 = vmatpush3.bf16.msra.mxu1 %v2555_v22 }
 0x45f   : > { %v1502_v43 = vpop.xlane.xlu1 %1501  ;;  %2417 = vmatprep.subr.bf16.mxu1 %v2556_v62 }
 0x460   : > { %v3772_v40 = vsub.f32 %v3691_v45, %v1519_v12  ;;  %v1520_v15 = vmul.f32 0.0078125, %v1502_v43  ;;  %1575 = vadd.xlane.f32.xlu0 %v1549_v30  ;;  %v1550_v37 = vmul.f32 %v3767_v26, %v3767_v26  ;;  %v3829_v43 = vld [vmem:[%s4139_s3] ss:$0 sm:$0xff] }
 0x461   : > { %v1504_v60 = vpop.xlane.xlu0 %1503 }
 0x462   : > { %v3777_v49 = vsub.f32 %v3695_v4, %v1520_v15  ;;  %v1521_v52 = vmul.f32 0.0078125, %v1504_v60  ;;  %1577 = vadd.xlane.f32.xlu1 %v1550_v37  ;;  %v1551_v1 = vmul.f32 %v3772_v40, %v3772_v40  ;;  %2418 = vmatpush3.bf16.msra.mxu1 %v2556_v62 }
 0x463   : > { %v1506_v56 = vpop.xlane.xlu1 %1505  ;;  %2419 = vmatprep.subr.bf16.mxu1 %v2557_v25 }
 0x464   : > { %v3782_v6 = vsub.f32 %v3699_v42, %v1521_v52  ;;  %v1522_v35 = vmul.f32 0.0078125, %v1506_v56  ;;  %1579 = vadd.xlane.f32.xlu0 %v1551_v1  ;;  %v1552_v7 = vmul.f32 %v3777_v49, %v3777_v49 }
 0x466   : > { %v3790_v8 = vsub.f32 %v3703_v18, %v1522_v35  ;;  %1581 = vadd.xlane.f32.xlu1 %v1552_v7  ;;  %v1553_v29 = vmul.f32 %v3782_v6, %v3782_v6  ;;  %2420 = vmatpush3.bf16.msra.mxu1 %v2557_v25 }
 0x467   : > { %2469 = vmatprep.subr.bf16.mxu1 %v3814_v10 }
 0x468   : > { %1583 = vadd.xlane.f32.xlu0 %v1553_v29  ;;  %v1554_v51 = vmul.f32 %v3790_v8, %v3790_v8  ;;  %v3837_v29 = vld [vmem:[%s4140_s4] ss:$0 sm:$0xff] }
 0x46a   : > { %1585 = vadd.xlane.f32.xlu1 %v1554_v51 }
 0x4cd   : > { %v1556_v23 = vpop.xlane.xlu0 %1555 }
 0x4ce   : > { %v1587_v58 = vmul.f32 0.0078125, %v1556_v23 }
 0x4cf   : > { %v1558_v39 = vpop.xlane.xlu1 %1557 }
 0x4d0   : > { %v1603_v63 = vadd.f32 1e-05, %v1587_v58  ;;  %v1588_v31 = vmul.f32 0.0078125, %v1558_v39 }
 0x4d2   : > { %2662 = vrsqrt.f32 %v1603_v63  ;;  %v1604_v46 = vadd.f32 1e-05, %v1588_v31 }
 0x4d4   : > { %2664 = vrsqrt.f32 %v1604_v46 }
 0x4d5   : > { %v1560_v34 = vpop.xlane.xlu0 %1559 }
 0x4d6   : > { %v1589_v21 = vmul.f32 0.0078125, %v1560_v34 }
 0x4d7   : > { %v1562_v20 = vpop.xlane.xlu1 %1561 }
 0x4d8   : > { %v1605_v2 = vadd.f32 1e-05, %v1589_v21  ;;  %v1590_v59 = vmul.f32 0.0078125, %v1562_v20 }
 0x4da   : > { %2666 = vrsqrt.f32 %v1605_v2  ;;  %v1606_v12 = vadd.f32 1e-05, %v1590_v59 }
 0x4dc   : > { %v2663_v30 = vpop.eup %2662  ;;  %2668 = vrsqrt.f32 %v1606_v12 }
 0x4dd   : > { %v1564_v15 = vpop.xlane.xlu0 %1563  ;;  %v1635_v37 = vmul.f32 %v2663_v30, %v3708_v28 }
 0x4de   : > { %v2665_v60 = vpop.eup %2664  ;;  %v1591_v52 = vmul.f32 0.0078125, %v1564_v15 }
 0x4df   : > { %v1566_v1 = vpop.xlane.xlu1 %1565  ;;  %v1636_v56 = vmul.f32 %v2665_v60, %v3711_v9  ;;  %v1657_v35 = vmul.f32 %v3829_v43, %v1635_v37 }
 0x4e0   : > { %v1607_v7 = vadd.f32 1e-05, %v1591_v52  ;;  %v1592_v14 = vmul.f32 0.0078125, %v1566_v1 }
 0x4e1   : > { %v1658_v51 = vmul.f32 %v3829_v43, %v1636_v56  ;;  %v1679_v28 = vadd.f32 %v3837_v29, %v1657_v35 }
 0x4e2   : > { %2670 = vrsqrt.f32 %v1607_v7  ;;  %v1608_v48 = vadd.f32 1e-05, %v1592_v14 }
 0x4e3   : > { %v1680_v33 = vadd.f32 %v3837_v29, %v1658_v51 }
 0x4e4   : > { %v2667_v22 = vpop.eup %2666  ;;  %2672 = vrsqrt.f32 %v1608_v48 }
 0x4e5   : > { %v1637_v9 = vmul.f32 %v2667_v22, %v3718_v17  ;;  %v1568_v62 = vpop.xlane.xlu0 %1567  ;;  %v1695_v25 = vpack.c.bf16 %v1680_v33, %v1679_v28 }
 0x4e6   : > { %v2669_v23 = vpop.eup %2668  ;;  %v1593_v58 = vmul.f32 0.0078125, %v1568_v62 }
 0x4e7   : > { %v1659_v39 = vmul.f32 %v3829_v43, %v1637_v9  ;;  %v1638_v63 = vmul.f32 %v2669_v23, %v3721_v47  ;;  %2421 = vmatprep.mubr.bf16.mxu1 %v1695_v25  ;;  %v1570_v31 = vpop.xlane.xlu1 %1569 }
 0x4e8   : > { %v1609_v46 = vadd.f32 1e-05, %v1593_v58  ;;  %v1594_v34 = vmul.f32 0.0078125, %v1570_v31 }
 0x4e9   : > { %v1660_v21 = vmul.f32 %v3829_v43, %v1638_v63  ;;  %v1572_v20 = vpop.xlane.xlu0 %1571  ;;  %v1681_v17 = vadd.f32 %v3837_v29, %v1659_v39 }
 0x4ea   : > { %2674 = vrsqrt.f32 %v1609_v46  ;;  %v1610_v2 = vadd.f32 1e-05, %v1594_v34  ;;  %v1595_v59 = vmul.f32 0.0078125, %v1572_v20 }
 0x4eb   : > { %v1574_v12 = vpop.xlane.xlu1 %1573  ;;  %v1682_v30 = vadd.f32 %v3837_v29, %v1660_v21 }
 0x4ec   : > { %v2671_v15 = vpop.eup %2670  ;;  %2676 = vrsqrt.f32 %v1610_v2  ;;  %v1611_v37 = vadd.f32 1e-05, %v1595_v59  ;;  %v1596_v60 = vmul.f32 0.0078125, %v1574_v12 }
 0x4ed   : > { %v1576_v47 = vpop.xlane.xlu0 %1575  ;;  %v1696_v52 = vpack.c.bf16 %v1682_v30, %v1681_v17  ;;  %v1639_v1 = vmul.f32 %v2671_v15, %v3728_v57 }
 0x4ee   : > { %v2673_v56 = vpop.eup %2672  ;;  %2678 = vrsqrt.f32 %v1611_v37  ;;  %v1612_v35 = vadd.f32 1e-05, %v1596_v60  ;;  %v1597_v7 = vmul.f32 0.0078125, %v1576_v47 }
 0x4ef   : > { %2422 = vmatmul.mubr.bf16.vlgmr.msra.gmra.mrb[16].mxu1 %v1696_v52  ;;  %v1578_v14 = vpop.xlane.xlu1 %1577  ;;  %v1640_v51 = vmul.f32 %v2673_v56, %v3731_v44  ;;  %v1661_v48 = vmul.f32 %v3829_v43, %v1639_v1 }
 0x4f0   : > { %2680 = vrsqrt.f32 %v1612_v35  ;;  %v1613_v28 = vadd.f32 1e-05, %v1597_v7  ;;  %v1598_v33 = vmul.f32 0.0078125, %v1578_v14  ;;  %2477 = vmatpush3.bf16.msra.mxu1 %v3814_v10 }
 0x4f1   : > { %v1580_v22 = vpop.xlane.xlu0 %1579  ;;  %v1662_v9 = vmul.f32 %v3829_v43, %v1640_v51  ;;  %2470 = vmatprep.subr.bf16.mxu1 %v3819_v53  ;;  %v1683_v23 = vadd.f32 %v3837_v29, %v1661_v48 }
 0x4f2   : > { %2682 = vrsqrt.f32 %v1613_v28  ;;  %v1614_v57 = vadd.f32 1e-05, %v1598_v33  ;;  %v1599_v62 = vmul.f32 0.0078125, %v1580_v22 }
 0x4f3   : > { %v1582_v25 = vpop.xlane.xlu1 %1581  ;;  %v1684_v44 = vadd.f32 %v3837_v29, %v1662_v9 }
 0x4f4   : > { %v2675_v58 = vpop.eup %2674  ;;  %2684 = vrsqrt.f32 %v1614_v57  ;;  %v1615_v39 = vadd.f32 1e-05, %v1599_v62  ;;  %v1600_v63 = vmul.f32 0.0078125, %v1582_v25  ;;  %2478 = vmatpush3.bf16.msra.mxu1 %v3819_v53 }
 0x4f5   : > { %v1584_v10 = vpop.xlane.xlu0 %1583  ;;  %v1697_v31 = vpack.c.bf16 %v1684_v44, %v1683_v23  ;;  %v1641_v46 = vmul.f32 %v2675_v58, %v3741_v5 }
 0x4f6   : > { %v2677_v34 = vpop.eup %2676  ;;  %2686 = vrsqrt.f32 %v1615_v39  ;;  %v1616_v21 = vadd.f32 1e-05, %v1600_v63  ;;  %v1601_v20 = vmul.f32 0.0078125, %v1584_v10 }
 0x4f7   : > { %2425 = vmatprep.mubr.bf16.mxu1 %v1697_v31  ;;  %v1586_v2 = vpop.xlane.xlu1 %1585  ;;  %v1642_v59 = vmul.f32 %v2677_v34, %v3747_v19  ;;  %v1663_v12 = vmul.f32 %v3829_v43, %v1641_v46 }
 0x4f8   : > { %v2679_v17 = vpop.eup %2678  ;;  %2688 = vrsqrt.f32 %v1616_v21  ;;  %v1617_v30 = vadd.f32 1e-05, %v1601_v20  ;;  %v1602_v15 = vmul.f32 0.0078125, %v1586_v2 }
 0x4f9   : > { %v1664_v53 = vmul.f32 %v3829_v43, %v1642_v59  ;;  %v1643_v37 = vmul.f32 %v2679_v17, %v3752_v27  ;;  %v1685_v47 = vadd.f32 %v3837_v29, %v1663_v12  ;;  %v2564_v12 = vld [vmem:[%s4147_s11 + $0x30] sm:$0xff]   ;;  %v2565_v17 = vld [vmem:[%s4147_s11 + $0x38] sm:$0xff]  }
 0x4fa   : > { %v2681_v60 = vpop.eup %2680  ;;  %2690 = vrsqrt.f32 %v1617_v30  ;;  %v1618_v5 = vadd.f32 1e-05, %v1602_v15  ;;  %v3908_v30 = vld [vmem:[%s4146_s10] ss:$0 sm:$0xff] }
 0x4fb   : > { %v1686_v52 = vadd.f32 %v3837_v29, %v1664_v53  ;;  %v1644_v1 = vmul.f32 %v2681_v60, %v3757_v0  ;;  %v1665_v19 = vmul.f32 %v3829_v43, %v1643_v37 }
 0x4fc   : > { %v2683_v56 = vpop.eup %2682  ;;  %2692 = vrsqrt.f32 %v1618_v5 }
 0x4fd   : > { %v1698_v35 = vpack.c.bf16 %v1686_v52, %v1685_v47  ;;  %v1666_v7 = vmul.f32 %v3829_v43, %v1644_v1  ;;  %v1645_v14 = vmul.f32 %v2683_v56, %v3762_v61  ;;  %v1687_v27 = vadd.f32 %v3837_v29, %v1665_v19 }
 0x4fe   : > { %v2685_v51 = vpop.eup %2684 }
 0x4ff   : > { %2426 = vmatmul.mubr.bf16.gmra.mrb[20].mxu1 %v1698_v35  ;;  %v1688_v48 = vadd.f32 %v3837_v29, %v1666_v7  ;;  %v1646_v28 = vmul.f32 %v2685_v51, %v3767_v26  ;;  %v1667_v33 = vmul.f32 %v3829_v43, %v1645_v14 }
 0x500   : > { %v2687_v0 = vpop.eup %2686 }
 0x501   : > { %v1699_v22 = vpack.c.bf16 %v1688_v48, %v1687_v27  ;;  %v1668_v9 = vmul.f32 %v3829_v43, %v1646_v28  ;;  %v1647_v57 = vmul.f32 %v2687_v0, %v3772_v40  ;;  %v1689_v61 = vadd.f32 %v3837_v29, %v1667_v33 }
 0x502   : > { %v2689_v62 = vpop.eup %2688 }
 0x503   : > { %2429 = vmatprep.mubr.bf16.mxu1 %v1699_v22  ;;  %v1690_v25 = vadd.f32 %v3837_v29, %v1668_v9  ;;  %v1648_v23 = vmul.f32 %v2689_v62, %v3777_v49  ;;  %v1669_v44 = vmul.f32 %v3829_v43, %v1647_v57 }
 0x504   : > { %v2691_v58 = vpop.eup %2690 }
 0x505   : > { %v1700_v26 = vpack.c.bf16 %v1690_v25, %v1689_v61  ;;  %v1670_v39 = vmul.f32 %v3829_v43, %v1648_v23  ;;  %v1649_v63 = vmul.f32 %v2691_v58, %v3782_v6  ;;  %v1691_v40 = vadd.f32 %v3837_v29, %v1669_v44  ;;  %v2560_v6 = vld [vmem:[%s4147_s11 + $0x10] sm:$0xff]  }
 0x506   : > { %v2693_v10 = vpop.eup %2692  ;;  %2441 = vmatprep.subr.bf16.mxu0 %v2560_v6  ;;  %2471 = vmatprep.subr.bf16.mxu1 %v2560_v6 }
 0x507   : > { %2430 = vmatmul.mubr.bf16.gmra.mrb[24].mxu1 %v1700_v26  ;;  %v1692_v31 = vadd.f32 %v3837_v29, %v1670_v39  ;;  %v1650_v46 = vmul.f32 %v2693_v10, %v3790_v8  ;;  %v1671_v34 = vmul.f32 %v3829_v43, %v1649_v63  ;;  %2442 = vmatpush3.bf16.msra.mxu0 %v2560_v6  ;;  %v2561_v8 = vld [vmem:[%s4147_s11 + $0x18] sm:$0xff]  }
 0x508   : > { %2479 = vmatpush3.bf16.msra.mxu1 %v2560_v6  ;;  %2443 = vmatprep.subr.bf16.mxu0 %v2561_v8 }
 0x509   : > { %v1701_v21 = vpack.c.bf16 %v1692_v31, %v1691_v40  ;;  %v1672_v49 = vmul.f32 %v3829_v43, %v1650_v46  ;;  %v1693_v20 = vadd.f32 %v3837_v29, %v1671_v34  ;;  %2472 = vmatprep.subr.bf16.mxu1 %v2561_v8  ;;  %v2562_v43 = vld [vmem:[%s4147_s11 + $0x20] sm:$0xff]  }
 0x50b   : > { %2433 = vmatprep.mubr.bf16.mxu1 %v1701_v21  ;;  %v1694_v2 = vadd.f32 %v3837_v29, %v1672_v49  ;;  %2444 = vmatpush3.bf16.msra.mxu0 %v2561_v8  ;;  %v2563_v29 = vld [vmem:[%s4147_s11 + $0x28] sm:$0xff]  }
 0x50c   : > { %2480 = vmatpush3.bf16.msra.mxu1 %v2561_v8  ;;  %2445 = vmatprep.subr.bf16.mxu0 %v2562_v43 }
 0x50d   : > { %v1702_v59 = vpack.c.bf16 %v1694_v2, %v1693_v20  ;;  %2473 = vmatprep.subr.bf16.mxu1 %v2562_v43 }
 0x50f   : > { %2434 = vmatmul.mubr.bf16.gmra.mrb[28].mxu1 %v1702_v59  ;;  %2446 = vmatpush3.bf16.msra.mxu0 %v2562_v43 }
 0x510   : > { %2481 = vmatpush3.bf16.msra.mxu1 %v2562_v43  ;;  %2447 = vmatprep.subr.bf16.mxu0 %v2563_v29 }
 0x511   : > { %2474 = vmatprep.subr.bf16.mxu1 %v2563_v29 }
 0x513   : > { %2448 = vmatpush3.bf16.msra.mxu0 %v2563_v29 }
 0x514   : > { %2482 = vmatpush3.bf16.msra.mxu1 %v2563_v29  ;;  %2449 = vmatprep.subr.bf16.mxu0 %v2564_v12 }
 0x515   : > { %2475 = vmatprep.subr.bf16.mxu1 %v2564_v12 }
 0x517   : > { %2450 = vmatpush3.bf16.msra.mxu0 %v2564_v12 }
 0x518   : > { %2483 = vmatpush3.bf16.msra.mxu1 %v2564_v12  ;;  %2451 = vmatprep.subr.bf16.mxu0 %v2565_v17 }
 0x519   : > { %2476 = vmatprep.subr.bf16.mxu1 %v2565_v17 }
 0x51b   : > { %2452 = vmatpush3.bf16.msra.mxu0 %v2565_v17 }
 0x51c   : > { %2484 = vmatpush3.bf16.msra.mxu1 %v2565_v17 }
 0x5c2   : > { %v2423_v15 = vpop.f32.mrb[16].mxu1 }
 0x5c3   : > { %v3911_v53 = vadd.f32 %v2423_v15, %v3908_v30  ;;  %v1808_v37 = vpop.f32.mrb[17].mxu1 }
 0x5c4   : > { %v3914_v60 = vadd.f32 %v3908_v30, %v1808_v37  ;;  %v2424_v5 = vpop.f32.mrb[18].mxu1 }
 0x5c5   : > { %v1873_v47 = vmul.f32 %v3911_v53, %v3911_v53  ;;  %v3919_v52 = vadd.f32 %v2424_v5, %v3908_v30  ;;  %v1811_v1 = vpop.f32.mrb[19].mxu1 }
 0x5c6   : > { %v1871_v19 = vmul.f32 %v3914_v60, %v3914_v60  ;;  %v3924_v56 = vadd.f32 %v3908_v30, %v1811_v1 }
 0x5c7   : > { %v1889_v35 = vmul.f32 %v1873_v47, %v3911_v53  ;;  %v1874_v7 = vmul.f32 %v3919_v52, %v3919_v52 }
 0x5c8   : > { %v1887_v14 = vmul.f32 %v1871_v19, %v3914_v60  ;;  %v1872_v51 = vmul.f32 %v3924_v56, %v3924_v56 }
 0x5c9   : > { %v1905_v27 = vmul.f32 0.044715, %v1889_v35  ;;  %v1890_v48 = vmul.f32 %v1874_v7, %v3919_v52 }
 0x5ca   : > { %v1903_v28 = vmul.f32 0.044715, %v1887_v14  ;;  %v1888_v33 = vmul.f32 %v1872_v51, %v3924_v56 }
 0x5cb   : > { %v1921_v0 = vadd.f32 %v1905_v27, %v3911_v53  ;;  %v1906_v22 = vmul.f32 0.044715, %v1890_v48 }
 0x5cc   : > { %v1919_v9 = vadd.f32 %v1903_v28, %v3914_v60  ;;  %v1904_v57 = vmul.f32 0.044715, %v1888_v33 }
 0x5cd   : > { %v1937_v62 = vmul.f32 0.7978846, %v1921_v0  ;;  %v1922_v61 = vadd.f32 %v1906_v22, %v3919_v52 }
 0x5ce   : > { %v1935_v25 = vmul.f32 0.7978846, %v1919_v9  ;;  %v1920_v23 = vadd.f32 %v1904_v57, %v3924_v56 }
 0x5cf   : > { %2694 = vtanh.f32 %v1937_v62  ;;  %v1938_v44 = vmul.f32 0.7978846, %v1922_v61 }
 0x5d0   : > { %2696 = vtanh.f32 %v1935_v25  ;;  %v1936_v58 = vmul.f32 0.7978846, %v1920_v23 }
 0x5d1   : > { %2698 = vtanh.f32 %v1938_v44 }
 0x5d2   : > { %v2427_v26 = vpop.f32.mrb[20].mxu1  ;;  %2700 = vtanh.f32 %v1936_v58 }
 0x5d3   : > { %v3939_v39 = vadd.f32 %v2427_v26, %v3908_v30  ;;  %v1824_v63 = vpop.f32.mrb[21].mxu1 }
 0x5d4   : > { %v3942_v10 = vadd.f32 %v3908_v30, %v1824_v63  ;;  %v2428_v40 = vpop.f32.mrb[22].mxu1 }
 0x5d5   : > { %v1877_v31 = vmul.f32 %v3939_v39, %v3939_v39  ;;  %v3947_v46 = vadd.f32 %v2428_v40, %v3908_v30  ;;  %v1827_v34 = vpop.f32.mrb[23].mxu1 }
 0x5d6   : > { %v1875_v21 = vmul.f32 %v3942_v10, %v3942_v10  ;;  %v3952_v49 = vadd.f32 %v3908_v30, %v1827_v34 }
 0x5d7   : > { %v1893_v20 = vmul.f32 %v1877_v31, %v3939_v39  ;;  %v1878_v2 = vmul.f32 %v3947_v46, %v3947_v46 }
 0x5d8   : > { %v1891_v59 = vmul.f32 %v1875_v21, %v3942_v10  ;;  %v1876_v6 = vmul.f32 %v3952_v49, %v3952_v49 }
 0x5d9   : > { %v2695_v8 = vpop.eup %2694  ;;  %v1909_v43 = vmul.f32 0.044715, %v1893_v20  ;;  %v1894_v29 = vmul.f32 %v1878_v2, %v3947_v46 }
 0x5da   : > { %v2697_v12 = vpop.eup %2696  ;;  %v1969_v17 = vadd.f32 1.0, %v2695_v8  ;;  %v1907_v15 = vmul.f32 0.044715, %v1891_v59  ;;  %v1892_v37 = vmul.f32 %v1876_v6, %v3952_v49  ;;  %v2431_v5 = vpop.f32.mrb[24].mxu1 }
 0x5db   : > { %v2699_v47 = vpop.eup %2698  ;;  %v1925_v1 = vadd.f32 %v1909_v43, %v3939_v39  ;;  %v1910_v19 = vmul.f32 0.044715, %v1894_v29  ;;  %v3964_v35 = vadd.f32 %v2431_v5, %v3908_v30  ;;  %v1840_v7 = vpop.f32.mrb[25].mxu1  ;;  %v1967_v14 = vadd.f32 1.0, %v2697_v12 }
 0x5dc   : > { %v1985_v51 = vmul.f32 0.5, %v1969_v17  ;;  %v1970_v27 = vadd.f32 1.0, %v2699_v47  ;;  %v1923_v48 = vadd.f32 %v1907_v15, %v3942_v10  ;;  %v1908_v28 = vmul.f32 0.044715, %v1892_v37  ;;  %v2432_v33 = vpop.f32.mrb[26].mxu1  ;;  %v2701_v58 = vpop.eup %2700 }
 0x5dd   : > { %v1941_v0 = vmul.f32 0.7978846, %v1925_v1  ;;  %v1926_v22 = vadd.f32 %v1910_v19, %v3947_v46  ;;  %v1881_v9 = vmul.f32 %v3964_v35, %v3964_v35  ;;  %v3971_v57 = vadd.f32 %v3908_v30, %v1840_v7  ;;  %v1843_v62 = vpop.f32.mrb[27].mxu1 }
 0x5de   : > { %v3974_v61 = vmul.f32 %v1985_v51, %v3911_v53  ;;  %v1986_v25 = vmul.f32 0.5, %v1970_v27  ;;  %v1939_v23 = vmul.f32 0.7978846, %v1923_v48  ;;  %v1924_v44 = vadd.f32 %v1908_v28, %v3952_v49 }
 0x5df   : > { %2702 = vtanh.f32 %v1941_v0  ;;  %v1942_v26 = vmul.f32 0.7978846, %v1926_v22  ;;  %v1897_v63 = vmul.f32 %v1881_v9, %v3964_v35  ;;  %v1879_v40 = vmul.f32 %v3971_v57, %v3971_v57 }
 0x5e0   : > { %v3981_v31 = vmul.f32 %v1986_v25, %v3919_v52  ;;  %2704 = vtanh.f32 %v1939_v23  ;;  %v1940_v34 = vmul.f32 0.7978846, %v1924_v44  ;;  %v3984_v53 = vadd.f32 %v2432_v33, %v3908_v30 }
 0x5e1   : > { %2706 = vtanh.f32 %v1942_v26  ;;  %v1913_v21 = vmul.f32 0.044715, %v1897_v63  ;;  %v1895_v20 = vmul.f32 %v1879_v40, %v3971_v57  ;;  %v3988_v2 = vadd.f32 %v3908_v30, %v1843_v62 }
 0x5e2   : > { %v2016_v59 = vpack.c.bf16 %v3981_v31, %v3974_v61  ;;  %2708 = vtanh.f32 %v1940_v34  ;;  %v1882_v52 = vmul.f32 %v3984_v53, %v3984_v53  ;;  %v2435_v6 = vpop.f32.mrb[28].mxu1  ;;  %v1968_v8 = vadd.f32 1.0, %v2701_v58 }
 0x5e3   : > { %v1929_v43 = vadd.f32 %v1913_v21, %v3964_v35  ;;  %v1911_v29 = vmul.f32 0.044715, %v1895_v20  ;;  %v1880_v12 = vmul.f32 %v3988_v2, %v3988_v2  ;;  %v3998_v17 = vadd.f32 %v2435_v6, %v3908_v30  ;;  %v1856_v15 = vpop.f32.mrb[29].mxu1 }
 0x5e4   : > { %v1898_v37 = vmul.f32 %v1882_v52, %v3984_v53  ;;  %v4002_v5 = vadd.f32 %v3908_v30, %v1856_v15  ;;  %v2436_v47 = vpop.f32.mrb[30].mxu1  ;;  %v1983_v1 = vmul.f32 0.5, %v1967_v14  ;;  %v1984_v19 = vmul.f32 0.5, %v1968_v8 }
 0x5e5   : > { %v1945_v7 = vmul.f32 0.7978846, %v1929_v43  ;;  %v1927_v51 = vadd.f32 %v1911_v29, %v3971_v57  ;;  %v1896_v27 = vmul.f32 %v1880_v12, %v3988_v2  ;;  %v1885_v48 = vmul.f32 %v3998_v17, %v3998_v17  ;;  %v1859_v28 = vpop.f32.mrb[31].mxu1 }
 0x5e6   : > { %v1914_v33 = vmul.f32 0.044715, %v1898_v37  ;;  %v1883_v0 = vmul.f32 %v4002_v5, %v4002_v5  ;;  %v4011_v22 = vadd.f32 %v2436_v47, %v3908_v30  ;;  %v4014_v9 = vadd.f32 %v3908_v30, %v1859_v28 }
 0x5e7   : > { %2710 = vtanh.f32 %v1945_v7  ;;  %v1943_v14 = vmul.f32 0.7978846, %v1927_v51  ;;  %v1912_v62 = vmul.f32 0.044715, %v1896_v27  ;;  %v1901_v25 = vmul.f32 %v1885_v48, %v3998_v17 }
 0x5e8   : > { %v1930_v23 = vadd.f32 %v1914_v33, %v3984_v53  ;;  %v1899_v44 = vmul.f32 %v1883_v0, %v4002_v5  ;;  %v1886_v58 = vmul.f32 %v4011_v22, %v4011_v22  ;;  %v1884_v26 = vmul.f32 %v4014_v9, %v4014_v9 }
 0x5e9   : > { %v2703_v63 = vpop.eup %2702  ;;  %2712 = vtanh.f32 %v1943_v14  ;;  %v1928_v30 = vadd.f32 %v1912_v62, %v3988_v2  ;;  %v1917_v40 = vmul.f32 0.044715, %v1901_v25  ;;  %v1999_v34 = vmul.f32 %v1983_v1, %v3914_v60 }
 0x5ea   : > { %v2705_v21 = vpop.eup %2704  ;;  %v1946_v20 = vmul.f32 0.7978846, %v1930_v23  ;;  %v1915_v52 = vmul.f32 0.044715, %v1899_v44  ;;  %v1902_v6 = vmul.f32 %v1886_v58, %v4011_v22  ;;  %v1900_v8 = vmul.f32 %v1884_v26, %v4014_v9 }
 0x5eb   : > { %v2707_v43 = vpop.eup %2706  ;;  %v1944_v29 = vmul.f32 0.7978846, %v1928_v30  ;;  %v1933_v12 = vadd.f32 %v1917_v40, %v3998_v17  ;;  %v2000_v15 = vmul.f32 %v1984_v19, %v3924_v56  ;;  %v1971_v37 = vadd.f32 1.0, %v2705_v21 }
 0x5ec   : > { %v2709_v47 = vpop.eup %2708  ;;  %2714 = vtanh.f32 %v1946_v20  ;;  %v1931_v7 = vadd.f32 %v1915_v52, %v4002_v5  ;;  %v1918_v51 = vmul.f32 0.044715, %v1902_v6  ;;  %v1916_v60 = vmul.f32 0.044715, %v1900_v8 }
 0x5ed   : > { %2716 = vtanh.f32 %v1944_v29  ;;  %v1949_v1 = vmul.f32 0.7978846, %v1933_v12  ;;  %v2015_v27 = vpack.c.bf16 %v2000_v15, %v1999_v34  ;;  %v1972_v48 = vadd.f32 1.0, %v2709_v47 }
 0x5ee   : > { %v1947_v28 = vmul.f32 0.7978846, %v1931_v7  ;;  %v1934_v33 = vadd.f32 %v1918_v51, %v4011_v22  ;;  %v1932_v0 = vadd.f32 %v1916_v60, %v4014_v9  ;;  %v1987_v14 = vmul.f32 0.5, %v1971_v37 }
 0x5ef   : > { %2718 = vtanh.f32 %v1949_v1  ;;  %2453 = vmatprep.mubr.bf16.mxu0 %v2015_v27  ;;  %v1988_v56 = vmul.f32 0.5, %v1972_v48  ;;  %v1973_v19 = vadd.f32 1.0, %v2703_v63  ;;  %v1974_v62 = vadd.f32 1.0, %v2707_v43 }
 0x5f0   : > { %2720 = vtanh.f32 %v1947_v28  ;;  %v1950_v25 = vmul.f32 0.7978846, %v1934_v33  ;;  %v1948_v23 = vmul.f32 0.7978846, %v1932_v0  ;;  %2454 = vmatmul.mubr.bf16.vlgmr.msra.gmra.mrb[32].mxu0 %v2016_v59  ;;  %v2003_v58 = vmul.f32 %v1987_v14, %v3942_v10 }
 0x5f1   : > { %v2711_v44 = vpop.eup %2710  ;;  %v2004_v26 = vmul.f32 %v1988_v56, %v3952_v49  ;;  %v1989_v30 = vmul.f32 0.5, %v1973_v19  ;;  %v1990_v40 = vmul.f32 0.5, %v1974_v62 }
 0x5f2   : > { %2722 = vtanh.f32 %v1950_v25  ;;  %v1977_v34 = vadd.f32 1.0, %v2711_v44  ;;  %v2354_v44 = vld [vmem:[%s4148_s12] ss:$0 sm:$0xff] }
 0x5f3   : > { %v2713_v21 = vpop.eup %2712  ;;  %2724 = vtanh.f32 %v1948_v23  ;;  %v2017_v63 = vpack.c.bf16 %v2004_v26, %v2003_v58  ;;  %v2005_v20 = vmul.f32 %v1989_v30, %v3939_v39  ;;  %v2006_v52 = vmul.f32 %v1990_v40, %v3947_v46 }
 0x5f4   : > { %v1975_v6 = vadd.f32 1.0, %v2713_v21  ;;  %v1993_v10 = vmul.f32 0.5, %v1977_v34 }
 0x5f5   : > { %2457 = vmatprep.mubr.bf16.mxu0 %v2017_v63  ;;  %v2018_v61 = vpack.c.bf16 %v2006_v52, %v2005_v20 }
 0x5f6   : > { %v2715_v31 = vpop.eup %2714  ;;  %v1991_v43 = vmul.f32 0.5, %v1975_v6  ;;  %v2009_v7 = vmul.f32 %v1993_v10, %v3964_v35 }
 0x5f7   : > { %v2717_v59 = vpop.eup %2716  ;;  %v1978_v8 = vadd.f32 1.0, %v2715_v31 }
 0x5f8   : > { %2458 = vmatmul.mubr.bf16.gmra.mrb[36].mxu0 %v2018_v61  ;;  %v1976_v49 = vadd.f32 1.0, %v2717_v59  ;;  %v2007_v60 = vmul.f32 %v1991_v43, %v3971_v57 }
 0x5f9   : > { %v2719_v29 = vpop.eup %2718  ;;  %v1994_v12 = vmul.f32 0.5, %v1978_v8 }
 0x5fa   : > { %v2721_v15 = vpop.eup %2720  ;;  %v1981_v37 = vadd.f32 1.0, %v2719_v29  ;;  %v1992_v47 = vmul.f32 0.5, %v1976_v49 }
 0x5fb   : > { %v2010_v39 = vmul.f32 %v1994_v12, %v3984_v53  ;;  %v1979_v46 = vadd.f32 1.0, %v2721_v15 }
 0x5fc   : > { %v2723_v51 = vpop.eup %2722  ;;  %v2008_v1 = vmul.f32 %v1992_v47, %v3988_v2  ;;  %v1997_v48 = vmul.f32 0.5, %v1981_v37 }
 0x5fd   : > { %v2725_v27 = vpop.eup %2724  ;;  %v1982_v28 = vadd.f32 1.0, %v2723_v51  ;;  %v2020_v33 = vpack.c.bf16 %v2010_v39, %v2009_v7  ;;  %v1995_v56 = vmul.f32 0.5, %v1979_v46 }
 0x5fe   : > { %v2019_v0 = vpack.c.bf16 %v2008_v1, %v2007_v60  ;;  %v1980_v14 = vadd.f32 1.0, %v2725_v27  ;;  %v2013_v35 = vmul.f32 %v1997_v48, %v3998_v17 }
 0x5ff   : > { %v1998_v19 = vmul.f32 0.5, %v1982_v28  ;;  %v2011_v25 = vmul.f32 %v1995_v56, %v4002_v5 }
 0x600   : > { %2461 = vmatprep.mubr.bf16.mxu0 %v2019_v0  ;;  %v1996_v62 = vmul.f32 0.5, %v1980_v14 }
 0x601   : > { %v2014_v53 = vmul.f32 %v1998_v19, %v4011_v22  ;;  %2462 = vmatmul.mubr.bf16.gmra.mrb[40].mxu0 %v2020_v33 }
 0x602   : > { %v2012_v57 = vmul.f32 %v1996_v62, %v4014_v9 }
 0x603   : > { %v2022_v2 = vpack.c.bf16 %v2014_v53, %v2013_v35 }
 0x604   : > { %v2021_v23 = vpack.c.bf16 %v2012_v57, %v2011_v25 }
 0x606   : > { %2465 = vmatprep.mubr.bf16.mxu1 %v2021_v23 }
 0x607   : > { %2466 = vmatmul.mubr.bf16.vlgmr.msra.gmra.mrb[32].mxu1 %v2022_v2 }
 0x6c3   : > { %v2455_v58 = vpop.f32.mrb[32].mxu0 }
 0x6c4   : > { %v2137_v26 = vadd.f32 %v2455_v58, %v2354_v44  ;;  %v2128_v30 = vpop.f32.mrb[33].mxu0 }
 0x6c5   : > { %v2129_v17 = vadd.f32 %v2354_v44, %v2128_v30  ;;  %v2456_v40 = vpop.f32.mrb[34].mxu0 }
 0x6c6   : > { %v2193_v22 = vadd.f32 %v2137_v26, %v3652_v32  ;;  %v2140_v34 = vadd.f32 %v2456_v40, %v2354_v44  ;;  %v2131_v5 = vpop.f32.mrb[35].mxu0 }
 0x6c7   : > { %v2191_v9 = vadd.f32 %v2129_v17, %v3644_v50  ;;  %v2132_v21 = vadd.f32 %v2354_v44, %v2131_v5 }
 0x6c8   : > { %2209 = vst [vmem:[%s4054_s15 + $0x10] sm:$0xff] %v2193_v22  ;;  %v2194_v63 = vadd.f32 %v2140_v34, %v3655_v11 }
 0x6c9   : > { %2207 = vst [vmem:[%s4054_s15] sm:$0xff] %v2191_v9  ;;  %v2192_v32 = vadd.f32 %v2132_v21, %v3647_v36 }
 0x6ca   : > { %2210 = vst [vmem:[%s4054_s15 + $0x18] sm:$0xff] %v2194_v63 }
 0x6cb   : > { %2208 = vst [vmem:[%s4054_s15 + $0x8] sm:$0xff] %v2192_v32  ;;  %v2459_v50 = vpop.f32.mrb[36].mxu0 }
 0x6cc   : > { %v2153_v20 = vadd.f32 %v2459_v50, %v2354_v44  ;;  %v2144_v52 = vpop.f32.mrb[37].mxu0 }
 0x6cd   : > { %v2145_v6 = vadd.f32 %v2354_v44, %v2144_v52  ;;  %v2460_v61 = vpop.f32.mrb[38].mxu0 }
 0x6ce   : > { %v2197_v31 = vadd.f32 %v2153_v20, %v3668_v16  ;;  %v2156_v59 = vadd.f32 %v2460_v61, %v2354_v44  ;;  %v2147_v8 = vpop.f32.mrb[39].mxu0 }
 0x6cf   : > { %v2195_v10 = vadd.f32 %v2145_v6, %v3660_v3  ;;  %v2148_v11 = vadd.f32 %v2354_v44, %v2147_v8 }
 0x6d0   : > { %2213 = vst [vmem:[%s4054_s15 + $0x30] sm:$0xff] %v2197_v31  ;;  %v2198_v36 = vadd.f32 %v2156_v59, %v3671_v54 }
 0x6d1   : > { %2211 = vst [vmem:[%s4054_s15 + $0x20] sm:$0xff] %v2195_v10  ;;  %v2196_v49 = vadd.f32 %v2148_v11, %v3663_v24 }
 0x6d2   : > { %2214 = vst [vmem:[%s4054_s15 + $0x38] sm:$0xff] %v2198_v36 }
 0x6d3   : > { %2212 = vst [vmem:[%s4054_s15 + $0x28] sm:$0xff] %v2196_v49 }
 0x6d4   : > { %v2463_v43 = vpop.f32.mrb[40].mxu0 }
 0x6d5   : > { %v2169_v29 = vadd.f32 %v2463_v43, %v2354_v44  ;;  %v2160_v12 = vpop.f32.mrb[41].mxu0 }
 0x6d6   : > { %v2161_v16 = vadd.f32 %v2354_v44, %v2160_v12  ;;  %v2464_v15 = vpop.f32.mrb[42].mxu0 }
 0x6d7   : > { %v2201_v3 = vadd.f32 %v2169_v29, %v3683_v41  ;;  %v2172_v37 = vadd.f32 %v2464_v15, %v2354_v44  ;;  %v2163_v47 = vpop.f32.mrb[43].mxu0 }
 0x6d8   : > { %v2199_v54 = vadd.f32 %v2161_v16, %v3675_v13  ;;  %v2164_v7 = vadd.f32 %v2354_v44, %v2163_v47 }
 0x6d9   : > { %2217 = vst [vmem:[%s4054_s15 + $0x50] sm:$0xff] %v2201_v3  ;;  %v2202_v24 = vadd.f32 %v2172_v37, %v3687_v38 }
 0x6da   : > { %2215 = vst [vmem:[%s4054_s15 + $0x40] sm:$0xff] %v2199_v54  ;;  %v2200_v39 = vadd.f32 %v2164_v7, %v3679_v55  ;;  %v2467_v46 = vpop.f32.mrb[32].mxu1 }
 0x6db   : > { %2218 = vst [vmem:[%s4054_s15 + $0x58] sm:$0xff] %v2202_v24  ;;  %v2185_v51 = vadd.f32 %v2467_v46, %v2354_v44  ;;  %v2176_v60 = vpop.f32.mrb[33].mxu1 }
 0x6dc   : > { %2216 = vst [vmem:[%s4054_s15 + $0x48] sm:$0xff] %v2200_v39  ;;  %v2177_v41 = vadd.f32 %v2354_v44, %v2176_v60  ;;  %v2468_v1 = vpop.f32.mrb[34].mxu1 }
 0x6dd   : > { %v2205_v13 = vadd.f32 %v2185_v51, %v3699_v42  ;;  %v2188_v38 = vadd.f32 %v2468_v1, %v2354_v44  ;;  %v2179_v27 = vpop.f32.mrb[35].mxu1 }
 0x6de   : > { %v2203_v55 = vadd.f32 %v2177_v41, %v3691_v45  ;;  %v2180_v48 = vadd.f32 %v2354_v44, %v2179_v27 }
 0x6df   : > { %2221 = vst [vmem:[%s4054_s15 + $0x70] sm:$0xff] %v2205_v13  ;;  %v2206_v28 = vadd.f32 %v2188_v38, %v3703_v18 }
 0x6e0   : > { %2219 = vst [vmem:[%s4054_s15 + $0x60] sm:$0xff] %v2203_v55  ;;  %v2204_v42 = vadd.f32 %v2180_v48, %v3695_v4 }
 0x6e1   : > { %2222 = vst [vmem:[%s4054_s15 + $0x78] sm:$0xff] %v2206_v28 }
 0x6e2   : > { %2220 = vst [vmem:[%s4054_s15 + $0x68] sm:$0xff] %v2204_v42 }
 0x6e3   : > { %2769 = shalt.err (!%p2766_p1)
}
 0x6e4   : > { %s2770_s16 = scalar_lea.hbm %s4087_s25, 2048  ;;  %s2774_s23 = scalar_lea.hbm %s4149_s13, 8192 }
 0x6e5   : > { %p2771_p3 = scmp.ne.s32.totalorder %s4087_s25, %s2770_s16  ;;  %p2775_p0 = scmp.lt.u32.totalorder %s4087_s25, %s4149_s13 }
 0x6e6   : > { %p2776_p2 = scmp.lt.u32.totalorder %s2774_s23, %s2770_s16  ;;  %p2778_p6 = scmp.lt.u32.totalorder %s2770_s16, %s4087_s25 }
 0x6e7   : > { %p2772_p4 = pnand %p2771_p3, %p4185_p10 }
 0x6e8   : > { %p2777_p7 = por %p2776_p2, %p2775_p0 }
 0x6e9   : > { %p2773_p5 = pneg %p2772_p4 }
 0x6ea   : > { %p2779_p11 = por %p2778_p6, %p2777_p7 }
 0x6ec   : > { %p2780_p12 = pnand %p2779_p11, %p2773_p5 }
 0x6ee   : > { %2783 = shalt.err (!%p2780_p12)
}
 0x6ef   : > { %s2829_s27 = smov 128   ;;  %s2830_s17 = smov 8  }
 0x6f0   : > { %2487 = dma.vmem_to_hbm [thread:$0]  (%p4185_p10), %s4089_s24, 2048, %s4087_s25, %s2224_s29, %s2829_s27, %s2829_s27, %s2830_s17  }
 0x6f1 PF: > { %s4186_s19 = sld [smem:[#allocation8_spill]]  ;;  %p2498_p8 = scmp.ge.s32.totalorder %s2822_s28, 2 }
 0x6f2   : > { %p4187_p9 = scmp.ne.s32.totalorder %s4170_s21, 0 }
 0x6f4   : > { %p2494_p13 = pnand %p2498_p8, %p4187_p9 }
 0x6f7   : > { %s2253_s15 = sand.u32 1, %s4186_s19  }
 0x6f8   : > { %s2254_s16 = scalar_lea.sflag [#allocation4], %s2253_s15 }
 0x6f9   : > { %2805 = dma.done.wait (!%p2494_p13), %s2254_s16, 2048  }
 0x6fa   : > { %2807 = vsyncadd (!%p2494_p13), %s2254_s16, 4294965248  ;;  %s4188_s28 = sld [smem:[#allocation10_spill]]  ;;  %s4189_s22 = sld [smem:[#allocation9_spill]] }
 0x6fb   : > { %s4190_s27 = sld [smem:[#allocation11_spill]]  ;;  %s4191_s25 = smov %s2814_s26 }
 0x700   : > { %p26_p1 = scmp.ge.s32.totalorder %s4188_s28, 6   ;;  %s4192_s26 = smov %s4189_s22 }
 0x702   :  { %28 = sbr.rel (!%p26_p1) target bundleno = 5 (0x5), region = 117 }
 0x709   :  { %2259 = vsyncpa [#allocation3], 1 }
 0x70a   :  { %2261 = vsyncpa [#allocation3 + $0x1], 1 }
 0x70b   :  { %2262 = vsyncpa [#allocation4], 1 }
 0x70c   :  { %2264 = vsyncpa [#allocation4 + $0x1], 1 }

</bundles_post_ra>
